<compile_context>
chip_gen: v7x
topology: tpu7x:2x2x1
jax: 0.10.0
libtpu: 0.0.40
codegen_flags: <defaults>
</compile_context>

<pallas_src>
import jax
import jax.numpy as jnp
from jax.experimental import pallas as pl
from jax.experimental.pallas import tpu as pltpu

# ----------------------------- tiny model config -----------------------------
B, S = 2, 8          # batch, sequence length
BS = B * S           # batch folded into matmul M dimension
H = 256              # hidden size
NH = 2               # number of attention heads
DH = H // NH         # head dim = 128 (lane-aligned)
F = 512              # MLP intermediate size
V = 512              # vocab size
NL = 2               # number of decoder layers
EPS = 1e-5           # CodeLlama rms_norm_eps
ROPE_THETA = 10000.0

assert S & (S - 1) == 0, "S must be a power of two for the in-kernel mask build"
LOG2_S = S.bit_length() - 1


# ------------------------------ fused Pallas kernel ---------------------------
def fused_forward_kernel(h0_ref, mask_ref, cos_ref, sin_ref,
                         attn_nw_ref, wqkv_ref, wo_ref,
                         ffn_nw_ref, wgu_ref, wd_ref,
                         final_nw_ref, wlm_ref,
                         logits_ref, kcache_ref, vcache_ref,
                         h_scratch):
    """Grid axis = decoder layer (sequential).  Hidden state stays in VMEM."""
    l = pl.program_id(0)

    @pl.when(l == 0)
    def _():
        h_scratch[...] = h0_ref[...]          # load embedded tokens once

    h = h_scratch[...]                        # [BS, H] f32

    def rmsnorm(x, w):                        # w: [1, H]
        var = jnp.mean(x * x, axis=-1, keepdims=True)
        return x * jax.lax.rsqrt(var + EPS) * w

    # Block-diagonal causal + padding additive bias, built on the VPU.
    t1 = jax.lax.broadcasted_iota(jnp.int32, (BS, BS), 0)
    t2 = jax.lax.broadcasted_iota(jnp.int32, (BS, BS), 1)
    same_batch = (t1 >> LOG2_S) == (t2 >> LOG2_S)
    causal = (t2 & (S - 1)) <= (t1 & (S - 1))
    allowed = same_batch & causal & (mask_ref[...] > 0.5)     # [BS, BS]
    bias = jnp.where(allowed, 0.0, -1e30).astype(jnp.float32)

    cos = cos_ref[...]                        # [BS, DH]
    sin = sin_ref[...]                        # [BS, DH], sign already folded in

    def rope(x):                              # x: [BS, DH]
        # rotate_half(x) == roll(x, DH/2) * sign, sign folded into `sin`.
        return x * cos + pltpu.roll(x, DH // 2, axis=1) * sin

    # --------------------------- self attention ------------------------------
    hn = rmsnorm(h, attn_nw_ref[0])
    qkv = jnp.dot(hn.astype(jnp.bfloat16), wqkv_ref[0],
                  preferred_element_type=jnp.float32)         # [BS, 3H] f32
    q = qkv[:, :H]
    k = qkv[:, H:2 * H]
    v = qkv[:, 2 * H:]
    vcache_ref[0] = v                                         # one [BS, H] store

    scale = 1.0 / (DH ** 0.5)
    ctx_heads = []
    for hd in range(NH):                                      # static unroll
        lo, hi = hd * DH, (hd + 1) * DH
        qh = rope(q[:, lo:hi])
        kh = rope(k[:, lo:hi])
        kcache_ref[0, :, lo:hi] = kh                          # lane-aligned store
        vh = v[:, lo:hi]
        scores = jax.lax.dot_general(
            qh.astype(jnp.bfloat16), kh.astype(jnp.bfloat16),
            (((1,), (1,)), ((), ())),
            preferred_element_type=jnp.float32) * scale + bias
        scores = scores - jnp.max(scores, axis=-1, keepdims=True)
        p = jnp.exp(scores)
        p = p * pl.reciprocal(jnp.sum(p, axis=-1, keepdims=True), approx=True)
        ctx_heads.append(
            jnp.dot(p.astype(jnp.bfloat16), vh.astype(jnp.bfloat16),
                    preferred_element_type=jnp.float32))
    ctx = jnp.concatenate(ctx_heads, axis=-1)                 # [BS, H]
    attn_out = jnp.dot(ctx.astype(jnp.bfloat16), wo_ref[0],
                       preferred_element_type=jnp.float32)
    h = h + attn_out

    # ----------------------------- SwiGLU MLP --------------------------------
    hn2 = rmsnorm(h, ffn_nw_ref[0])
    gu = jnp.dot(hn2.astype(jnp.bfloat16), wgu_ref[0],
                 preferred_element_type=jnp.float32)          # [BS, 2F]
    g = gu[:, :F]
    u = gu[:, F:]
    act = g * jax.nn.sigmoid(g) * u                           # SiLU(g) * u
    mlp_out = jnp.dot(act.astype(jnp.bfloat16), wd_ref[0],
                      preferred_element_type=jnp.float32)
    h = h + mlp_out
    h_scratch[...] = h

    # ------------------- final RMSNorm + LM head (last step) -----------------
    @pl.when(l == pl.num_programs(0) - 1)
    def _():
        hn3 = rmsnorm(h, final_nw_ref[...])
        logits_ref[...] = jnp.dot(hn3.astype(jnp.bfloat16), wlm_ref[...],
                                  preferred_element_type=jnp.float32)


# ------------------------------ wrappers --------------------------------------
def _const_spec(shape):
    nd = len(shape)
    return pl.BlockSpec(shape, lambda l, _nd=nd: (0,) * _nd)


def fused_forward(params, h0, mask_flat, cos_bs, sin_bs):
    in_specs = [
        _const_spec((BS, H)),                                  # embedded tokens
        _const_spec((1, BS)),                                  # attention mask
        _const_spec((BS, DH)),                                 # cos
        _const_spec((BS, DH)),                                 # sin (sign folded)
        pl.BlockSpec((1, 1, H), lambda l: (l, 0, 0)),          # attn norm weight
        pl.BlockSpec((1, H, 3 * H), lambda l: (l, 0, 0)),      # fused Wqkv
        pl.BlockSpec((1, H, H), lambda l: (l, 0, 0)),          # Wo
        pl.BlockSpec((1, 1, H), lambda l: (l, 0, 0)),          # ffn norm weight
        pl.BlockSpec((1, H, 2 * F), lambda l: (l, 0, 0)),      # fused W[gate|up]
        pl.BlockSpec((1, F, H), lambda l: (l, 0, 0)),          # W down
        _const_spec((1, H)),                                   # final norm weight
        _const_spec((H, V)),                                   # LM head weight
    ]
    out_specs = [
        pl.BlockSpec((BS, V), lambda l: (0, 0)),               # logits (resident)
        pl.BlockSpec((1, BS, H), lambda l: (l, 0, 0)),         # K cache per layer
        pl.BlockSpec((1, BS, H), lambda l: (l, 0, 0)),         # V cache per layer
    ]
    out_shape = [
        jax.ShapeDtypeStruct((BS, V), jnp.float32),
        jax.ShapeDtypeStruct((NL, BS, H), jnp.float32),
        jax.ShapeDtypeStruct((NL, BS, H), jnp.float32),
    ]
    return pl.pallas_call(
        fused_forward_kernel,
        grid=(NL,),
        in_specs=in_specs,
        out_specs=out_specs,
        out_shape=out_shape,
        scratch_shapes=[pltpu.VMEM((BS, H), jnp.float32)],     # resident hidden state
        compiler_params=pltpu.CompilerParams(
            dimension_semantics=("arbitrary",)),               # layer loop is sequential
    )(h0, mask_flat, cos_bs, sin_bs,
      params["attn_nw"], params["wqkv"], params["wo"],
      params["ffn_nw"], params["wgu"], params["wd"],
      params["final_nw"], params["w_lm"])


def init_params(key):
    scale = 0.02
    keys = jax.random.split(key, 6)

    def w(k, shape):   # bf16 weights: MXU-native, half the HBM traffic
        return (scale * jax.random.normal(k, shape, jnp.float32)).astype(jnp.bfloat16)

    return {
        "embed": scale * jax.random.normal(keys[0], (V, H), jnp.float32),
        "attn_nw": jnp.ones((NL, 1, H), jnp.float32),
        "wqkv": w(keys[1], (NL, H, 3 * H)),      # fused Q|K|V
        "wo": w(keys[2], (NL, H, H)),
        "ffn_nw": jnp.ones((NL, 1, H), jnp.float32),
        "wgu": w(keys[3], (NL, H, 2 * F)),       # fused gate|up
        "wd": w(keys[4], (NL, F, H)),
        "final_nw": jnp.ones((1, H), jnp.float32),
        "w_lm": w(keys[5], (H, V)),
    }


def rope_tables():
    inv_freq = 1.0 / (ROPE_THETA ** (jnp.arange(0, DH, 2, dtype=jnp.float32) / DH))
    pos = jnp.arange(S, dtype=jnp.float32)
    freqs = pos[:, None] * inv_freq[None, :]             # [S, DH//2]
    emb = jnp.concatenate([freqs, freqs], axis=-1)       # [S, DH]
    # fold rotate_half's [-1,...,-1,+1,...,+1] sign into sin so the kernel can
    # use a single pltpu.roll instead of slice+negate+concat.
    sign = jnp.concatenate([-jnp.ones((DH // 2,), jnp.float32),
                            jnp.ones((DH // 2,), jnp.float32)])
    return jnp.cos(emb), jnp.sin(emb) * sign[None, :]


def codellama_forward(params, input_ids, attention_mask=None, use_cache=True):
    """Mirrors CodeLlamaWrapper.forward -> {'logits', 'past_key_values'}."""
    # TODO(synk): incremental decoding with `past_key_values` as input (and the
    # HF `generate` sampling loop) is host-side control flow, not ported here.
    if attention_mask is None:
        attention_mask = jnp.ones((B, S), jnp.float32)
    mask_flat = attention_mask.astype(jnp.float32).reshape(1, BS)

    # glue: embedding gather + RoPE tables (batch folded into the M dimension)
    h0 = jnp.take(params["embed"], input_ids.reshape(-1), axis=0)   # [B*S, H]
    cos, sin_signed = rope_tables()
    cos_bs = jnp.tile(cos, (B, 1))                                  # [B*S, DH]
    sin_bs = jnp.tile(sin_signed, (B, 1))

    logits_flat, kcache, vcache = fused_forward(params, h0, mask_flat,
                                                cos_bs, sin_bs)

    logits = logits_flat.reshape(B, S, V)
    past_key_values = []
    for l in range(NL):
        k_l = kcache[l].reshape(B, S, NH, DH).transpose(0, 2, 1, 3)  # [B,NH,S,DH]
        v_l = vcache[l].reshape(B, S, NH, DH).transpose(0, 2, 1, 3)
        past_key_values.append((k_l, v_l))

    return {
        "logits": logits,
        "past_key_values": tuple(past_key_values) if use_cache else None,
    }


if __name__ == "__main__":
    key = jax.random.PRNGKey(0)
    pkey, ikey = jax.random.split(key)
    params = init_params(pkey)

    input_ids = jax.random.randint(ikey, (B, S), 0, V, dtype=jnp.int32)
    attention_mask = jnp.ones((B, S), jnp.int32)

    out = codellama_forward(params, input_ids, attention_mask, use_cache=True)
    jax.block_until_ready(out["logits"])
    for k_cache, v_cache in out["past_key_values"]:
        jax.block_until_ready(k_cache)
        jax.block_until_ready(v_cache)

    assert out["logits"].shape == (B, S, V)
    assert out["past_key_values"][0][0].shape == (B, NH, S, DH)
    assert bool(jnp.all(jnp.isfinite(out["logits"])))
    print("KERNEL_OK")
</pallas_src>

<mosaic_0001>
module attributes {stable_mosaic.version = 11 : i64} {
  func.func @fused_forward_kernel(%arg0: i32, %arg1: memref<16x256xf32, #tpu.memory_space<vmem>>, %arg2: memref<1x16xf32, #tpu.memory_space<vmem>>, %arg3: memref<16x128xf32, #tpu.memory_space<vmem>>, %arg4: memref<16x128xf32, #tpu.memory_space<vmem>>, %arg5: memref<1x1x256xf32, #tpu.memory_space<vmem>>, %arg6: memref<1x256x768xbf16, #tpu.memory_space<vmem>>, %arg7: memref<1x256x256xbf16, #tpu.memory_space<vmem>>, %arg8: memref<1x1x256xf32, #tpu.memory_space<vmem>>, %arg9: memref<1x256x1024xbf16, #tpu.memory_space<vmem>>, %arg10: memref<1x512x256xbf16, #tpu.memory_space<vmem>>, %arg11: memref<1x256xf32, #tpu.memory_space<vmem>>, %arg12: memref<256x512xbf16, #tpu.memory_space<vmem>>, %arg13: memref<16x512xf32, #tpu.memory_space<vmem>>, %arg14: memref<1x16x256xf32, #tpu.memory_space<vmem>>, %arg15: memref<1x16x256xf32, #tpu.memory_space<vmem>>, %arg16: memref<16x256xf32, #tpu.memory_space<vmem>>) attributes {dimension_semantics = [#tpu.dimension_semantics<arbitrary>], iteration_bounds = array<i64: 2>, scalar_prefetch = 0 : i64, scratch_operands = 1 : i64, tpu.core_type = #tpu.core_type<tc>, window_params = [{pipeline_mode = #tpu.pipeline_mode<synchronous>, transform_indices = @transform_0, window_bounds = array<i64: 16, 256>}, {pipeline_mode = #tpu.pipeline_mode<synchronous>, transform_indices = @transform_1, window_bounds = array<i64: 1, 16>}, {pipeline_mode = #tpu.pipeline_mode<synchronous>, transform_indices = @transform_2, window_bounds = array<i64: 16, 128>}, {pipeline_mode = #tpu.pipeline_mode<synchronous>, transform_indices = @transform_3, window_bounds = array<i64: 16, 128>}, {transform_indices = @transform_4, window_bounds = array<i64: 1, 1, 256>}, {transform_indices = @transform_5, window_bounds = array<i64: 1, 256, 768>}, {transform_indices = @transform_6, window_bounds = array<i64: 1, 256, 256>}, {transform_indices = @transform_7, window_bounds = array<i64: 1, 1, 256>}, {transform_indices = @transform_8, window_bounds = array<i64: 1, 256, 1024>}, {transform_indices = @transform_9, window_bounds = array<i64: 1, 512, 256>}, {pipeline_mode = #tpu.pipeline_mode<synchronous>, transform_indices = @transform_10, window_bounds = array<i64: 1, 256>}, {pipeline_mode = #tpu.pipeline_mode<synchronous>, transform_indices = @transform_11, window_bounds = array<i64: 256, 512>}, {pipeline_mode = #tpu.pipeline_mode<synchronous>, transform_indices = @transform_12, window_bounds = array<i64: 16, 512>}, {transform_indices = @transform_13, window_bounds = array<i64: 1, 16, 256>}, {transform_indices = @transform_14, window_bounds = array<i64: 1, 16, 256>}]} {
    %c0_i32 = arith.constant 0 : i32
    %0 = arith.cmpi eq, %arg0, %c0_i32 : i32
    %1 = arith.extui %0 : i1 to i32
    %c0_i32_0 = arith.constant 0 : i32
    %2 = arith.cmpi ne, %1, %c0_i32_0 : i32
    scf.if %2 {
      %c0_65 = arith.constant 0 : index
      %c0_66 = arith.constant 0 : index
      %159 = vector.load %arg1[%c0_65, %c0_66] : memref<16x256xf32, #tpu.memory_space<vmem>>, vector<16x256xf32>
      %c0_67 = arith.constant 0 : index
      %c0_68 = arith.constant 0 : index
      %160 = vector.load %arg16[%c0_67, %c0_68] : memref<16x256xf32, #tpu.memory_space<vmem>>, vector<16x256xf32>
      tpu.vector_store %arg16[%c0_67, %c0_68], %159 {strides = array<i32>} : memref<16x256xf32, #tpu.memory_space<vmem>>, vector<16x256xf32>,
    } else {
    }
    %c0 = arith.constant 0 : index
    %c0_1 = arith.constant 0 : index
    %3 = vector.load %arg16[%c0, %c0_1] : memref<16x256xf32, #tpu.memory_space<vmem>>, vector<16x256xf32>
    %4 = tpu.iota {dimensions = array<i32: 0>} : vector<16x16xi32>
    %5 = tpu.iota {dimensions = array<i32: 1>} : vector<16x16xi32>
    %c3_i32 = arith.constant 3 : i32
    %6 = vector.broadcast %c3_i32 : i32 to vector<16x16xi32>
    %7 = arith.shrsi %4, %6 : vector<16x16xi32>
    %c3_i32_2 = arith.constant 3 : i32
    %8 = vector.broadcast %c3_i32_2 : i32 to vector<16x16xi32>
    %9 = arith.shrsi %5, %8 : vector<16x16xi32>
    %10 = arith.cmpi eq, %7, %9 : vector<16x16xi32>
    %c7_i32 = arith.constant 7 : i32
    %11 = vector.broadcast %c7_i32 : i32 to vector<16x16xi32>
    %12 = arith.andi %5, %11 : vector<16x16xi32>
    %c7_i32_3 = arith.constant 7 : i32
    %13 = vector.broadcast %c7_i32_3 : i32 to vector<16x16xi32>
    %14 = arith.andi %4, %13 : vector<16x16xi32>
    %15 = arith.cmpi sle, %12, %14 : vector<16x16xi32>
    %16 = arith.andi %10, %15 : vector<16x16xi1>
    %c0_4 = arith.constant 0 : index
    %c0_5 = arith.constant 0 : index
    %17 = vector.load %arg2[%c0_4, %c0_5] : memref<1x16xf32, #tpu.memory_space<vmem>>, vector<1x16xf32>
    %cst = arith.constant 5.000000e-01 : f32
    %18 = vector.broadcast %cst : f32 to vector<1x16xf32>
    %19 = arith.cmpf ogt, %17, %18 : vector<1x16xf32>
    %20 = vector.broadcast %19 : vector<1x16xi1> to vector<16x16xi1>
    %21 = arith.andi %16, %20 : vector<16x16xi1>
    %cst_6 = arith.constant 0.000000e+00 : f32
    %cst_7 = arith.constant -1.000000e+30 : f32
    %22 = vector.broadcast %cst_6 : f32 to vector<16x16xf32>
    %23 = vector.broadcast %cst_7 : f32 to vector<16x16xf32>
    %24 = arith.select %21, %22, %23 : vector<16x16xi1>, vector<16x16xf32>
    %c0_8 = arith.constant 0 : index
    %c0_9 = arith.constant 0 : index
    %25 = vector.load %arg3[%c0_8, %c0_9] : memref<16x128xf32, #tpu.memory_space<vmem>>, vector<16x128xf32>
    %c0_10 = arith.constant 0 : index
    %c0_11 = arith.constant 0 : index
    %26 = vector.load %arg4[%c0_10, %c0_11] : memref<16x128xf32, #tpu.memory_space<vmem>>, vector<16x128xf32>
    %c0_12 = arith.constant 0 : index
    %c0_13 = arith.constant 0 : index
    %c0_14 = arith.constant 0 : index
    %27 = vector.load %arg5[%c0_12, %c0_13, %c0_14] : memref<1x1x256xf32, #tpu.memory_space<vmem>>, vector<1x1x256xf32>
    %28 = vector.shape_cast %27 : vector<1x1x256xf32> to vector<1x256xf32>
    %29 = arith.mulf %3, %3 : vector<16x256xf32>
    %cst_15 = arith.constant dense<0.000000e+00> : vector<16xf32>
    %30 = vector.multi_reduction <add>, %29, %cst_15 [1] : vector<16x256xf32> to vector<16xf32>
    %31 = vector.shape_cast %30 : vector<16xf32> to vector<16x1xf32>
    %cst_16 = arith.constant 2.560000e+02 : f32
    %32 = vector.broadcast %cst_16 : f32 to vector<16x1xf32>
    %33 = arith.divf %31, %32 : vector<16x1xf32>
    %cst_17 = arith.constant 9.99999974E-6 : f32
    %34 = vector.broadcast %cst_17 : f32 to vector<16x1xf32>
    %35 = arith.addf %33, %34 : vector<16x1xf32>
    %36 = math.rsqrt %35 : vector<16x1xf32>
    %37 = vector.broadcast %36 : vector<16x1xf32> to vector<16x256xf32>
    %38 = arith.mulf %3, %37 : vector<16x256xf32>
    %39 = vector.broadcast %28 : vector<1x256xf32> to vector<16x256xf32>
    %40 = arith.mulf %38, %39 : vector<16x256xf32>
    %41 = arith.truncf %40 : vector<16x256xf32> to vector<16x256xbf16>
    %c0_18 = arith.constant 0 : index
    %c0_19 = arith.constant 0 : index
    %c0_20 = arith.constant 0 : index
    %42 = vector.load %arg6[%c0_18, %c0_19, %c0_20] : memref<1x256x768xbf16, #tpu.memory_space<vmem>>, vector<1x256x768xbf16>
    %43 = vector.shape_cast %42 : vector<1x256x768xbf16> to vector<256x768xbf16>
    %cst_21 = arith.constant dense<0.000000e+00> : vector<16x768xf32>
    %44 = tpu.matmul %41, %43, %cst_21 {dimension_numbers = #tpu.dot_dimension_numbers<[1], [0], [0], [1], [0, 0, 1, 1], [], []>} : vector<16x256xbf16>, vector<256x768xbf16>, vector<16x768xf32> -> vector<16x768xf32>
    %45 = vector.extract_strided_slice %44 {offsets = [0, 0], sizes = [16, 256], strides = [1, 1]} : vector<16x768xf32> to vector<16x256xf32>
    %46 = vector.extract_strided_slice %44 {offsets = [0, 256], sizes = [16, 256], strides = [1, 1]} : vector<16x768xf32> to vector<16x256xf32>
    %47 = vector.extract_strided_slice %44 {offsets = [0, 512], sizes = [16, 256], strides = [1, 1]} : vector<16x768xf32> to vector<16x256xf32>
    %c0_22 = arith.constant 0 : index
    %c0_23 = arith.constant 0 : index
    %c0_24 = arith.constant 0 : index
    %48 = vector.load %arg15[%c0_22, %c0_23, %c0_24] : memref<1x16x256xf32, #tpu.memory_space<vmem>>, vector<1x16x256xf32>
    %49 = vector.shape_cast %48 : vector<1x16x256xf32> to vector<16x256xf32>
    %50 = vector.shape_cast %47 : vector<16x256xf32> to vector<1x16x256xf32>
    tpu.vector_store %arg15[%c0_22, %c0_23, %c0_24], %50 {strides = array<i32>} : memref<1x16x256xf32, #tpu.memory_space<vmem>>, vector<1x16x256xf32>,
    %51 = vector.extract_strided_slice %45 {offsets = [0, 0], sizes = [16, 128], strides = [1, 1]} : vector<16x256xf32> to vector<16x128xf32>
    %52 = arith.mulf %51, %25 : vector<16x128xf32>
    %c64_i32 = arith.constant 64 : i32
    %53 = tpu.dynamic_rotate %51 by %c64_i32 dim 1 : vector<16x128xf32>, i32 -> vector<16x128xf32>
    %54 = arith.mulf %53, %26 : vector<16x128xf32>
    %55 = arith.addf %52, %54 : vector<16x128xf32>
    %56 = vector.extract_strided_slice %46 {offsets = [0, 0], sizes = [16, 128], strides = [1, 1]} : vector<16x256xf32> to vector<16x128xf32>
    %57 = arith.mulf %56, %25 : vector<16x128xf32>
    %c64_i32_25 = arith.constant 64 : i32
    %58 = tpu.dynamic_rotate %56 by %c64_i32_25 dim 1 : vector<16x128xf32>, i32 -> vector<16x128xf32>
    %59 = arith.mulf %58, %26 : vector<16x128xf32>
    %60 = arith.addf %57, %59 : vector<16x128xf32>
    %c0_26 = arith.constant 0 : index
    %c0_27 = arith.constant 0 : index
    %c0_28 = arith.constant 0 : index
    %61 = vector.load %arg14[%c0_26, %c0_27, %c0_28] : memref<1x16x256xf32, #tpu.memory_space<vmem>>, vector<1x16x128xf32>
    %62 = vector.shape_cast %61 : vector<1x16x128xf32> to vector<16x128xf32>
    %63 = vector.shape_cast %60 : vector<16x128xf32> to vector<1x16x128xf32>
    tpu.vector_store %arg14[%c0_26, %c0_27, %c0_28], %63 {strides = array<i32>} : memref<1x16x256xf32, #tpu.memory_space<vmem>>, vector<1x16x128xf32>,
    %64 = vector.extract_strided_slice %47 {offsets = [0, 0], sizes = [16, 128], strides = [1, 1]} : vector<16x256xf32> to vector<16x128xf32>
    %65 = arith.truncf %55 : vector<16x128xf32> to vector<16x128xbf16>
    %66 = arith.truncf %60 : vector<16x128xf32> to vector<16x128xbf16>
    %cst_29 = arith.constant dense<0.000000e+00> : vector<16x16xf32>
    %67 = tpu.matmul %65, %66, %cst_29 {dimension_numbers = #tpu.dot_dimension_numbers<[1], [1], [0], [0], [0, 0, 1, 0], [], []>} : vector<16x128xbf16>, vector<16x128xbf16>, vector<16x16xf32> -> vector<16x16xf32>
    %cst_30 = arith.constant 0.0883883461 : f32
    %68 = vector.broadcast %cst_30 : f32 to vector<16x16xf32>
    %69 = arith.mulf %67, %68 : vector<16x16xf32>
    %70 = arith.addf %69, %24 : vector<16x16xf32>
    %cst_31 = arith.constant dense<0xFF800000> : vector<16xf32>
    %71 = vector.multi_reduction <maximumf>, %70, %cst_31 [1] : vector<16x16xf32> to vector<16xf32>
    %72 = vector.shape_cast %71 : vector<16xf32> to vector<16x1xf32>
    %73 = vector.broadcast %72 : vector<16x1xf32> to vector<16x16xf32>
    %74 = arith.subf %70, %73 : vector<16x16xf32>
    %75 = math.exp %74 : vector<16x16xf32>
    %cst_32 = arith.constant dense<0.000000e+00> : vector<16xf32>
    %76 = vector.multi_reduction <add>, %75, %cst_32 [1] : vector<16x16xf32> to vector<16xf32>
    %77 = vector.shape_cast %76 : vector<16xf32> to vector<16x1xf32>
    %78 = tpu.reciprocal %77 {approx = true} : vector<16x1xf32> -> vector<16x1xf32>
    %79 = vector.broadcast %78 : vector<16x1xf32> to vector<16x16xf32>
    %80 = arith.mulf %75, %79 : vector<16x16xf32>
    %81 = arith.truncf %80 : vector<16x16xf32> to vector<16x16xbf16>
    %82 = arith.truncf %64 : vector<16x128xf32> to vector<16x128xbf16>
    %cst_33 = arith.constant dense<0.000000e+00> : vector<16x128xf32>
    %83 = tpu.matmul %81, %82, %cst_33 {dimension_numbers = #tpu.dot_dimension_numbers<[1], [0], [0], [1], [0, 0, 1, 1], [], []>} : vector<16x16xbf16>, vector<16x128xbf16>, vector<16x128xf32> -> vector<16x128xf32>
    %84 = vector.extract_strided_slice %45 {offsets = [0, 128], sizes = [16, 128], strides = [1, 1]} : vector<16x256xf32> to vector<16x128xf32>
    %85 = arith.mulf %84, %25 : vector<16x128xf32>
    %c64_i32_34 = arith.constant 64 : i32
    %86 = tpu.dynamic_rotate %84 by %c64_i32_34 dim 1 : vector<16x128xf32>, i32 -> vector<16x128xf32>
    %87 = arith.mulf %86, %26 : vector<16x128xf32>
    %88 = arith.addf %85, %87 : vector<16x128xf32>
    %89 = vector.extract_strided_slice %46 {offsets = [0, 128], sizes = [16, 128], strides = [1, 1]} : vector<16x256xf32> to vector<16x128xf32>
    %90 = arith.mulf %89, %25 : vector<16x128xf32>
    %c64_i32_35 = arith.constant 64 : i32
    %91 = tpu.dynamic_rotate %89 by %c64_i32_35 dim 1 : vector<16x128xf32>, i32 -> vector<16x128xf32>
    %92 = arith.mulf %91, %26 : vector<16x128xf32>
    %93 = arith.addf %90, %92 : vector<16x128xf32>
    %c0_36 = arith.constant 0 : index
    %c0_37 = arith.constant 0 : index
    %c128 = arith.constant 128 : index
    %94 = vector.load %arg14[%c0_36, %c0_37, %c128] : memref<1x16x256xf32, #tpu.memory_space<vmem>>, vector<1x16x128xf32>
    %95 = vector.shape_cast %94 : vector<1x16x128xf32> to vector<16x128xf32>
    %96 = vector.shape_cast %93 : vector<16x128xf32> to vector<1x16x128xf32>
    tpu.vector_store %arg14[%c0_36, %c0_37, %c128], %96 {strides = array<i32>} : memref<1x16x256xf32, #tpu.memory_space<vmem>>, vector<1x16x128xf32>,
    %97 = vector.extract_strided_slice %47 {offsets = [0, 128], sizes = [16, 128], strides = [1, 1]} : vector<16x256xf32> to vector<16x128xf32>
    %98 = arith.truncf %88 : vector<16x128xf32> to vector<16x128xbf16>
    %99 = arith.truncf %93 : vector<16x128xf32> to vector<16x128xbf16>
    %cst_38 = arith.constant dense<0.000000e+00> : vector<16x16xf32>
    %100 = tpu.matmul %98, %99, %cst_38 {dimension_numbers = #tpu.dot_dimension_numbers<[1], [1], [0], [0], [0, 0, 1, 0], [], []>} : vector<16x128xbf16>, vector<16x128xbf16>, vector<16x16xf32> -> vector<16x16xf32>
    %cst_39 = arith.constant 0.0883883461 : f32
    %101 = vector.broadcast %cst_39 : f32 to vector<16x16xf32>
    %102 = arith.mulf %100, %101 : vector<16x16xf32>
    %103 = arith.addf %102, %24 : vector<16x16xf32>
    %cst_40 = arith.constant dense<0xFF800000> : vector<16xf32>
    %104 = vector.multi_reduction <maximumf>, %103, %cst_40 [1] : vector<16x16xf32> to vector<16xf32>
    %105 = vector.shape_cast %104 : vector<16xf32> to vector<16x1xf32>
    %106 = vector.broadcast %105 : vector<16x1xf32> to vector<16x16xf32>
    %107 = arith.subf %103, %106 : vector<16x16xf32>
    %108 = math.exp %107 : vector<16x16xf32>
    %cst_41 = arith.constant dense<0.000000e+00> : vector<16xf32>
    %109 = vector.multi_reduction <add>, %108, %cst_41 [1] : vector<16x16xf32> to vector<16xf32>
    %110 = vector.shape_cast %109 : vector<16xf32> to vector<16x1xf32>
    %111 = tpu.reciprocal %110 {approx = true} : vector<16x1xf32> -> vector<16x1xf32>
    %112 = vector.broadcast %111 : vector<16x1xf32> to vector<16x16xf32>
    %113 = arith.mulf %108, %112 : vector<16x16xf32>
    %114 = arith.truncf %113 : vector<16x16xf32> to vector<16x16xbf16>
    %115 = arith.truncf %97 : vector<16x128xf32> to vector<16x128xbf16>
    %cst_42 = arith.constant dense<0.000000e+00> : vector<16x128xf32>
    %116 = tpu.matmul %114, %115, %cst_42 {dimension_numbers = #tpu.dot_dimension_numbers<[1], [0], [0], [1], [0, 0, 1, 1], [], []>} : vector<16x16xbf16>, vector<16x128xbf16>, vector<16x128xf32> -> vector<16x128xf32>
    %117 = tpu.concatenate %83, %116 in 1 : vector<16x128xf32>, vector<16x128xf32> -> vector<16x256xf32>
    %118 = arith.truncf %117 : vector<16x256xf32> to vector<16x256xbf16>
    %c0_43 = arith.constant 0 : index
    %c0_44 = arith.constant 0 : index
    %c0_45 = arith.constant 0 : index
    %119 = vector.load %arg7[%c0_43, %c0_44, %c0_45] : memref<1x256x256xbf16, #tpu.memory_space<vmem>>, vector<1x256x256xbf16>
    %120 = vector.shape_cast %119 : vector<1x256x256xbf16> to vector<256x256xbf16>
    %cst_46 = arith.constant dense<0.000000e+00> : vector<16x256xf32>
    %121 = tpu.matmul %118, %120, %cst_46 {dimension_numbers = #tpu.dot_dimension_numbers<[1], [0], [0], [1], [0, 0, 1, 1], [], []>} : vector<16x256xbf16>, vector<256x256xbf16>, vector<16x256xf32> -> vector<16x256xf32>
    %122 = arith.addf %3, %121 : vector<16x256xf32>
    %c0_47 = arith.constant 0 : index
    %c0_48 = arith.constant 0 : index
    %c0_49 = arith.constant 0 : index
    %123 = vector.load %arg8[%c0_47, %c0_48, %c0_49] : memref<1x1x256xf32, #tpu.memory_space<vmem>>, vector<1x1x256xf32>
    %124 = vector.shape_cast %123 : vector<1x1x256xf32> to vector<1x256xf32>
    %125 = arith.mulf %122, %122 : vector<16x256xf32>
    %cst_50 = arith.constant dense<0.000000e+00> : vector<16xf32>
    %126 = vector.multi_reduction <add>, %125, %cst_50 [1] : vector<16x256xf32> to vector<16xf32>
    %127 = vector.shape_cast %126 : vector<16xf32> to vector<16x1xf32>
    %cst_51 = arith.constant 2.560000e+02 : f32
    %128 = vector.broadcast %cst_51 : f32 to vector<16x1xf32>
    %129 = arith.divf %127, %128 : vector<16x1xf32>
    %cst_52 = arith.constant 9.99999974E-6 : f32
    %130 = vector.broadcast %cst_52 : f32 to vector<16x1xf32>
    %131 = arith.addf %129, %130 : vector<16x1xf32>
    %132 = math.rsqrt %131 : vector<16x1xf32>
    %133 = vector.broadcast %132 : vector<16x1xf32> to vector<16x256xf32>
    %134 = arith.mulf %122, %133 : vector<16x256xf32>
    %135 = vector.broadcast %124 : vector<1x256xf32> to vector<16x256xf32>
    %136 = arith.mulf %134, %135 : vector<16x256xf32>
    %137 = arith.truncf %136 : vector<16x256xf32> to vector<16x256xbf16>
    %c0_53 = arith.constant 0 : index
    %c0_54 = arith.constant 0 : index
    %c0_55 = arith.constant 0 : index
    %138 = vector.load %arg9[%c0_53, %c0_54, %c0_55] : memref<1x256x1024xbf16, #tpu.memory_space<vmem>>, vector<1x256x1024xbf16>
    %139 = vector.shape_cast %138 : vector<1x256x1024xbf16> to vector<256x1024xbf16>
    %cst_56 = arith.constant dense<0.000000e+00> : vector<16x1024xf32>
    %140 = tpu.matmul %137, %139, %cst_56 {dimension_numbers = #tpu.dot_dimension_numbers<[1], [0], [0], [1], [0, 0, 1, 1], [], []>} : vector<16x256xbf16>, vector<256x1024xbf16>, vector<16x1024xf32> -> vector<16x1024xf32>
    %141 = vector.extract_strided_slice %140 {offsets = [0, 0], sizes = [16, 512], strides = [1, 1]} : vector<16x1024xf32> to vector<16x512xf32>
    %142 = vector.extract_strided_slice %140 {offsets = [0, 512], sizes = [16, 512], strides = [1, 1]} : vector<16x1024xf32> to vector<16x512xf32>
    %143 = arith.negf %141 : vector<16x512xf32>
    %144 = math.exp %143 : vector<16x512xf32>
    %cst_57 = arith.constant 1.000000e+00 : f32
    %145 = vector.broadcast %cst_57 : f32 to vector<16x512xf32>
    %146 = arith.addf %145, %144 : vector<16x512xf32>
    %147 = arith.divf %145, %146 : vector<16x512xf32>
    %148 = arith.mulf %141, %147 : vector<16x512xf32>
    %149 = arith.mulf %148, %142 : vector<16x512xf32>
    %150 = arith.truncf %149 : vector<16x512xf32> to vector<16x512xbf16>
    %c0_58 = arith.constant 0 : index
    %c0_59 = arith.constant 0 : index
    %c0_60 = arith.constant 0 : index
    %151 = vector.load %arg10[%c0_58, %c0_59, %c0_60] : memref<1x512x256xbf16, #tpu.memory_space<vmem>>, vector<1x512x256xbf16>
    %152 = vector.shape_cast %151 : vector<1x512x256xbf16> to vector<512x256xbf16>
    %cst_61 = arith.constant dense<0.000000e+00> : vector<16x256xf32>
    %153 = tpu.matmul %150, %152, %cst_61 {dimension_numbers = #tpu.dot_dimension_numbers<[1], [0], [0], [1], [0, 0, 1, 1], [], []>} : vector<16x512xbf16>, vector<512x256xbf16>, vector<16x256xf32> -> vector<16x256xf32>
    %154 = arith.addf %122, %153 : vector<16x256xf32>
    %c0_62 = arith.constant 0 : index
    %c0_63 = arith.constant 0 : index
    %155 = vector.load %arg16[%c0_62, %c0_63] : memref<16x256xf32, #tpu.memory_space<vmem>>, vector<16x256xf32>
    tpu.vector_store %arg16[%c0_62, %c0_63], %154 {strides = array<i32>} : memref<16x256xf32, #tpu.memory_space<vmem>>, vector<16x256xf32>,
    %c1_i32 = arith.constant 1 : i32
    %156 = arith.cmpi eq, %arg0, %c1_i32 : i32
    %157 = arith.extui %156 : i1 to i32
    %c0_i32_64 = arith.constant 0 : i32
    %158 = arith.cmpi ne, %157, %c0_i32_64 : i32
    scf.if %158 {
      %c0_65 = arith.constant 0 : index
      %c0_66 = arith.constant 0 : index
      %159 = vector.load %arg11[%c0_65, %c0_66] : memref<1x256xf32, #tpu.memory_space<vmem>>, vector<1x256xf32>
      %160 = arith.mulf %154, %154 : vector<16x256xf32>
      %cst_67 = arith.constant dense<0.000000e+00> : vector<16xf32>
      %161 = vector.multi_reduction <add>, %160, %cst_67 [1] : vector<16x256xf32> to vector<16xf32>
      %162 = vector.shape_cast %161 : vector<16xf32> to vector<16x1xf32>
      %cst_68 = arith.constant 2.560000e+02 : f32
      %163 = vector.broadcast %cst_68 : f32 to vector<16x1xf32>
      %164 = arith.divf %162, %163 : vector<16x1xf32>
      %cst_69 = arith.constant 9.99999974E-6 : f32
      %165 = vector.broadcast %cst_69 : f32 to vector<16x1xf32>
      %166 = arith.addf %164, %165 : vector<16x1xf32>
      %167 = math.rsqrt %166 : vector<16x1xf32>
      %168 = vector.broadcast %167 : vector<16x1xf32> to vector<16x256xf32>
      %169 = arith.mulf %154, %168 : vector<16x256xf32>
      %170 = vector.broadcast %159 : vector<1x256xf32> to vector<16x256xf32>
      %171 = arith.mulf %169, %170 : vector<16x256xf32>
      %172 = arith.truncf %171 : vector<16x256xf32> to vector<16x256xbf16>
      %c0_70 = arith.constant 0 : index
      %c0_71 = arith.constant 0 : index
      %173 = vector.load %arg12[%c0_70, %c0_71] : memref<256x512xbf16, #tpu.memory_space<vmem>>, vector<256x512xbf16>
      %cst_72 = arith.constant dense<0.000000e+00> : vector<16x512xf32>
      %174 = tpu.matmul %172, %173, %cst_72 {dimension_numbers = #tpu.dot_dimension_numbers<[1], [0], [0], [1], [0, 0, 1, 1], [], []>} : vector<16x256xbf16>, vector<256x512xbf16>, vector<16x512xf32> -> vector<16x512xf32>
      %c0_73 = arith.constant 0 : index
      %c0_74 = arith.constant 0 : index
      %175 = vector.load %arg13[%c0_73, %c0_74] : memref<16x512xf32, #tpu.memory_space<vmem>>, vector<16x512xf32>
      tpu.vector_store %arg13[%c0_73, %c0_74], %174 {strides = array<i32>} : memref<16x512xf32, #tpu.memory_space<vmem>>, vector<16x512xf32>,
    } else {
    }
    return
  }
  func.func @transform_0(%arg0: i32) -> (i32, i32) {
    %c0_i32 = arith.constant 0 : i32
    %c0_i32_0 = arith.constant 0 : i32
    %c0_i32_1 = arith.constant 0 : i32
    return %c0_i32, %c0_i32_0 : i32, i32
  }
  func.func @transform_1(%arg0: i32) -> (i32, i32) {
    %c0_i32 = arith.constant 0 : i32
    %c0_i32_0 = arith.constant 0 : i32
    %c0_i32_1 = arith.constant 0 : i32
    return %c0_i32, %c0_i32_0 : i32, i32
  }
  func.func @transform_2(%arg0: i32) -> (i32, i32) {
    %c0_i32 = arith.constant 0 : i32
    %c0_i32_0 = arith.constant 0 : i32
    %c0_i32_1 = arith.constant 0 : i32
    return %c0_i32, %c0_i32_0 : i32, i32
  }
  func.func @transform_3(%arg0: i32) -> (i32, i32) {
    %c0_i32 = arith.constant 0 : i32
    %c0_i32_0 = arith.constant 0 : i32
    %c0_i32_1 = arith.constant 0 : i32
    return %c0_i32, %c0_i32_0 : i32, i32
  }
  func.func @transform_4(%arg0: i32) -> (i32, i32, i32) {
    %c0_i32 = arith.constant 0 : i32
    %c0_i32_0 = arith.constant 0 : i32
    %c0_i32_1 = arith.constant 0 : i32
    return %arg0, %c0_i32, %c0_i32_0 : i32, i32, i32
  }
  func.func @transform_5(%arg0: i32) -> (i32, i32, i32) {
    %c0_i32 = arith.constant 0 : i32
    %c0_i32_0 = arith.constant 0 : i32
    %c0_i32_1 = arith.constant 0 : i32
    return %arg0, %c0_i32, %c0_i32_0 : i32, i32, i32
  }
  func.func @transform_6(%arg0: i32) -> (i32, i32, i32) {
    %c0_i32 = arith.constant 0 : i32
    %c0_i32_0 = arith.constant 0 : i32
    %c0_i32_1 = arith.constant 0 : i32
    return %arg0, %c0_i32, %c0_i32_0 : i32, i32, i32
  }
  func.func @transform_7(%arg0: i32) -> (i32, i32, i32) {
    %c0_i32 = arith.constant 0 : i32
    %c0_i32_0 = arith.constant 0 : i32
    %c0_i32_1 = arith.constant 0 : i32
    return %arg0, %c0_i32, %c0_i32_0 : i32, i32, i32
  }
  func.func @transform_8(%arg0: i32) -> (i32, i32, i32) {
    %c0_i32 = arith.constant 0 : i32
    %c0_i32_0 = arith.constant 0 : i32
    %c0_i32_1 = arith.constant 0 : i32
    return %arg0, %c0_i32, %c0_i32_0 : i32, i32, i32
  }
  func.func @transform_9(%arg0: i32) -> (i32, i32, i32) {
    %c0_i32 = arith.constant 0 : i32
    %c0_i32_0 = arith.constant 0 : i32
    %c0_i32_1 = arith.constant 0 : i32
    return %arg0, %c0_i32, %c0_i32_0 : i32, i32, i32
  }
  func.func @transform_10(%arg0: i32) -> (i32, i32) {
    %c0_i32 = arith.constant 0 : i32
    %c0_i32_0 = arith.constant 0 : i32
    %c0_i32_1 = arith.constant 0 : i32
    return %c0_i32, %c0_i32_0 : i32, i32
  }
  func.func @transform_11(%arg0: i32) -> (i32, i32) {
    %c0_i32 = arith.constant 0 : i32
    %c0_i32_0 = arith.constant 0 : i32
    %c0_i32_1 = arith.constant 0 : i32
    return %c0_i32, %c0_i32_0 : i32, i32
  }
  func.func @transform_12(%arg0: i32) -> (i32, i32) {
    %c0_i32 = arith.constant 0 : i32
    %c0_i32_0 = arith.constant 0 : i32
    %c0_i32_1 = arith.constant 0 : i32
    return %c0_i32, %c0_i32_0 : i32, i32
  }
  func.func @transform_13(%arg0: i32) -> (i32, i32, i32) {
    %c0_i32 = arith.constant 0 : i32
    %c0_i32_0 = arith.constant 0 : i32
    %c0_i32_1 = arith.constant 0 : i32
    return %arg0, %c0_i32, %c0_i32_0 : i32, i32, i32
  }
  func.func @transform_14(%arg0: i32) -> (i32, i32, i32) {
    %c0_i32 = arith.constant 0 : i32
    %c0_i32_0 = arith.constant 0 : i32
    %c0_i32_1 = arith.constant 0 : i32
    return %arg0, %c0_i32, %c0_i32_0 : i32, i32, i32
  }
}

</mosaic_0001>

<bundles_post_ra>
// kernel: tpu_custom_call.1
= control target key start
LH: loop header
LB: loop body
LE: loop exit
PB: predicated region body
PF: predicated region fallthrough
CT: control target
= control target key end

     0   :  { %s6868_s0 = inlined_call_operand.hbm [shape: f32[16,256], index: 0, kind: input, shape index: {}]   ;;  %s6869_s1 = inlined_call_operand.vmem [shape: f32[1,16], index: 1, kind: input, shape index: {}]   ;;  %s6870_s2 = inlined_call_operand.hbm [shape: f32[16,128], index: 2, kind: input, shape index: {}]   ;;  %s6871_s3 = inlined_call_operand.hbm [shape: f32[16,128], index: 3, kind: input, shape index: {}]   ;;  %s6872_s4 = inlined_call_operand.vmem [shape: f32[2,1,256], index: 4, kind: input, shape index: {}]   ;;  %s6873_s5 = inlined_call_operand.hbm [shape: bf16[2,256,768], index: 5, kind: input, shape index: {}]   ;;  %s6874_s6 = inlined_call_operand.hbm [shape: bf16[2,256,256], index: 6, kind: input, shape index: {}]   ;;  %s6875_s7 = inlined_call_operand.vmem [shape: f32[2,1,256], index: 7, kind: input, shape index: {}]   ;;  %s6876_s8 = inlined_call_operand.hbm [shape: bf16[2,256,1024], index: 8, kind: input, shape index: {}]   ;;  %s6877_s9 = inlined_call_operand.hbm [shape: bf16[2,512,256], index: 9, kind: input, shape index: {}]   ;;  %s6878_s10 = inlined_call_operand.vmem [shape: f32[1,256], index: 10, kind: input, shape index: {}]   ;;  %s6879_s11 = inlined_call_operand.hbm [shape: bf16[256,512], index: 11, kind: input, shape index: {}]   ;;  %s6880_s12 = inlined_call_operand.hbm [shape: f32[16,512], index: 12, kind: output, shape index: {0}]   ;;  %s6881_s13 = inlined_call_operand.hbm [shape: f32[2,16,256], index: 13, kind: output, shape index: {1}]   ;;  %s6882_s14 = inlined_call_operand.hbm [shape: f32[2,16,256], index: 14, kind: output, shape index: {2}]  }
   0x1   :  { %6913 = sst [smem:[#allocation35_spill]] %s6869_s1 }
   0x2   :  { %6914 = sst [smem:[#allocation36_spill]] %s6870_s2 }
   0x3   :  { %6915 = sst [smem:[#allocation37_spill]] %s6872_s4 }
   0x4   :  { %6916 = sst [smem:[#allocation38_spill]] %s6873_s5 }
   0x5   :  { %6917 = sst [smem:[#allocation39_spill]] %s6875_s7 }
   0x6   :  { %6918 = sst [smem:[#allocation40_spill]] %s6876_s8 }
   0x7   :  { %6919 = sst [smem:[#allocation41_spill]] %s6878_s10 }
   0x8   :  { %6920 = sst [smem:[#allocation42_spill]] %s6880_s12 }
   0x9   :  { %6921 = sst [smem:[#allocation43_spill]] %s6881_s13 }
   0xa   :  { %6922 = sst [smem:[#allocation44_spill]] %s6882_s14 }
   0xb   :  { %20 = vsyncpa [#allocation4], 0 }
   0xc   :  { %21 = vsyncpa [#allocation7], 0 }
   0xd   :  { %22 = vsyncpa [#allocation10], 0 }
   0xe   :  { %24 = vsyncpa [#allocation10 + $0x1], 0 }
   0xf   :  { %25 = vsyncpa [#allocation13], 0 }
  0x10   :  { %27 = vsyncpa [#allocation13 + $0x1], 0 }
  0x11   :  { %28 = vsyncpa [#allocation16], 0 }
  0x12   :  { %29 = vsyncpa [#allocation5], 0 }
  0x13   :  { %30 = vsyncpa [#allocation19], 0 }
  0x14   :  { %32 = vsyncpa [#allocation19 + $0x1], 0  ;;  %s5883_s29 = smov 0   ;;  %s5885_s30 = smov 0  }
  0x15   :  { %s5887_s15 = smov 0   ;;  %s5889_s16 = smov 0  }
  0x16 LB: > { %6923 = sst [smem:[#allocation28_spill]] %s5770_s30  ;;  %s5902_s17 = sadd.s32 4294967295, %s5778_s16   ;;  %s5778_s16 = sphi %s5889_s16, %s6977_s16   ;;  %s5774_s15 = sphi %s5887_s15, %s6980_s15   ;;  %s5770_s30 = sphi %s5885_s30, %s6979_s30   ;;  %s5766_s29 = sphi %s5883_s29, %s6978_s29  }
  0x17   : > { %6924 = sst [smem:[#allocation29_spill]] %s5774_s15  ;;  %s6883_s18 = sadd.s32 4294967294, %s5778_s16  }
  0x18   : > { %p168_p0 = scmp.ne.s32.totalorder %s5770_s30, %s5766_s29  ;;  %p6888_p1 = scmp.eq.s32.totalorder %s5902_s17, 0 }
  0x19   : > { %p365_p3 = scmp.eq.s32.totalorder %s6883_s18, 1  ;;  %p4349_p5 = scmp.ge.s32.totalorder %s5778_s16, 1 }
  0x1a   : > { %p5912_p4 = por %p6888_p1, %p168_p0  ;;  %p398_p7 = scmp.lt.s32.totalorder %s5778_s16, 3 }
  0x1b   : > { %p5917_p6 = por %p365_p3, %p168_p0  ;;  %s5780_s22 = smov [#allocation6]  }
  0x1c   : > { %s6925_s19 = scalar_select %p5912_p4, 1, 0 }
  0x1d   : > { %s6927_s20 = scalar_select %p5917_p6, 1, 0 }
  0x1e   : > { %6926 = sst [smem:[#allocation30_spill]] %s6925_s19  ;;  %p5923_p9 = pnand %p4349_p5, %p398_p7 }
  0x1f   : > { %6928 = sst [smem:[#allocation31_spill]] %s6927_s20  ;;  %s426_s23 = sshll.u32 %s5780_s22, 4  ;;  %s5927_s23 = int_to_ptr.vmem [resolvable:$true] %s426_s23 }
  0x20   : > { %s6929_s21 = scalar_select %p5923_p9, 1, 0 }
  0x21   : > { %p4859_p10 = pneg %p5923_p9  ;;  %s5939_s25 = sadd.s32 1, %s5778_s16  }
  0x22   : > { %6931 = sst [smem:[#allocation32_spill]] %s5939_s25  ;;  %s155_s26 = sadd.s32 1, %s5774_s15 }
  0x23   : > { %p5934_p12 = pnand %p4859_p10, %p6888_p1  ;;  %s152_s27 = ssub.s32 %s5778_s16, %s5939_s25 }
  0x24   : > { %s6932_s2 = sld [smem:[#allocation36_spill]] }
  0x25   : > { %s6930_s24 = scalar_select %p5934_p12, 1, 0 }
  0x26   : > { %p5952_p0 = pneg %p5934_p12 }
  0x28   : > { %s6933_s12 = scalar_select %p5952_p0, 1, 0 }
  0x2a   : > { %s5406_s22 = scalar_lea.hbm %s6932_s2, 256 }
  0x2b   : > { %p5407_p13 = scmp.ne.s32.totalorder %s6932_s2, %s5406_s22  ;;  %p5413_p7 = scmp.lt.u32.totalorder %s5406_s22, %s6932_s2 }
  0x2d   : > { %p5409_p3 = pnand %p5952_p0, %p5407_p13 }
  0x2f   : > { %p5410_p5 = pneg %p5409_p3 }
  0x31   : > { %p5415_p10 = pnand %p5413_p7, %p5410_p5 }
  0x33   : > { %5418 = shalt.err (!%p5415_p10)
}
  0x34   : > { %s5419_s18 = scalar_lea.vmem %s5927_s23, 256  ;;  %p5427_p2 = scmp.lt.s32.totalorder %s5927_s23, %s5927_s23 }
  0x35   : > { %p5420_p11 = scmp.ne.s32.totalorder %s5927_s23, %s5419_s18  ;;  %p5428_p6 = scmp.lt.s32.totalorder %s5419_s18, %s5419_s18 }
  0x37   : > { %p5422_p8 = pnand %p5420_p11, %p5952_p0  ;;  %p5429_p13 = por %p5428_p6, %p5427_p2 }
  0x39   : > { %p5423_p1 = pneg %p5422_p8 }
  0x3b   : > { %p5430_p3 = pnand %p5429_p13, %p5423_p1 }
  0x3d   : > { %5433 = shalt.err (!%p5430_p3)
}
  0x3e   : > { %s6891_s20 = smov 128   ;;  %s6893_s13 = smov 8  }
  0x3f   : > { %4865 = dma.hbm_to_vmem [thread:$0]  (!%p5934_p12), %s6932_s2, 256, %s5927_s23, [#allocation7], %s6891_s20, %s6891_s20, %s6893_s13  }
  0x40   : > { %p153_p1 = scmp.eq.s32.totalorder %s152_s27, 0  ;;  %p162_p2 = scmp.ne.s32.totalorder %s5774_s15, %s5770_s30 }
  0x41   : > { %p163_p6 = scmp.eq.s32.totalorder %s5778_s16, 0  ;;  %p4896_p8 = scmp.lt.s32.totalorder %s5778_s16, 2 }
  0x42   : > { %s5981_s29 = scalar_select %p153_p1, %s5774_s15, %s155_s26  }
  0x43   : > { %p164_p11 = por %p163_p6, %p162_p2  ;;  %p6935_p5 = scmp.eq.s32.totalorder %s5902_s17, 1 }
  0x44   : > { %6934 = sst [smem:[#allocation33_spill]] %s5981_s29  ;;  %s6898_s18 = sand.u32 1, %s5778_s16  }
  0x45   : > { %p5985_p7 = por %p6935_p5, %p162_p2  ;;  %s5991_s25 = sand.u32 1, %s5774_s15  }
  0x46   : > { %s4824_s10 = smul.u32 768, %s5991_s25  ;;  %p5995_p10 = pnand %p4896_p8, %p164_p11 }
  0x47   : > { %s6936_s22 = scalar_select %p5985_p7, 1, 0 }
  0x48   : > { %s4825_s14 = smul.u32 12288, %s5778_s16  ;;  %s6939_s5 = sld [smem:[#allocation38_spill]] }
  0x49   : > { %6937 = sst [smem:[#allocation34_spill]] %s6936_s22  ;;  %s480_s20 = scalar_lea.vmem [#allocation9], %s4824_s10 }
  0x4a   : > { %s6938_s23 = scalar_select %p5995_p10, 1, 0 }
  0x4b   : > { %s487_s13 = sshll.u32 %s480_s20, 4  ;;  %s6008_s2 = scalar_lea.sflag [#allocation10], %s6898_s18  ;;  %s6004_s13 = int_to_ptr.vmem [resolvable:$true] %s487_s13 }
  0x4c   : > { %p6014_p3 = pneg %p5995_p10 }
  0x4e   : > { %s6002_s26 = scalar_lea.hbm %s6939_s5, %s4825_s14  ;;  %s5439_s10 = scalar_lea.hbm %s6939_s5, 24576 }
  0x4f   : > { %s5434_s29 = scalar_lea.hbm %s6002_s26, 12288  ;;  %p5440_p6 = scmp.lt.u32.totalorder %s6002_s26, %s6939_s5 }
  0x50   : > { %p5435_p13 = scmp.ne.s32.totalorder %s6002_s26, %s5434_s29  ;;  %p5441_p8 = scmp.lt.u32.totalorder %s5439_s10, %s5434_s29 }
  0x51   : > { %s6940_s15 = scalar_select %p6014_p3, 1, 0 }
  0x52   : > { %p5437_p1 = pnand %p6014_p3, %p5435_p13  ;;  %p5442_p11 = por %p5441_p8, %p5440_p6 }
  0x53   : > { %p5443_p5 = scmp.lt.u32.totalorder %s5434_s29, %s6002_s26 }
  0x54   : > { %p5438_p2 = pneg %p5437_p1 }
  0x55   : > { %p5444_p7 = por %p5443_p5, %p5442_p11 }
  0x57   : > { %p5445_p4 = pnand %p5444_p7, %p5438_p2 }
  0x59   : > { %5448 = shalt.err (!%p5445_p4)
}
  0x5a   : > { %s5449_s18 = scalar_lea.vmem %s6004_s13, 12288  ;;  %s5783_s14 = smov [#allocation9]  }
  0x5b   : > { %p5450_p13 = scmp.ne.s32.totalorder %s6004_s13, %s5449_s18  ;;  %s5454_s27 = sshll.u32 %s5783_s14, 4  ;;  %s5455_s27 = int_to_ptr.vmem [resolvable:$false] %s5454_s27 }
  0x5c   : > { %s5456_s20 = scalar_lea.vmem %s5455_s27, 24576  ;;  %p5457_p12 = scmp.lt.s32.totalorder %s6004_s13, %s5455_s27 }
  0x5d   : > { %p5452_p1 = pnand %p5450_p13, %p6014_p3  ;;  %p5458_p0 = scmp.lt.s32.totalorder %s5456_s20, %s5449_s18 }
  0x5f   : > { %p5453_p9 = pneg %p5452_p1  ;;  %p5459_p6 = por %p5458_p0, %p5457_p12 }
  0x61   : > { %p5460_p8 = pnand %p5459_p6, %p5453_p9 }
  0x63   : > { %5463 = shalt.err (!%p5460_p8)
}
  0x64   : > { %s5784_s29 = smov 384   ;;  %s5785_s10 = smov 24  }
  0x65   : > { %4875 = dma.hbm_to_vmem [thread:$0]  (!%p5995_p10), %s6002_s26, 12288, %s6004_s13, %s6008_s2, %s5784_s29, %s5784_s29, %s5785_s10  }
  0x66   : > { %s4359_s28 = sshll.u32 %s5991_s25, 10  ;;  %s4784_s14 = sshll.u32 %s5778_s16, 14 }
  0x67   : > { %s6941_s8 = sld [smem:[#allocation40_spill]]  ;;  %s529_s20 = scalar_lea.vmem [#allocation12], %s4359_s28 }
  0x68   : > { %s536_s22 = sshll.u32 %s529_s20, 4  ;;  %s6942_s1 = sand.u32 1, %s5778_s16   ;;  %s6045_s22 = int_to_ptr.vmem [resolvable:$true] %s536_s22 }
  0x69   : > { %s6049_s7 = scalar_lea.sflag [#allocation13], %s6942_s1 }
  0x6d   : > { %s6043_s18 = scalar_lea.hbm %s6941_s8, %s4784_s14  ;;  %s5469_s26 = scalar_lea.hbm %s6941_s8, 32768 }
  0x6e   : > { %s5464_s4 = scalar_lea.hbm %s6043_s18, 16384  ;;  %p5470_p0 = scmp.lt.u32.totalorder %s6043_s18, %s6941_s8 }
  0x6f   : > { %p5465_p4 = scmp.ne.s32.totalorder %s6043_s18, %s5464_s4  ;;  %p5471_p7 = scmp.lt.u32.totalorder %s5469_s26, %s5464_s4 }
  0x70   : > { %p5473_p11 = scmp.lt.u32.totalorder %s5464_s4, %s6043_s18 }
  0x71   : > { %p5467_p9 = pnand %p5465_p4, %p6014_p3  ;;  %p5472_p2 = por %p5471_p7, %p5470_p0 }
  0x73   : > { %p5468_p12 = pneg %p5467_p9  ;;  %p5474_p5 = por %p5473_p11, %p5472_p2 }
  0x75   : > { %p5475_p13 = pnand %p5474_p5, %p5468_p12 }
  0x77   : > { %5478 = shalt.err (!%p5475_p13)
}
  0x78   : > { %s5479_s1 = scalar_lea.vmem %s6045_s22, 16384  ;;  %s5786_s28 = smov [#allocation12]  }
  0x79   : > { %p5480_p1 = scmp.ne.s32.totalorder %s6045_s22, %s5479_s1  ;;  %s5484_s14 = sshll.u32 %s5786_s28, 4  ;;  %s5485_s14 = int_to_ptr.vmem [resolvable:$false] %s5484_s14 }
  0x7a   : > { %s5486_s27 = scalar_lea.vmem %s5485_s14, 32768  ;;  %p5487_p4 = scmp.lt.s32.totalorder %s6045_s22, %s5485_s14 }
  0x7b   : > { %p5482_p6 = pnand %p5480_p1, %p6014_p3  ;;  %p5488_p9 = scmp.lt.s32.totalorder %s5486_s27, %s5479_s1 }
  0x7d   : > { %p5483_p8 = pneg %p5482_p6  ;;  %p5489_p0 = por %p5488_p9, %p5487_p4 }
  0x7f   : > { %p5490_p7 = pnand %p5489_p0, %p5483_p8 }
  0x81   : > { %5493 = shalt.err (!%p5490_p7)
}
  0x82   : > { %s5787_s4 = smov 512   ;;  %s5788_s20 = smov 32  }
  0x83   : > { %4881 = dma.hbm_to_vmem [thread:$0]  (!%p5995_p10), %s6043_s18, 16384, %s6045_s22, %s6049_s7, %s5787_s4, %s5787_s4, %s5788_s20  }
  0x84   : > { %s5789_s13 = smov [#allocation3]   ;;  %s5494_s10 = scalar_lea.hbm %s6868_s0, 512 }
  0x85   : > { %s410_s5 = sshll.u32 %s5789_s13, 4  ;;  %p5495_p12 = scmp.ne.s32.totalorder %s6868_s0, %s5494_s10  ;;  %s411_s5 = int_to_ptr.vmem [resolvable:$true] %s410_s5 }
  0x86   : > { %p6943_p2 = scmp.ne.s32.totalorder %s6933_s12, 0  ;;  %p5501_p13 = scmp.lt.u32.totalorder %s5494_s10, %s6868_s0 }
  0x88   : > { %p5497_p11 = pnand %p5495_p12, %p6943_p2 }
  0x8a   : > { %p5498_p5 = pneg %p5497_p11 }
  0x8c   : > { %p5503_p1 = pnand %p5501_p13, %p5498_p5 }
  0x8e   : > { %5506 = shalt.err (!%p5503_p1)
}
  0x8f   : > { %s5507_s22 = scalar_lea.vmem %s411_s5, 512  ;;  %p5515_p9 = scmp.lt.s32.totalorder %s411_s5, %s411_s5 }
  0x90   : > { %p5508_p6 = scmp.ne.s32.totalorder %s411_s5, %s5507_s22  ;;  %p5516_p0 = scmp.lt.s32.totalorder %s5507_s22, %s5507_s22 }
  0x92   : > { %p5510_p8 = pnand %p5508_p6, %p6943_p2  ;;  %p5517_p7 = por %p5516_p0, %p5515_p9 }
  0x94   : > { %p5511_p4 = pneg %p5510_p8 }
  0x96   : > { %p5518_p10 = pnand %p5517_p7, %p5511_p4 }
  0x98   : > { %5521 = shalt.err (!%p5518_p10)
}
  0x99   : > { %s5790_s18 = smov 256   ;;  %s5791_s4 = smov 16  }
  0x9a   : > { %p6944_p12 = scmp.ne.s32.totalorder %s6930_s24, 0  ;;  %s5792_s26 = smov [#allocation8]  }
  0x9b   : > { %s439_s29 = sshll.u32 %s5792_s26, 4  ;;  %s5793_s10 = smov [#allocation15]   ;;  %s440_s29 = int_to_ptr.vmem [resolvable:$true] %s439_s29 }
  0x9c   : > { %4862 = dma.hbm_to_vmem [thread:$0]  (!%p6944_p12), %s6868_s0, 512, %s411_s5, [#allocation4], %s5790_s18, %s5790_s18, %s5791_s4  }
  0x9d   : > { %s455_s1 = sshll.u32 %s5793_s10, 4  ;;  %s5522_s27 = scalar_lea.hbm %s6871_s3, 256  ;;  %s456_s1 = int_to_ptr.vmem [resolvable:$true] %s455_s1 }
  0x9e   : > { %p5523_p10 = scmp.ne.s32.totalorder %s6871_s3, %s5522_s27  ;;  %p5529_p13 = scmp.lt.u32.totalorder %s5522_s27, %s6871_s3 }
  0xa0   : > { %p5525_p11 = pnand %p5523_p10, %p6943_p2 }
  0xa2   : > { %p5526_p5 = pneg %p5525_p11 }
  0xa4   : > { %p5531_p1 = pnand %p5529_p13, %p5526_p5 }
  0xa6   : > { %5534 = shalt.err (!%p5531_p1)
}
  0xa7   : > { %s5535_s5 = scalar_lea.vmem %s440_s29, 256  ;;  %p5543_p9 = scmp.lt.s32.totalorder %s440_s29, %s440_s29 }
  0xa8   : > { %p5536_p6 = scmp.ne.s32.totalorder %s440_s29, %s5535_s5  ;;  %p5544_p0 = scmp.lt.s32.totalorder %s5535_s5, %s5535_s5 }
  0xaa   : > { %p5538_p8 = pnand %p5536_p6, %p6943_p2  ;;  %p5545_p7 = por %p5544_p0, %p5543_p9 }
  0xac   : > { %p5539_p4 = pneg %p5538_p8 }
  0xae   : > { %p5546_p3 = pnand %p5545_p7, %p5539_p4 }
  0xb0   : > { %5549 = shalt.err (!%p5546_p3)
}
  0xb1   : > { %s6945_s8 = smov 8   ;;  %s6946_s20 = smov 128  }
  0xb2   : > { %4868 = dma.hbm_to_vmem [thread:$0]  (!%p6944_p12), %s6871_s3, 256, %s440_s29, [#allocation7], %s6946_s20, %s6946_s20, %s6945_s8  }
  0xb3   : > { %s4356_s13 = sshll.u32 %s5991_s25, 8  ;;  %s5550_s28 = scalar_lea.hbm %s6879_s11, 8192 }
  0xb4   : > { %p5551_p3 = scmp.ne.s32.totalorder %s6879_s11, %s5550_s28  ;;  %p5557_p5 = scmp.lt.u32.totalorder %s5550_s28, %s6879_s11 }
  0xb6   : > { %p5553_p10 = pnand %p5551_p3, %p6943_p2 }
  0xb8   : > { %p5554_p11 = pneg %p5553_p10 }
  0xba   : > { %p5559_p13 = pnand %p5557_p5, %p5554_p11 }
  0xbc   : > { %5562 = shalt.err (!%p5559_p13)
}
  0xbd   : > { %s5563_s29 = scalar_lea.vmem %s456_s1, 8192  ;;  %p5571_p4 = scmp.lt.s32.totalorder %s456_s1, %s456_s1 }
  0xbe   : > { %p5564_p1 = scmp.ne.s32.totalorder %s456_s1, %s5563_s29  ;;  %p5572_p9 = scmp.lt.s32.totalorder %s5563_s29, %s5563_s29 }
  0xc0   : > { %p5566_p6 = pnand %p5564_p1, %p6943_p2  ;;  %p5573_p0 = por %p5572_p9, %p5571_p4 }
  0xc2   : > { %p5567_p8 = pneg %p5566_p6 }
  0xc4   : > { %p5574_p7 = pnand %p5573_p0, %p5567_p8 }
  0xc6   : > { %5577 = shalt.err (!%p5574_p7)
}
  0xc7   : > { %4871 = dma.hbm_to_vmem [thread:$0]  (!%p6944_p12), %s6879_s11, 8192, %s456_s1, [#allocation16], %s5790_s18, %s5790_s18, %s5791_s4  }
  0xc8   : > { %s4783_s12 = sshll.u32 %s5778_s16, 12  ;;  %s501_s24 = scalar_lea.vmem [#allocation11], %s4356_s13 }
  0xc9   : > { %s6141_s28 = scalar_lea.hbm %s6874_s6, %s4783_s12  ;;  %s508_s14 = sshll.u32 %s501_s24, 4  ;;  %s6143_s14 = int_to_ptr.vmem [resolvable:$true] %s508_s14 }
  0xca   : > { %s4362_s27 = sshll.u32 %s5991_s25, 9  ;;  %s5578_s22 = scalar_lea.hbm %s6141_s28, 4096 }
  0xcb   : > { %p5579_p2 = scmp.ne.s32.totalorder %s6141_s28, %s5578_s22  ;;  %p6947_p3 = scmp.ne.s32.totalorder %s6940_s15, 0 }
  0xcc   : > { %s5583_s1 = scalar_lea.hbm %s6874_s6, 8192  ;;  %p5584_p11 = scmp.lt.u32.totalorder %s6141_s28, %s6874_s6 }
  0xcd   : > { %p5581_p10 = pnand %p5579_p2, %p6947_p3  ;;  %p5585_p5 = scmp.lt.u32.totalorder %s5583_s1, %s5578_s22 }
  0xce   : > { %p5587_p1 = scmp.lt.u32.totalorder %s5578_s22, %s6141_s28 }
  0xcf   : > { %p5582_p12 = pneg %p5581_p10  ;;  %p5586_p13 = por %p5585_p5, %p5584_p11 }
  0xd1   : > { %p5588_p6 = por %p5587_p1, %p5586_p13 }
  0xd3   : > { %p5589_p8 = pnand %p5588_p6, %p5582_p12 }
  0xd5   : > { %5592 = shalt.err (!%p5589_p8)
}
  0xd6   : > { %s5593_s13 = scalar_lea.vmem %s6143_s14, 4096  ;;  %s5794_s30 = smov [#allocation11]  }
  0xd7   : > { %p5594_p4 = scmp.ne.s32.totalorder %s6143_s14, %s5593_s13  ;;  %s5598_s19 = sshll.u32 %s5794_s30, 4  ;;  %s5599_s19 = int_to_ptr.vmem [resolvable:$false] %s5598_s19 }
  0xd8   : > { %s5600_s12 = scalar_lea.vmem %s5599_s19, 8192  ;;  %p5601_p7 = scmp.lt.s32.totalorder %s6143_s14, %s5599_s19 }
  0xd9   : > { %p5596_p9 = pnand %p5594_p4, %p6947_p3  ;;  %p5602_p2 = scmp.lt.s32.totalorder %s5600_s12, %s5593_s13 }
  0xdb   : > { %p5597_p0 = pneg %p5596_p9  ;;  %p5603_p10 = por %p5602_p2, %p5601_p7 }
  0xdd   : > { %p5604_p11 = pnand %p5603_p10, %p5597_p0 }
  0xdf   : > { %5607 = shalt.err (!%p5604_p11)
}
  0xe0   : > { %p6948_p12 = scmp.ne.s32.totalorder %s6938_s23, 0  ;;  %s4785_s26 = sshll.u32 %s5778_s16, 13 }
  0xe1   : > { %s6175_s22 = scalar_lea.hbm %s6877_s9, %s4785_s26  ;;  %s550_s18 = scalar_lea.vmem [#allocation14], %s4362_s27 }
  0xe2   : > { %4878 = dma.hbm_to_vmem [thread:$0]  (!%p6948_p12), %s6141_s28, 4096, %s6143_s14, %s6008_s2, %s6946_s20, %s6946_s20, %s6945_s8  }
  0xe3   : > { %s557_s4 = sshll.u32 %s550_s18, 4  ;;  %s5608_s1 = scalar_lea.hbm %s6175_s22, 8192  ;;  %s6179_s4 = int_to_ptr.vmem [resolvable:$true] %s557_s4 }
  0xe4   : > { %p5609_p5 = scmp.ne.s32.totalorder %s6175_s22, %s5608_s1  ;;  %s5613_s14 = scalar_lea.hbm %s6877_s9, 16384 }
  0xe5   : > { %p5614_p6 = scmp.lt.u32.totalorder %s6175_s22, %s6877_s9  ;;  %p5615_p8 = scmp.lt.u32.totalorder %s5613_s14, %s5608_s1 }
  0xe6   : > { %p5611_p13 = pnand %p5609_p5, %p6947_p3  ;;  %p5617_p9 = scmp.lt.u32.totalorder %s5608_s1, %s6175_s22 }
  0xe7   : > { %p5616_p4 = por %p5615_p8, %p5614_p6 }
  0xe8   : > { %p5612_p1 = pneg %p5611_p13 }
  0xe9   : > { %p5618_p0 = por %p5617_p9, %p5616_p4 }
  0xeb   : > { %p5619_p7 = pnand %p5618_p0, %p5612_p1 }
  0xed   : > { %5622 = shalt.err (!%p5619_p7)
}
  0xee   : > { %s5623_s25 = scalar_lea.vmem %s6179_s4, 8192  ;;  %s5795_s27 = smov [#allocation14]  }
  0xef   : > { %p5624_p2 = scmp.ne.s32.totalorder %s6179_s4, %s5623_s25  ;;  %s5628_s13 = sshll.u32 %s5795_s27, 4  ;;  %s5629_s13 = int_to_ptr.vmem [resolvable:$false] %s5628_s13 }
  0xf0   : > { %s5630_s30 = scalar_lea.vmem %s5629_s13, 16384  ;;  %p5631_p5 = scmp.lt.s32.totalorder %s6179_s4, %s5629_s13 }
  0xf1   : > { %p5626_p10 = pnand %p5624_p2, %p6947_p3  ;;  %p5632_p13 = scmp.lt.s32.totalorder %s5630_s30, %s5623_s25 }
  0xf3   : > { %p5627_p11 = pneg %p5626_p10  ;;  %p5633_p6 = por %p5632_p13, %p5631_p5 }
  0xf5   : > { %p5634_p8 = pnand %p5633_p6, %p5627_p11 }
  0xf7   : > { %5637 = shalt.err (!%p5634_p8)
}
  0xf8   : > { %4884 = dma.hbm_to_vmem [thread:$0]  (!%p6948_p12), %s6175_s22, 8192, %s6179_s4, %s6049_s7, %s6946_s20, %s6946_s20, %s6945_s8  }
  0xf9   : > { %p6949_p3 = scmp.ne.s32.totalorder %s6929_s21, 0 }
  0xfa   : > { %p6950_p1 = scmp.eq.s32.totalorder (!%p6949_p3), %s5902_s17, 0 }
  0xfb   : > { %569 = sbr.rel (%p6949_p3) target bundleno = 3055 (0xbef), region = 68 }
 0x102   : > { %5737 = dma.done.wait (%p6950_p1), [#allocation4], 512   ;;  %p6951_p4 = pmov %p6950_p1 }
 0x103   : > { %p6952_p9 = pmov %p6950_p1 }
 0x104   : > { %5739 = vsyncadd (%p6951_p4), [#allocation4], 4294966784 }
 0x105   : > { %5741 = dma.done.wait (%p6952_p9), [#allocation7], 512   ;;  %p6953_p0 = pmov %p6950_p1 }
 0x106   : > { %s6954_s15 = sld [smem:[#allocation28_spill]]  ;;  %s6955_s23 = sld [smem:[#allocation30_spill]] }
 0x107   : > { %5743 = vsyncadd (%p6953_p0), [#allocation7], 4294966784  ;;  %s6217_s19 = sand.u32 1, %s5902_s17  }
 0x108   : > { %s584_s8 = scalar_lea.sflag [#allocation10], %s6217_s19 }
 0x10c   : > { %s585_s7 = sand.u32 1, %s6954_s15   ;;  %p6956_p12 = scmp.ne.s32.totalorder %s6955_s23, 0 }
 0x10d   : > { %s4826_s21 = smul.u32 768, %s585_s7 }
 0x10f   : > { %s6221_s20 = scalar_lea.vmem [#allocation9], %s4826_s21 }
 0x110   : > { %5745 = dma.done.wait (%p6956_p12), %s584_s8, 16384  }
 0x111   : > { %5747 = vsyncadd (%p6956_p12), %s584_s8, 4294950912  ;;  %s4369_s12 = sshll.u32 %s585_s7, 8  ;;  %s4370_s26 = sshll.u32 %s585_s7, 10 }
 0x112   : > { %s6227_s10 = scalar_lea.vmem [#allocation11], %s4369_s12  ;;  %s602_s24 = scalar_lea.sflag [#allocation13], %s6217_s19 }
 0x113   : > { %s6230_s22 = scalar_lea.vmem [#allocation12], %s4370_s26 }
 0x114   : > { %5749 = dma.done.wait (%p6956_p12), %s602_s24, 24576  }
 0x115   : > { %5751 = vsyncadd (%p6956_p12), %s602_s24, 4294942720  ;;  %s4371_s18 = sshll.u32 %s585_s7, 9  ;;  %p6957_p7 = pmov %p6953_p0 }
 0x116   : > { %s6236_s4 = scalar_lea.vmem [#allocation14], %s4371_s18 }
 0x117   : > { %5753 = dma.done.wait (%p6957_p7), [#allocation16], 8192   ;;  %p6958_p2 = pmov %p6953_p0 }
 0x118   : > { %s4373_s1 = sshll.u32 %s585_s7, 5  ;;  %p691_p10 = scmp.lt.s32.totalorder %s5902_s17, 1 }
 0x119   : > { %5755 = vsyncadd (%p6958_p2), [#allocation16], 4294959104  ;;  %s6959_s29 = sld [smem:[#allocation37_spill]]  ;;  %s6960_s30 = sld [smem:[#allocation39_spill]] }
 0x11a   : > { %s692_s2 = scalar_select %p691_p10, %s5902_s17, 1 }
 0x11b   : > { %s6254_s23 = scalar_lea.vmem [#allocation18], %s4373_s1  ;;  %s6256_s21 = scalar_lea.vmem [#allocation20], %s4373_s1 }
 0x11c   : > { %s4375_s28 = sshll.u32 %s692_s2, 1  ;;  %p6961_p11 = scmp.ne.s32.totalorder %s5902_s17, 0 }
 0x11d   : > { %v704_v0 = vld [vmem:[#allocation3] sm:$0xff] (!%p6961_p11)  ;;  %v705_v1 = vld [vmem:[#allocation3 + $0x8] sm:$0xff] (!%p6961_p11)  ;;  %v706_v2 = vld [vmem:[#allocation3 + $0x10] sm:$0xff] (!%p6961_p11) }
 0x11e   : > { %703 = sbr.rel (%p6961_p11) target bundleno = 293 (0x125), region = 104  ;;  %708 = vst [vmem:[#allocation2] sm:$0xff] (!%p6961_p11), %v704_v0  ;;  %709 = vst [vmem:[#allocation2 + $0x8] sm:$0xff] (!%p6961_p11), %v705_v1  ;;  %v707_v3 = vld [vmem:[#allocation3 + $0x18] sm:$0xff] (!%p6961_p11) }
 0x11f   : > { %s6247_s25 = scalar_lea.vmem %s6959_s29, %s4375_s28  ;;  %s6252_s15 = scalar_lea.vmem %s6960_s30, %s4375_s28  ;;  %710 = vst [vmem:[#allocation2 + $0x10] sm:$0xff] (!%p6961_p11), %v706_v2  ;;  %711 = vst [vmem:[#allocation2 + $0x18] sm:$0xff] (!%p6961_p11), %v707_v3 }
 0x125 PF: > { %v6260_v4 = vld [vmem:[#allocation2] sm:$0xff]  ;;  %v6262_v5 = vld [vmem:[#allocation2 + $0x8] sm:$0xff]  ;;  %s5796_s7 = smov 64   ;;  %vm5798_vm0 = vmmov 0   ;;  %s6962_s12 = sld [smem:[#allocation35_spill]]  ;;  %vm1566_vm11 = vcmask 130048  }
 0x126   : > { %v6264_v6 = vld [vmem:[#allocation2 + $0x10] sm:$0xff]  ;;  %v750_v7 = vmul.f32 %v6260_v4, %v6260_v4  ;;  %v751_v8 = vmul.f32 %v6262_v5, %v6262_v5  ;;  %v6270_v9 = vld [vmem:[#allocation2 + $0x18] sm:$0xff]  ;;  %p4708_p5 = scmp.ne.s32.totalorder %s5902_s17, 1 }
 0x127   : > { %v752_v10 = vmul.f32 %v6264_v6, %v6264_v6  ;;  %v753_v11 = vmul.f32 %v6270_v9, %v6270_v9  ;;  %v4958_v12 = vld [vmem:[%s6221_s20 + $0x4] ss:$24 sps:$4 sm:$0xff]   ;;  %v4960_v13 = vld [vmem:[%s6221_s20] ss:$24 sps:$4 sm:$0xff]   ;;  %v4961_v15 = vld [vmem:[%s6221_s20 + $0x14] ss:$24 sps:$4 sm:$0xff]  }
 0x128   : > { %v754_v14 = vadd.f32 %v751_v8, %v750_v7  ;;  %v4963_v16 = vld [vmem:[%s6221_s20 + $0x10] ss:$24 sps:$4 sm:$0xff]   ;;  %1364 = vmatprep.subr.bf16.mxu1 %v4958_v12  ;;  %v4964_v17 = vld [vmem:[%s6221_s20 + $0x34] ss:$24 sps:$4 sm:$0xff]   ;;  %1450 = vmatprep.subr.bf16.mxu0 %v4961_v15  ;;  %v4967_v20 = vld [vmem:[%s6221_s20 + $0x44] ss:$24 sps:$4 sm:$0xff]  }
 0x129   : > { %v757_v18 = vadd.f32 %v753_v11, %v752_v10  ;;  %1365 = vmatpush1.bf16.msra.mxu1 %v4960_v13  ;;  %v4966_v19 = vld [vmem:[%s6221_s20 + $0x30] ss:$24 sps:$4 sm:$0xff]   ;;  %1451 = vmatpush1.bf16.msra.mxu0 %v4963_v16  ;;  %v4969_v21 = vld [vmem:[%s6221_s20 + $0x40] ss:$24 sps:$4 sm:$0xff]   ;;  %v4970_v22 = vld [vmem:[%s6221_s20 + $0x64] ss:$24 sps:$4 sm:$0xff]  }
 0x12a   : > { %755 = vadd.xlane.f32.xlu0 %v754_v14  ;;  %1366 = vmatprep.subr.bf16.mxu1 %v4964_v17  ;;  %v4973_v23 = vld [vmem:[%s6221_s20 + $0x74] ss:$24 sps:$4 sm:$0xff]   ;;  %v4972_v24 = vld [vmem:[%s6221_s20 + $0x60] ss:$24 sps:$4 sm:$0xff]   ;;  %v4975_v26 = vld [vmem:[%s6221_s20 + $0x70] ss:$24 sps:$4 sm:$0xff]  }
 0x12b   : > { %1452 = vmatprep.subr.bf16.mxu0 %v4967_v20  ;;  %v4976_v25 = vld [vmem:[%s6221_s20 + $0x94] ss:$24 sps:$4 sm:$0xff]   ;;  %v4979_v27 = vld [vmem:[%s6221_s20 + $0xa4] ss:$24 sps:$4 sm:$0xff]   ;;  %v4978_v28 = vld [vmem:[%s6221_s20 + $0x90] ss:$24 sps:$4 sm:$0xff]  }
 0x12c   : > { %v4982_v29 = vld [vmem:[%s6221_s20 + $0xc4] ss:$24 sps:$4 sm:$0xff]   ;;  %v4981_v30 = vld [vmem:[%s6221_s20 + $0xa0] ss:$24 sps:$4 sm:$0xff]   ;;  %v4985_v31 = vld [vmem:[%s6221_s20 + $0xd4] ss:$24 sps:$4 sm:$0xff]  }
 0x12d   : > { %1367 = vmatpush1.bf16.msra.mxu1 %v4966_v19  ;;  %1453 = vmatpush1.bf16.msra.mxu0 %v4969_v21  ;;  %v4984_v32 = vld [vmem:[%s6221_s20 + $0xc0] ss:$24 sps:$4 sm:$0xff]   ;;  %v4988_v33 = vld [vmem:[%s6221_s20 + $0xf4] ss:$24 sps:$4 sm:$0xff]   ;;  %v4987_v34 = vld [vmem:[%s6221_s20 + $0xd0] ss:$24 sps:$4 sm:$0xff]  }
 0x12e   : > { %758 = vadd.xlane.f32.xlu0 %v757_v18  ;;  %1368 = vmatprep.subr.bf16.mxu1 %v4970_v22  ;;  %v4991_v35 = vld [vmem:[%s6221_s20 + $0x104] ss:$24 sps:$4 sm:$0xff]   ;;  %v4990_v36 = vld [vmem:[%s6221_s20 + $0xf0] ss:$24 sps:$4 sm:$0xff]   ;;  %v4993_v38 = vld [vmem:[%s6221_s20 + $0x100] ss:$24 sps:$4 sm:$0xff]  }
 0x12f   : > { %1454 = vmatprep.subr.bf16.mxu0 %v4973_v23  ;;  %v4994_v37 = vld [vmem:[%s6221_s20 + $0x124] ss:$24 sps:$4 sm:$0xff]   ;;  %v4997_v39 = vld [vmem:[%s6221_s20 + $0x134] ss:$24 sps:$4 sm:$0xff]   ;;  %v4996_v40 = vld [vmem:[%s6221_s20 + $0x120] ss:$24 sps:$4 sm:$0xff]  }
 0x130   : > { %v5000_v41 = vld [vmem:[%s6221_s20 + $0x154] ss:$24 sps:$4 sm:$0xff]   ;;  %v4999_v42 = vld [vmem:[%s6221_s20 + $0x130] ss:$24 sps:$4 sm:$0xff]   ;;  %v5003_v43 = vld [vmem:[%s6221_s20 + $0x164] ss:$24 sps:$4 sm:$0xff]  }
 0x131   : > { %1369 = vmatpush1.bf16.msra.mxu1 %v4972_v24  ;;  %1455 = vmatpush1.bf16.msra.mxu0 %v4975_v26  ;;  %v5002_v44 = vld [vmem:[%s6221_s20 + $0x150] ss:$24 sps:$4 sm:$0xff]   ;;  %v5006_v45 = vld [vmem:[%s6221_s20 + $0x184] ss:$24 sps:$4 sm:$0xff]   ;;  %v5005_v46 = vld [vmem:[%s6221_s20 + $0x160] ss:$24 sps:$4 sm:$0xff]   ;;  %v716_v24 = vlaneseq }
 0x132   : > { %1370 = vmatprep.subr.bf16.mxu1 %v4976_v25  ;;  %1456 = vmatprep.subr.bf16.mxu0 %v4979_v27  ;;  %v5009_v47 = vld [vmem:[%s6221_s20 + $0x194] ss:$24 sps:$4 sm:$0xff]   ;;  %v5008_v48 = vld [vmem:[%s6221_s20 + $0x180] ss:$24 sps:$4 sm:$0xff]   ;;  %v5011_v50 = vld [vmem:[%s6221_s20 + $0x190] ss:$24 sps:$4 sm:$0xff]  }
 0x133   : > { %v5012_v49 = vld [vmem:[%s6221_s20 + $0x1b4] ss:$24 sps:$4 sm:$0xff]   ;;  %v5015_v51 = vld [vmem:[%s6221_s20 + $0x1c4] ss:$24 sps:$4 sm:$0xff]   ;;  %v5014_v52 = vld [vmem:[%s6221_s20 + $0x1b0] ss:$24 sps:$4 sm:$0xff]  }
 0x134   : > { %v5018_v53 = vld [vmem:[%s6221_s20 + $0x1e4] ss:$24 sps:$4 sm:$0xff]   ;;  %v5017_v54 = vld [vmem:[%s6221_s20 + $0x1c0] ss:$24 sps:$4 sm:$0xff]   ;;  %v5021_v55 = vld [vmem:[%s6221_s20 + $0x1f4] ss:$24 sps:$4 sm:$0xff]  }
 0x135   : > { %1371 = vmatpush1.bf16.msra.mxu1 %v4978_v28  ;;  %1457 = vmatpush1.bf16.msra.mxu0 %v4981_v30  ;;  %v5020_v56 = vld [vmem:[%s6221_s20 + $0x1e0] ss:$24 sps:$4 sm:$0xff]   ;;  %v5024_v57 = vld [vmem:[%s6221_s20 + $0x214] ss:$24 sps:$4 sm:$0xff]   ;;  %v5023_v58 = vld [vmem:[%s6221_s20 + $0x1f0] ss:$24 sps:$4 sm:$0xff]  }
 0x136   : > { %1372 = vmatprep.subr.bf16.mxu1 %v4982_v29  ;;  %1458 = vmatprep.subr.bf16.mxu0 %v4985_v31  ;;  %v5027_v59 = vld [vmem:[%s6221_s20 + $0x224] ss:$24 sps:$4 sm:$0xff]   ;;  %v5026_v60 = vld [vmem:[%s6221_s20 + $0x210] ss:$24 sps:$4 sm:$0xff]   ;;  %v5029_v61 = vld [vmem:[%s6221_s20 + $0x220] ss:$24 sps:$4 sm:$0xff]  }
 0x137   : > { %v5030_v62 = vld [vmem:[%s6221_s20 + $0x244] ss:$24 sps:$4 sm:$0xff]   ;;  %v5033_v63 = vld [vmem:[%s6221_s20 + $0x254] ss:$24 sps:$4 sm:$0xff]   ;;  %v5032_v0 = vld [vmem:[%s6221_s20 + $0x240] ss:$24 sps:$4 sm:$0xff]  }
 0x138   : > { %v5035_v1 = vld [vmem:[%s6221_s20 + $0x250] ss:$24 sps:$4 sm:$0xff]   ;;  %v5036_v2 = vld [vmem:[%s6221_s20 + $0x274] ss:$24 sps:$4 sm:$0xff]   ;;  %v5039_v3 = vld [vmem:[%s6221_s20 + $0x284] ss:$24 sps:$4 sm:$0xff]  }
 0x139   : > { %1373 = vmatpush1.bf16.msra.mxu1 %v4984_v32  ;;  %1459 = vmatpush1.bf16.msra.mxu0 %v4987_v34  ;;  %v5038_v7 = vld [vmem:[%s6221_s20 + $0x270] ss:$24 sps:$4 sm:$0xff]   ;;  %v5041_v8 = vld [vmem:[%s6221_s20 + $0x280] ss:$24 sps:$4 sm:$0xff]   ;;  %v5042_v10 = vld [vmem:[%s6221_s20 + $0x2a4] ss:$24 sps:$4 sm:$0xff]  }
 0x13a   : > { %1374 = vmatprep.subr.bf16.mxu1 %v4988_v33  ;;  %1460 = vmatprep.subr.bf16.mxu0 %v4991_v35  ;;  %v5045_v11 = vld [vmem:[%s6221_s20 + $0x2b4] ss:$24 sps:$4 sm:$0xff]   ;;  %v5044_v12 = vld [vmem:[%s6221_s20 + $0x2a0] ss:$24 sps:$4 sm:$0xff]   ;;  %v5047_v13 = vld [vmem:[%s6221_s20 + $0x2b0] ss:$24 sps:$4 sm:$0xff]  }
 0x13b   : > { %v5048_v14 = vld [vmem:[%s6221_s20 + $0x2d4] ss:$24 sps:$4 sm:$0xff]   ;;  %v5051_v15 = vld [vmem:[%s6221_s20 + $0x2e4] ss:$24 sps:$4 sm:$0xff]   ;;  %v5050_v16 = vld [vmem:[%s6221_s20 + $0x2d0] ss:$24 sps:$4 sm:$0xff]  }
 0x13c   : > { %v5053_v17 = vld [vmem:[%s6221_s20 + $0x2e0] ss:$24 sps:$4 sm:$0xff]   ;;  %v5056_v18 = vld [vmem:[%s6221_s20 + $0xc] ss:$24 sps:$4 sm:$0xff]   ;;  %v6342_v26 = vshrl.u32 %v716_v24, 7  ;;  %s6963_s24 = sld [smem:[#allocation41_spill]] (!%p4708_p5) }
 0x13d   : > { %1375 = vmatpush1.bf16.msra.mxu1 %v4990_v36  ;;  %1461 = vmatpush1.bf16.msra.mxu0 %v4993_v38  ;;  %v749_v30 = vld [vmem:[%s6247_s25] sm:$0x3] }
 0x13e   : > { %1376 = vmatprep.subr.bf16.mxu1 %v4994_v37  ;;  %1462 = vmatprep.subr.bf16.mxu0 %v4997_v39  ;;  %v6345_v27 = vsub.s32 1, %v6342_v26  ;;  %v6348_v28 = vsub.s32 0, %v6342_v26 }
 0x140   : > { %v779_v32 = vrot.slane %v749_v30, %v6345_v27  ;;  %v775_v34 = vrot.slane %v749_v30, %v6348_v28  ;;  %v747_v30 = vld [vmem:[#allocation8] sm:$0xff] }
 0x141   : > { %1377 = vmatpush1.bf16.msra.mxu1 %v4996_v40  ;;  %1463 = vmatpush1.bf16.msra.mxu0 %v4999_v42 }
 0x142   : > { %1378 = vmatprep.subr.bf16.mxu1 %v5000_v41  ;;  %1464 = vmatprep.subr.bf16.mxu0 %v5003_v43 }
 0x145   : > { %1379 = vmatpush1.bf16.msra.mxu1 %v5002_v44  ;;  %1465 = vmatpush1.bf16.msra.mxu0 %v5005_v46  ;;  %v5060_v44 = vld [vmem:[%s6221_s20 + $0x68] ss:$24 sps:$4 sm:$0xff]   ;;  %v5063_v46 = vld [vmem:[%s6221_s20 + $0x98] ss:$24 sps:$4 sm:$0xff]  }
 0x146   : > { %1380 = vmatprep.subr.bf16.mxu1 %v5006_v45  ;;  %1466 = vmatprep.subr.bf16.mxu0 %v5009_v47  ;;  %v5065_v45 = vld [vmem:[%s6221_s20 + $0x9c] ss:$24 sps:$4 sm:$0xff]   ;;  %v5068_v47 = vld [vmem:[%s6221_s20 + $0xcc] ss:$24 sps:$4 sm:$0xff]  }
 0x149   : > { %1381 = vmatpush1.bf16.msra.mxu1 %v5008_v48  ;;  %1467 = vmatpush1.bf16.msra.mxu0 %v5011_v50  ;;  %v5066_v48 = vld [vmem:[%s6221_s20 + $0xc8] ss:$24 sps:$4 sm:$0xff]   ;;  %v5069_v50 = vld [vmem:[%s6221_s20 + $0xf8] ss:$24 sps:$4 sm:$0xff]  }
 0x14a   : > { %1382 = vmatprep.subr.bf16.mxu1 %v5012_v49  ;;  %1468 = vmatprep.subr.bf16.mxu0 %v5015_v51  ;;  %v5071_v49 = vld [vmem:[%s6221_s20 + $0xfc] ss:$24 sps:$4 sm:$0xff]   ;;  %v5074_v51 = vld [vmem:[%s6221_s20 + $0x12c] ss:$24 sps:$4 sm:$0xff]  }
 0x14d   : > { %1383 = vmatpush1.bf16.msra.mxu1 %v5014_v52  ;;  %1469 = vmatpush1.bf16.msra.mxu0 %v5017_v54  ;;  %v5072_v52 = vld [vmem:[%s6221_s20 + $0x128] ss:$24 sps:$4 sm:$0xff]   ;;  %v5075_v54 = vld [vmem:[%s6221_s20 + $0x158] ss:$24 sps:$4 sm:$0xff]  }
 0x14e   : > { %1384 = vmatprep.subr.bf16.mxu1 %v5018_v53  ;;  %1470 = vmatprep.subr.bf16.mxu0 %v5021_v55  ;;  %v5077_v53 = vld [vmem:[%s6221_s20 + $0x15c] ss:$24 sps:$4 sm:$0xff]   ;;  %v5080_v55 = vld [vmem:[%s6221_s20 + $0x18c] ss:$24 sps:$4 sm:$0xff]  }
 0x151   : > { %1385 = vmatpush1.bf16.msra.mxu1 %v5020_v56  ;;  %1471 = vmatpush1.bf16.msra.mxu0 %v5023_v58  ;;  %v5078_v56 = vld [vmem:[%s6221_s20 + $0x188] ss:$24 sps:$4 sm:$0xff]   ;;  %v5081_v58 = vld [vmem:[%s6221_s20 + $0x1b8] ss:$24 sps:$4 sm:$0xff]  }
 0x152   : > { %1386 = vmatprep.subr.bf16.mxu1 %v5024_v57  ;;  %1472 = vmatprep.subr.bf16.mxu0 %v5027_v59  ;;  %v5083_v57 = vld [vmem:[%s6221_s20 + $0x1bc] ss:$24 sps:$4 sm:$0xff]   ;;  %v5086_v59 = vld [vmem:[%s6221_s20 + $0x1ec] ss:$24 sps:$4 sm:$0xff]  }
 0x155   : > { %1387 = vmatpush1.bf16.msra.mxu1 %v5026_v60  ;;  %1473 = vmatpush1.bf16.msra.mxu0 %v5029_v61  ;;  %v5084_v60 = vld [vmem:[%s6221_s20 + $0x1e8] ss:$24 sps:$4 sm:$0xff]   ;;  %v5089_v61 = vld [vmem:[%s6221_s20 + $0x21c] ss:$24 sps:$4 sm:$0xff]  }
 0x156   : > { %1388 = vmatprep.subr.bf16.mxu1 %v5030_v62  ;;  %1474 = vmatprep.subr.bf16.mxu0 %v5033_v63  ;;  %v5087_v62 = vld [vmem:[%s6221_s20 + $0x218] ss:$24 sps:$4 sm:$0xff]   ;;  %v5092_v63 = vld [vmem:[%s6221_s20 + $0x24c] ss:$24 sps:$4 sm:$0xff]  }
 0x159   : > { %1389 = vmatpush1.bf16.msra.mxu1 %v5032_v0  ;;  %1475 = vmatpush1.bf16.msra.mxu0 %v5035_v1  ;;  %v5090_v0 = vld [vmem:[%s6221_s20 + $0x248] ss:$24 sps:$4 sm:$0xff]   ;;  %v5095_v1 = vld [vmem:[%s6221_s20 + $0x27c] ss:$24 sps:$4 sm:$0xff]  }
 0x15a   : > { %1390 = vmatprep.subr.bf16.mxu1 %v5036_v2  ;;  %1476 = vmatprep.subr.bf16.mxu0 %v5039_v3  ;;  %v5093_v2 = vld [vmem:[%s6221_s20 + $0x278] ss:$24 sps:$4 sm:$0xff]   ;;  %v5098_v3 = vld [vmem:[%s6221_s20 + $0x2ac] ss:$24 sps:$4 sm:$0xff]  }
 0x15d   : > { %1391 = vmatpush1.bf16.msra.mxu1 %v5038_v7  ;;  %1477 = vmatpush1.bf16.msra.mxu0 %v5041_v8  ;;  %v5096_v7 = vld [vmem:[%s6221_s20 + $0x2a8] ss:$24 sps:$4 sm:$0xff]   ;;  %v5101_v8 = vld [vmem:[%s6221_s20 + $0x2dc] ss:$24 sps:$4 sm:$0xff]  }
 0x15e   : > { %1392 = vmatprep.subr.bf16.mxu1 %v5042_v10  ;;  %1478 = vmatprep.subr.bf16.mxu0 %v5045_v11  ;;  %v5099_v10 = vld [vmem:[%s6221_s20 + $0x2d8] ss:$24 sps:$4 sm:$0xff]  }
 0x161   : > { %1393 = vmatpush1.bf16.msra.mxu1 %v5044_v12  ;;  %1479 = vmatpush1.bf16.msra.mxu0 %v5047_v13 }
 0x162   : > { %1394 = vmatprep.subr.bf16.mxu1 %v5048_v14  ;;  %1480 = vmatprep.subr.bf16.mxu0 %v5051_v15 }
 0x165   : > { %1395 = vmatpush1.bf16.msra.mxu1 %v5050_v16  ;;  %1481 = vmatpush1.bf16.msra.mxu0 %v5053_v17 }
 0x166   : > { %1407 = vmatprep.subr.bf16.mxu1 %v5056_v18 }
 0x1b7   : > { %v756_v19 = vpop.xlane.xlu0 %755 }
 0x1b8   : > { %v761_v20 = vmul.f32 0.00390625, %v756_v19 }
 0x1ba   : > { %v763_v21 = vadd.f32 1e-05, %v761_v20 }
 0x1bb   : > { %v759_v22 = vpop.xlane.xlu0 %758 }
 0x1bc   : > { %5246 = vrsqrt.f32 %v763_v21  ;;  %v762_v23 = vmul.f32 0.00390625, %v759_v22  ;;  %v5797_v21 = vmov 0.0  }
 0x1bd   : > { %4796 = vmatprep.subr.bf16.mxu0 %v5797_v21 }
 0x1be   : > { %v764_v25 = vadd.f32 1e-05, %v762_v23 }
 0x1c0   : > { %5248 = vrsqrt.f32 %v764_v25 }
 0x1c6   : > { %v5247_v29 = vpop.eup %5246 }
 0x1c7   : > { %v768_v31 = vmul.f32 %v5247_v29, %v6262_v5  ;;  %v767_v33 = vmul.f32 %v5247_v29, %v6260_v4  ;;  %v5054_v5 = vld [vmem:[%s6221_s20 + $0x8] ss:$24 sps:$4 sm:$0xff]   ;;  %v5059_v4 = vld [vmem:[%s6221_s20 + $0x3c] ss:$24 sps:$4 sm:$0xff]  }
 0x1c9   : > { %v783_v38 = vmul.f32 %v779_v32, %v768_v31  ;;  %v782_v40 = vmul.f32 %v775_v34, %v767_v33  ;;  %v746_v33 = vld [vmem:[#allocation6 + $0x8] sm:$0xff] }
 0x1ca   : > { %v5249_v35 = vpop.eup %5248 }
 0x1cb   : > { %v770_v36 = vmul.f32 %v5249_v35, %v6270_v9  ;;  %v769_v37 = vmul.f32 %v5249_v35, %v6264_v6  ;;  %v5057_v6 = vld [vmem:[%s6221_s20 + $0x38] ss:$24 sps:$4 sm:$0xff]   ;;  %v5062_v9 = vld [vmem:[%s6221_s20 + $0x6c] ss:$24 sps:$4 sm:$0xff]  }
 0x1cd   : > { %v785_v39 = vmul.f32 %v779_v32, %v770_v36  ;;  %v784_v41 = vmul.f32 %v775_v34, %v769_v37  ;;  %v745_v32 = vld [vmem:[#allocation6] sm:$0xff]  ;;  %v748_v34 = vld [vmem:[#allocation8 + $0x8] sm:$0xff] }
 0x1cf   : > { %v787_v42 = vpack.c.bf16 %v785_v39, %v783_v38  ;;  %v6358_v43 = vpack.c.bf16 %v784_v41, %v782_v40 }
 0x1d1   : > { %1396 = vmatprep.mubr.bf16.mxu1 %v787_v42  ;;  %1482 = vmatprep.mubr.bf16.mxu0 %v787_v42 }
 0x1d2   : > { %1397 = vmatmul.mubr.bf16.vlgmr.msra.gmra.mrb[0].mxu1 %v6358_v43  ;;  %1483 = vmatmul.mubr.bf16.vlgmr.msra.gmra.mrb[0].mxu0 %v6358_v43 }
 0x1d3   : > { %1408 = vmatpush1.bf16.msra.mxu1 %v5054_v5  ;;  %1439 = vmatprep.mubr.bf16.mxu1 %v787_v42 }
 0x1d4   : > { %1409 = vmatprep.subr.bf16.mxu1 %v5059_v4  ;;  %4798 = vmatprep.mubr.msk.bf16.mxu0 %vm5798_vm0, %v5797_v21 }
 0x1d7   : > { %1410 = vmatpush1.bf16.msra.mxu1 %v5057_v6 }
 0x1d8   : > { %1411 = vmatprep.subr.bf16.mxu1 %v5062_v9 }
 0x1db   : > { %1412 = vmatpush1.bf16.msra.mxu1 %v5060_v44 }
 0x1dc   : > { %1413 = vmatprep.subr.bf16.mxu1 %v5065_v45 }
 0x1df   : > { %1414 = vmatpush1.bf16.msra.mxu1 %v5063_v46 }
 0x1e0   : > { %1415 = vmatprep.subr.bf16.mxu1 %v5068_v47 }
 0x1e3   : > { %1416 = vmatpush1.bf16.msra.mxu1 %v5066_v48 }
 0x1e4   : > { %1417 = vmatprep.subr.bf16.mxu1 %v5071_v49 }
 0x1e7   : > { %1418 = vmatpush1.bf16.msra.mxu1 %v5069_v50 }
 0x1e8   : > { %1419 = vmatprep.subr.bf16.mxu1 %v5074_v51 }
 0x1eb   : > { %1420 = vmatpush1.bf16.msra.mxu1 %v5072_v52 }
 0x1ec   : > { %1421 = vmatprep.subr.bf16.mxu1 %v5077_v53 }
 0x1ef   : > { %1422 = vmatpush1.bf16.msra.mxu1 %v5075_v54 }
 0x1f0   : > { %1423 = vmatprep.subr.bf16.mxu1 %v5080_v55 }
 0x1f3   : > { %1424 = vmatpush1.bf16.msra.mxu1 %v5078_v56 }
 0x1f4   : > { %1425 = vmatprep.subr.bf16.mxu1 %v5083_v57 }
 0x1f7   : > { %1426 = vmatpush1.bf16.msra.mxu1 %v5081_v58 }
 0x1f8   : > { %1427 = vmatprep.subr.bf16.mxu1 %v5086_v59 }
 0x1fb   : > { %1428 = vmatpush1.bf16.msra.mxu1 %v5084_v60 }
 0x1fc   : > { %1429 = vmatprep.subr.bf16.mxu1 %v5089_v61 }
 0x1ff   : > { %1430 = vmatpush1.bf16.msra.mxu1 %v5087_v62 }
 0x200   : > { %1431 = vmatprep.subr.bf16.mxu1 %v5092_v63 }
 0x203   : > { %1432 = vmatpush1.bf16.msra.mxu1 %v5090_v0 }
 0x204   : > { %1433 = vmatprep.subr.bf16.mxu1 %v5095_v1 }
 0x207   : > { %1434 = vmatpush1.bf16.msra.mxu1 %v5093_v2  ;;  %v733_v2 = vld [vmem:[%s6962_s12] sm:$0x1] }
 0x208   : > { %1435 = vmatprep.subr.bf16.mxu1 %v5098_v3  ;;  %v720_v3 = vand.u32 127, %v716_v24  ;;  %vm734_vm1 = vcmp.gt.f32.partialorder %v733_v2, 0.5 }
 0x20b   : > { %1436 = vmatpush1.bf16.msra.mxu1 %v5096_v7  ;;  %v718_v7 = vadd.s32 8, %v6342_v26 }
 0x20c   : > { %1437 = vmatprep.subr.bf16.mxu1 %v5101_v8  ;;  %v721_v8 = vshra.s32 %v6342_v26, 3 }
 0x20f   : > { %1438 = vmatpush1.bf16.msra.mxu1 %v5099_v10  ;;  %v723_v10 = vshra.s32 %v720_v3, 3 }
 0x210   : > { %4808 = vmatprep.subr.bf16.mxu1 %v5797_v21 }
 0x211   : > { %vm724_vm2 = vcmp.eq.s32.totalorder %v721_v8, %v723_v10 }
 0x212   : > { %1440 = vmatmul.mubr.bf16.vlgmr.msra.gmra.mrb[4].mxu1 %v6358_v43 }
 0x213   : > { %4810 = vmatprep.mubr.msk.bf16.mxu1 %vm5798_vm0, %v5797_v21 }
 0x2a5   : > { %v6393_v11 = vpop.f32.mrb[0].mxu1  ;;  %v6395_v12 = vpop.f32.mrb[0].mxu0 }
 0x2a6   : > { %1493 = vst [vmem:[%s6256_s21] sm:$0xff] %v6395_v12  ;;  %v1400_v13 = vpop.f32.mrb[1].mxu1  ;;  %v6399_v14 = vpop.f32.mrb[1].mxu0  ;;  %v1497_v60 = vmul.f32 %v6393_v11, %v745_v32 }
 0x2a7   : > { %1494 = vst [vmem:[%s6256_s21 + $0x8] sm:$0xff] %v6399_v14  ;;  %v6403_v15 = vpop.f32.mrb[2].mxu0  ;;  %1637 = vrot.lane.b32.xlu1 %v1400_v13, %s5796_s7  ;;  %v6405_v16 = vpop.f32.mrb[2].mxu1  ;;  %v1635_v37 = vmul.f32 %v1400_v13, %v745_v32  ;;  %v5799_v13 = vmov 0  }
 0x2a8   : > { %1495 = vst [vmem:[%s6256_s21 + $0x10] sm:$0xff] %v6403_v15  ;;  %v1590_v17 = vpack.c.bf16 %v6403_v15, %v6395_v12  ;;  %v1404_v18 = vpop.f32.mrb[3].mxu1  ;;  %v6411_v19 = vpop.f32.mrb[3].mxu0  ;;  %v1498_v61 = vmul.f32 %v6405_v16, %v746_v33  ;;  %v727_v12 = vand.u32 7, %v6342_v26  ;;  %v722_v15 = vshra.s32 %v718_v7, 3 }
 0x2a9   : > { %1496 = vst [vmem:[%s6256_s21 + $0x18] sm:$0xff] %v6411_v19  ;;  %v1727_v20 = vpack.c.bf16 %v6411_v19, %v6399_v14  ;;  %v1636_v38 = vmul.f32 %v1404_v18, %v746_v33  ;;  %v735_v14 = vsel %vm734_vm1, 1, %v5799_v13 }
 0x2aa   : > { %vm725_vm4 = vcmp.eq.s32.totalorder %v722_v15, %v723_v10  ;;  %v5107_v10 = vld [vmem:[%s6227_s10 + $0x14] ss:$8 sps:$4 sm:$0xff]   ;;  %v5105_v15 = vld [vmem:[%s6227_s10 + $0x10] ss:$8 sps:$4 sm:$0xff]  }
 0x2ab   : > { %1639 = vrot.lane.b32.xlu1 %v1404_v18, %s5796_s7  ;;  %v5800_v18 = vmov -1e+30  }
 0x2e5   : > { %v1441_v22 = vpop.f32.mrb[4].mxu1 }
 0x2e6   : > { %1509 = vrot.lane.b32.xlu0 %v1441_v22, %s5796_s7  ;;  %v1443_v23 = vpop.f32.mrb[5].mxu1  ;;  %v1507_v43 = vmul.f32 %v1441_v22, %v745_v32 }
 0x2e7   : > { %1647 = vrot.lane.b32.xlu1 %v1443_v23, %s5796_s7  ;;  %v1445_v25 = vpop.f32.mrb[6].mxu1  ;;  %v1645_v9 = vmul.f32 %v1443_v23, %v745_v32 }
 0x2e8   : > { %v1447_v29 = vpop.f32.mrb[7].mxu1  ;;  %v1508_v48 = vmul.f32 %v1445_v25, %v746_v33 }
 0x2e9   : > { %v1646_v52 = vmul.f32 %v1447_v29, %v746_v33 }
 0x2eb   : > { %1511 = vrot.lane.b32.xlu1 %v1445_v25, %s5796_s7 }
 0x2ef   : > { %1649 = vrot.lane.b32.xlu1 %v1447_v29, %s5796_s7 }
 0x2f3   : > { %1499 = vrot.lane.b32.xlu1 %v6393_v11, %s5796_s7  ;;  %v726_v11 = vand.u32 7, %v720_v3 }
 0x2f5   : > { %vm729_vm3 = vcmp.le.s32.totalorder %v726_v11, %v727_v12 }
 0x2f6   : > { %vm731_vm6 = vmand %vm724_vm2, %vm729_vm3 }
 0x2f7   : > { %1501 = vrot.lane.b32.xlu1 %v6405_v16, %s5796_s7  ;;  %v728_v16 = vand.u32 7, %v718_v7  ;;  %v5102_v7 = vld [vmem:[%s6227_s10] ss:$8 sps:$4 sm:$0xff]  }
 0x2f9   : > { %vm730_vm5 = vcmp.le.s32.totalorder %v726_v11, %v728_v16  ;;  %v5110_v16 = vld [vmem:[%s6227_s10 + $0x24] ss:$8 sps:$4 sm:$0xff]  }
 0x2fa   : > { %vm732_vm8 = vmand %vm725_vm4, %vm730_vm5 }
 0x319   : > { %v1638_v31 = vpop.permute.xlu1 %1637 }
 0x31a   : > { %v1641_v35 = vmul.f32 %v1638_v31, %v747_v30 }
 0x31c   : > { %v1643_v40 = vadd.f32 %v1641_v35, %v1635_v37 }
 0x31d   : > { %v1640_v36 = vpop.permute.xlu1 %1639 }
 0x31e   : > { %v1642_v39 = vmul.f32 %v1640_v36, %v748_v34 }
 0x320   : > { %v1644_v41 = vadd.f32 %v1642_v39, %v1636_v38 }
 0x322   : > { %v1657_v42 = vpack.c.bf16 %v1644_v41, %v1643_v40 }
 0x358   : > { %v1510_v5 = vpop.permute.xlu0 %1509 }
 0x359   : > { %v1513_v4 = vmul.f32 %v1510_v5, %v747_v30  ;;  %v1648_v6 = vpop.permute.xlu1 %1647 }
 0x35a   : > { %v1651_v44 = vmul.f32 %v1648_v6, %v747_v30 }
 0x35b   : > { %v1515_v45 = vadd.f32 %v1513_v4, %v1507_v43 }
 0x35c   : > { %v1653_v46 = vadd.f32 %v1651_v44, %v1645_v9 }
 0x35d   : > { %1517 = vst [vmem:[%s6254_s23] sm:$0xff] %v1515_v45  ;;  %v1512_v47 = vpop.permute.xlu1 %1511 }
 0x35e   : > { %1655 = vst [vmem:[%s6254_s23 + $0x8] sm:$0xff] %v1653_v46  ;;  %v1514_v49 = vmul.f32 %v1512_v47, %v748_v34 }
 0x360   : > { %v1516_v50 = vadd.f32 %v1514_v49, %v1508_v48 }
 0x361   : > { %v1650_v51 = vpop.permute.xlu1 %1649 }
 0x362   : > { %1518 = vst [vmem:[%s6254_s23 + $0x10] sm:$0xff] %v1516_v50  ;;  %v1520_v53 = vpack.c.bf16 %v1516_v50, %v1515_v45  ;;  %v1652_v54 = vmul.f32 %v1650_v51, %v748_v34 }
 0x364   : > { %v1654_v55 = vadd.f32 %v1652_v54, %v1646_v52  ;;  %4797 = vmatpush3.bf16.xpose.msra.mxu0 %v1520_v53 }
 0x365   : > { %v1500_v56 = vpop.permute.xlu1 %1499  ;;  %4802 = vmatprep.subr.bf16.mxu0 %v5797_v21 }
 0x366   : > { %1656 = vst [vmem:[%s6254_s23 + $0x18] sm:$0xff] %v1654_v55  ;;  %v1658_v57 = vpack.c.bf16 %v1654_v55, %v1653_v46  ;;  %v1503_v58 = vmul.f32 %v1500_v56, %v747_v30 }
 0x368   : > { %4809 = vmatpush3.bf16.xpose.msra.mxu1 %v1658_v57  ;;  %v1505_v63 = vadd.f32 %v1503_v58, %v1497_v60 }
 0x369   : > { %v1502_v59 = vpop.permute.xlu1 %1501  ;;  %4814 = vmatprep.subr.bf16.mxu1 %v5797_v21 }
 0x36a   : > { %v1504_v62 = vmul.f32 %v1502_v59, %v748_v34  ;;  %v5104_v59 = vld [vmem:[%s6227_s10 + $0x4] ss:$8 sps:$4 sm:$0xff]  }
 0x36c   : > { %v1506_v0 = vadd.f32 %v1504_v62, %v1498_v61 }
 0x36e   : > { %v1519_v1 = vpack.c.bf16 %v1506_v0, %v1505_v63 }
 0x36f   : > { %4811 = vmatmul.mubr.bf16.vlgmr.msra.gmra.mrb[8].mxu1 %v1657_v42 }
 0x370   : > { %4799 = vmatmul.mubr.bf16.vlgmr.msra.gmra.mrb[4].mxu0 %v1519_v1  ;;  %4815 = vmatpush3.bf16.msra.mxu1 %v1727_v20 }
 0x371   : > { %4803 = vmatpush3.bf16.msra.mxu0 %v1590_v17  ;;  %4816 = vmatprep.mubr.msk.bf16.mxu1 %vm5798_vm0, %v5797_v21  ;;  %v739_v17 = vrot.slane %v735_v14, %v6348_v28 }
 0x372   : > { %4804 = vmatprep.mubr.msk.bf16.mxu0 %vm5798_vm0, %v5797_v21  ;;  %1966 = vmatprep.subr.bf16.mxu1 %v5104_v59  ;;  %v2059_v59 = vld [vmem:[%s6230_s22 + $0x40] sm:$0xff] }
 0x373   : > { %vm740_vm7 = vcmp.eq.s32.totalorder %v739_v17, 1 }
 0x374   : > { %vm741_vm9 = vmand %vm731_vm6, %vm740_vm7 }
 0x375   : > { %vm742_vm10 = vmand %vm732_vm8, %vm740_vm7  ;;  %v743_v19 = vsel %vm741_vm9, 0.0, %v5800_v18 }
 0x376   : > { %v744_v25 = vsel %vm742_vm10, 0.0, %v5800_v18  ;;  %v5113_v18 = vld [vmem:[%s6227_s10 + $0x34] ss:$8 sps:$4 sm:$0xff]  }
 0x442   : > { %v1693_v24 = vpop.f32.mrb[8].mxu1 }
 0x443   : > { %v1700_v20 = vmul.f32 0.088388346, %v1693_v24  ;;  %v1555_v26 = vpop.f32.mrb[4].mxu0  ;;  %v4812_v21 = vpop.f32.mrb[9].mxu1  ;;  %v5108_v24 = vld [vmem:[%s6227_s10 + $0x20] ss:$8 sps:$4 sm:$0xff]  }
 0x444   : > { %v4800_v22 = vpop.f32.mrb[5].mxu0  ;;  %v1696_v23 = vpop.f32.mrb[10].mxu1  ;;  %v1562_v29 = vmul.f32 0.088388346, %v1555_v26  ;;  %v5114_v26 = vld [vmem:[%s6227_s10 + $0x40] ss:$8 sps:$4 sm:$0xff]  }
 0x445   : > { %v1701_v30 = vmul.f32 0.088388346, %v1696_v23  ;;  %v1558_v31 = vpop.f32.mrb[6].mxu0  ;;  %v4813_v32 = vpop.f32.mrb[11].mxu1  ;;  %v1702_v33 = vadd.f32 %v1700_v20, %v743_v19  ;;  %v5116_v20 = vld [vmem:[%s6227_s10 + $0x44] ss:$8 sps:$4 sm:$0xff]  }
 0x446   : > { %v1563_v34 = vmul.f32 0.088388346, %v1558_v31  ;;  %v4801_v35 = vpop.f32.mrb[7].mxu0  ;;  %v1564_v40 = vadd.f32 %v1562_v29, %v743_v19  ;;  %v5111_v19 = vld [vmem:[%s6227_s10 + $0x30] ss:$8 sps:$4 sm:$0xff]  }
 0x447   : > { %v1704_v36 = vsel %vm1566_vm11, %v1702_v33, -inf  ;;  %v1703_v37 = vadd.f32 %v1701_v30, %v744_v25  ;;  %v5119_v21 = vld [vmem:[%s6227_s10 + $0x54] ss:$8 sps:$4 sm:$0xff]   ;;  %v5117_v22 = vld [vmem:[%s6227_s10 + $0x50] ss:$8 sps:$4 sm:$0xff]  }
 0x448   : > { %1705 = vmax.xlane.f32.xlu1 %v1704_v36  ;;  %v1565_v38 = vadd.f32 %v1563_v34, %v744_v25  ;;  %v1567_v42 = vsel %vm1566_vm11, %v1564_v40, -inf  ;;  %v5122_v23 = vld [vmem:[%s6227_s10 + $0x64] ss:$8 sps:$4 sm:$0xff]   ;;  %v5120_v25 = vld [vmem:[%s6227_s10 + $0x60] ss:$8 sps:$4 sm:$0xff]  }
 0x449   : > { %v1707_v39 = vsel %vm1566_vm11, %v1703_v37, -inf  ;;  %v5125_v29 = vld [vmem:[%s6227_s10 + $0x74] ss:$8 sps:$4 sm:$0xff]   ;;  %v5123_v30 = vld [vmem:[%s6227_s10 + $0x70] ss:$8 sps:$4 sm:$0xff]  }
 0x44a   : > { %1708 = vmax.xlane.f32.xlu0 %v1707_v39  ;;  %v1570_v41 = vsel %vm1566_vm11, %v1565_v38, -inf  ;;  %v5128_v31 = vld [vmem:[%s6227_s10 + $0x84] ss:$8 sps:$4 sm:$0xff]   ;;  %v5126_v32 = vld [vmem:[%s6227_s10 + $0x80] ss:$8 sps:$4 sm:$0xff]  }
 0x44b   : > { %v5129_v34 = vld [vmem:[%s6227_s10 + $0x90] ss:$8 sps:$4 sm:$0xff]   ;;  %v5134_v35 = vld [vmem:[%s6227_s10 + $0xa4] ss:$8 sps:$4 sm:$0xff]   ;;  %v5132_v36 = vld [vmem:[%s6227_s10 + $0xa0] ss:$8 sps:$4 sm:$0xff]  }
 0x44c   : > { %1571 = vmax.xlane.f32.xlu1 %v1570_v41  ;;  %v5140_v39 = vld [vmem:[%s6227_s10 + $0xc4] ss:$8 sps:$4 sm:$0xff]   ;;  %v5143_v41 = vld [vmem:[%s6227_s10 + $0xd4] ss:$8 sps:$4 sm:$0xff]  }
 0x44e   : > { %1568 = vmax.xlane.f32.xlu0 %v1567_v42  ;;  %v5141_v42 = vld [vmem:[%s6227_s10 + $0xd0] ss:$8 sps:$4 sm:$0xff]  }
 0x4d5   : > { %v1706_v5 = vpop.xlane.xlu1 %1705 }
 0x4d6   : > { %v1710_v43 = vsub.f32 %v1702_v33, %v1706_v5  ;;  %v5131_v33 = vld [vmem:[%s6227_s10 + $0x94] ss:$8 sps:$4 sm:$0xff]   ;;  %v5146_v5 = vld [vmem:[%s6227_s10 + $0xe4] ss:$8 sps:$4 sm:$0xff]  }
 0x4d7   : > { %v1709_v4 = vpop.xlane.xlu0 %1708 }
 0x4d8   : > { %v1712_v6 = vmul.f32 1.442695, %v1710_v43  ;;  %v1711_v9 = vsub.f32 %v1703_v37, %v1709_v4  ;;  %v5137_v37 = vld [vmem:[%s6227_s10 + $0xb4] ss:$8 sps:$4 sm:$0xff]   ;;  %v5144_v43 = vld [vmem:[%s6227_s10 + $0xe0] ss:$8 sps:$4 sm:$0xff]  }
 0x4d9   : > { %v1572_v44 = vpop.xlane.xlu1 %1571  ;;  %v5149_v4 = vld [vmem:[%s6227_s10 + $0xf4] ss:$8 sps:$4 sm:$0xff]  }
 0x4da   : > { %5250 = vpow2.f32 %v1712_v6  ;;  %v1714_v45 = vmul.f32 1.442695, %v1711_v9  ;;  %v1574_v46 = vsub.f32 %v1565_v38, %v1572_v44  ;;  %v5135_v38 = vld [vmem:[%s6227_s10 + $0xb0] ss:$8 sps:$4 sm:$0xff]  }
 0x4db   : > { %v1569_v47 = vpop.xlane.xlu0 %1568  ;;  %v5147_v6 = vld [vmem:[%s6227_s10 + $0xf0] ss:$8 sps:$4 sm:$0xff]  }
 0x4dc   : > { %5252 = vpow2.f32 %v1714_v45  ;;  %v1577_v48 = vmul.f32 1.442695, %v1574_v46  ;;  %v1573_v49 = vsub.f32 %v1564_v40, %v1569_v47  ;;  %v5138_v40 = vld [vmem:[%s6227_s10 + $0xc0] ss:$8 sps:$4 sm:$0xff]  }
 0x4de   : > { %5254 = vpow2.f32 %v1577_v48  ;;  %v1575_v50 = vmul.f32 1.442695, %v1573_v49 }
 0x4e0   : > { %5256 = vpow2.f32 %v1575_v50 }
 0x4e4   : > { %v5251_v51 = vpop.eup %5250 }
 0x4e5   : > { %v1716_v52 = vsel %vm1566_vm11, %v5251_v51, 0.0 }
 0x4e6   : > { %v5253_v53 = vpop.eup %5252  ;;  %1717 = vadd.xlane.f32.xlu0 %v1716_v52 }
 0x4e7   : > { %v1719_v54 = vsel %vm1566_vm11, %v5253_v53, 0.0 }
 0x4e8   : > { %v5255_v55 = vpop.eup %5254  ;;  %1720 = vadd.xlane.f32.xlu1 %v1719_v54  ;;  %v2055_v54 = vld [vmem:[%s6230_s22 + $0x20] sm:$0xff] }
 0x4e9   : > { %v1582_v57 = vsel %vm1566_vm11, %v5255_v55, 0.0 }
 0x4ea   : > { %v5257_v56 = vpop.eup %5256 }
 0x4eb   : > { %v1579_v58 = vsel %vm1566_vm11, %v5257_v56, 0.0 }
 0x4ec   : > { %1583 = vadd.xlane.f32.xlu1 %v1582_v57  ;;  %1580 = vadd.xlane.f32.xlu0 %v1579_v58  ;;  %v2056_v58 = vld [vmem:[%s6230_s22 + $0x28] sm:$0xff] }
 0x573   : > { %v1718_v60 = vpop.xlane.xlu0 %1717 }
 0x574   : > { %5258 = vrcp.f32 %v1718_v60  ;;  %v2063_v60 = vld [vmem:[%s6230_s22 + $0x60] sm:$0xff] }
 0x575   : > { %v1721_v61 = vpop.xlane.xlu1 %1720 }
 0x576   : > { %5260 = vrcp.f32 %v1721_v61 }
 0x579   : > { %v1584_v62 = vpop.xlane.xlu1 %1583  ;;  %v1581_v63 = vpop.xlane.xlu0 %1580 }
 0x57a   : > { %5262 = vrcp.f32 %v1584_v62 }
 0x57b   : > { %5264 = vrcp.f32 %v1581_v63  ;;  %v4517_v63 = vcombine.high %v2059_v59, %v2063_v60 }
 0x57e   : > { %v5259_v0 = vpop.eup %5258 }
 0x57f   : > { %v1724_v2 = vmul.f32 %v5259_v0, %v5251_v51  ;;  %v2060_v0 = vld [vmem:[%s6230_s22 + $0x48] sm:$0xff] }
 0x580   : > { %v5261_v1 = vpop.eup %5260 }
 0x581   : > { %v1725_v3 = vmul.f32 %v5261_v1, %v5253_v53  ;;  %v2051_v53 = vld [vmem:[%s6230_s22] sm:$0xff]  ;;  %v2064_v1 = vld [vmem:[%s6230_s22 + $0x68] sm:$0xff] }
 0x582   : > { %v4509_v57 = vcombine.high %v2051_v53, %v2055_v54 }
 0x583   : > { %v1726_v8 = vpack.c.bf16 %v1725_v3, %v1724_v2  ;;  %v2067_v2 = vld [vmem:[%s6230_s22 + $0x80] sm:$0xff]  ;;  %v4519_v3 = vcombine.high %v2060_v0, %v2064_v1 }
 0x584   : > { %v5263_v11 = vpop.eup %5262  ;;  %2819 = vmatprep.subr.bf16.mxu0 %v4509_v57 }
 0x585   : > { %v5265_v12 = vpop.eup %5264  ;;  %v1588_v13 = vmul.f32 %v5263_v11, %v5255_v55  ;;  %4817 = vmatmul.mubr.msk.bf16.vlgmr.msra.gmra.mrb[12].mxu1 %vm1566_vm11, %v1726_v8  ;;  %v2052_v55 = vld [vmem:[%s6230_s22 + $0x8] sm:$0xff]  ;;  %v4516_v11 = vcombine.low %v2059_v59, %v2063_v60 }
 0x586   : > { %v1587_v14 = vmul.f32 %v5265_v12, %v5257_v56  ;;  %1967 = vmatpush1.bf16.msra.mxu1 %v5102_v7  ;;  %v4508_v56 = vcombine.low %v2051_v53, %v2055_v54  ;;  %v4510_v61 = vcombine.low %v2052_v55, %v2056_v58  ;;  %v4511_v62 = vcombine.high %v2052_v55, %v2056_v58  ;;  %v2071_v7 = vld [vmem:[%s6230_s22 + $0xa0] sm:$0xff]  ;;  %v2068_v8 = vld [vmem:[%s6230_s22 + $0x88] sm:$0xff] }
 0x587   : > { %1968 = vmatprep.subr.bf16.mxu1 %v5107_v10  ;;  %v2072_v10 = vld [vmem:[%s6230_s22 + $0xa8] sm:$0xff]  ;;  %v4518_v12 = vcombine.low %v2060_v0, %v2064_v1  ;;  %v2115_v53 = vld [vmem:[%s6230_s22 + $0x200] sm:$0xff] }
 0x588   : > { %v1589_v17 = vpack.c.bf16 %v1588_v13, %v1587_v14  ;;  %v4525_v13 = vcombine.high %v2067_v2, %v2071_v7  ;;  %v4527_v14 = vcombine.high %v2068_v8, %v2072_v10  ;;  %v2119_v54 = vld [vmem:[%s6230_s22 + $0x220] sm:$0xff]  ;;  %v2116_v55 = vld [vmem:[%s6230_s22 + $0x208] sm:$0xff] }
 0x589   : > { %v4573_v59 = vcombine.high %v2115_v53, %v2119_v54  ;;  %v2128_v0 = vld [vmem:[%s6230_s22 + $0x268] sm:$0xff]  ;;  %v4572_v1 = vcombine.low %v2115_v53, %v2119_v54 }
 0x58a   : > { %4805 = vmatmul.mubr.msk.bf16.vlgmr.msra.gmra.mrb[8].mxu0 %vm1566_vm11, %v1589_v17  ;;  %1969 = vmatpush1.bf16.msra.mxu1 %v5105_v15  ;;  %v2075_v15 = vld [vmem:[%s6230_s22 + $0xc0] sm:$0xff]  ;;  %v2076_v17 = vld [vmem:[%s6230_s22 + $0xc8] sm:$0xff] }
 0x58b   : > { %1970 = vmatprep.subr.bf16.mxu1 %v5110_v16  ;;  %2820 = vmatpush1.bf16.msra.mxu0 %v4508_v56  ;;  %v2079_v16 = vld [vmem:[%s6230_s22 + $0xe0] sm:$0xff]  ;;  %v2120_v56 = vld [vmem:[%s6230_s22 + $0x228] sm:$0xff] }
 0x58c   : > { %2821 = vmatprep.subr.bf16.mxu0 %v4517_v63  ;;  %v4575_v60 = vcombine.high %v2116_v55, %v2120_v56  ;;  %v2124_v63 = vld [vmem:[%s6230_s22 + $0x248] sm:$0xff] }
 0x58d   : > { %v2156_v53 = vld [vmem:[%s6230_s22 + $0x348] sm:$0xff] }
 0x58e   : > { %1971 = vmatpush1.bf16.msra.mxu1 %v5108_v24  ;;  %v2080_v24 = vld [vmem:[%s6230_s22 + $0xe8] sm:$0xff] }
 0x58f   : > { %1972 = vmatprep.subr.bf16.mxu1 %v5113_v18  ;;  %2822 = vmatpush1.bf16.msra.mxu0 %v4516_v11  ;;  %v4524_v18 = vcombine.low %v2067_v2, %v2071_v7  ;;  %v4574_v2 = vcombine.low %v2116_v55, %v2120_v56  ;;  %v4583_v7 = vcombine.high %v2124_v63, %v2128_v0  ;;  %v2132_v11 = vld [vmem:[%s6230_s22 + $0x288] sm:$0xff]  ;;  %v2163_v56 = vld [vmem:[%s6230_s22 + $0x380] sm:$0xff] }
 0x590   : > { %2823 = vmatprep.subr.bf16.mxu0 %v4525_v13  ;;  %v2160_v55 = vld [vmem:[%s6230_s22 + $0x368] sm:$0xff] }
 0x592   : > { %1973 = vmatpush1.bf16.msra.mxu1 %v5111_v19  ;;  %v4526_v19 = vcombine.low %v2068_v8, %v2072_v10  ;;  %v2131_v8 = vld [vmem:[%s6230_s22 + $0x280] sm:$0xff] }
 0x593   : > { %1974 = vmatprep.subr.bf16.mxu1 %v5116_v20  ;;  %v4533_v20 = vcombine.high %v2075_v15, %v2079_v16  ;;  %2824 = vmatpush1.bf16.msra.mxu0 %v4524_v18  ;;  %v2135_v10 = vld [vmem:[%s6230_s22 + $0x2a0] sm:$0xff] }
 0x595   : > { %2825 = vmatprep.subr.bf16.mxu0 %v4533_v20 }
 0x596   : > { %1975 = vmatpush1.bf16.msra.mxu1 %v5114_v26  ;;  %v4535_v26 = vcombine.high %v2076_v17, %v2080_v24 }
 0x597   : > { %1976 = vmatprep.subr.bf16.mxu1 %v5119_v21  ;;  %v2083_v21 = vld [vmem:[%s6230_s22 + $0x100] sm:$0xff] }
 0x59a   : > { %1977 = vmatpush1.bf16.msra.mxu1 %v5117_v22  ;;  %v2087_v22 = vld [vmem:[%s6230_s22 + $0x120] sm:$0xff] }
 0x59b   : > { %1978 = vmatprep.subr.bf16.mxu1 %v5122_v23  ;;  %v2084_v23 = vld [vmem:[%s6230_s22 + $0x108] sm:$0xff] }
 0x59e   : > { %1979 = vmatpush1.bf16.msra.mxu1 %v5120_v25  ;;  %v2088_v25 = vld [vmem:[%s6230_s22 + $0x128] sm:$0xff] }
 0x59f   : > { %1980 = vmatprep.subr.bf16.mxu1 %v5125_v29  ;;  %v4532_v29 = vcombine.low %v2075_v15, %v2079_v16  ;;  %v4589_v15 = vcombine.high %v2131_v8, %v2135_v10 }
 0x5a1   : > { %2826 = vmatpush1.bf16.msra.mxu0 %v4532_v29 }
 0x5a2   : > { %1981 = vmatpush1.bf16.msra.mxu1 %v5123_v30  ;;  %v4534_v30 = vcombine.low %v2076_v17, %v2080_v24  ;;  %v4588_v17 = vcombine.low %v2131_v8, %v2135_v10 }
 0x5a3   : > { %1982 = vmatprep.subr.bf16.mxu1 %v5128_v31  ;;  %v4541_v31 = vcombine.high %v2083_v21, %v2087_v22 }
 0x5a5   : > { %2827 = vmatprep.subr.bf16.mxu0 %v4541_v31 }
 0x5a6   : > { %1983 = vmatpush1.bf16.msra.mxu1 %v5126_v32  ;;  %v4543_v32 = vcombine.high %v2084_v23, %v2088_v25 }
 0x5a7   : > { %1984 = vmatprep.subr.bf16.mxu1 %v5131_v33  ;;  %v2091_v33 = vld [vmem:[%s6230_s22 + $0x140] sm:$0xff] }
 0x5aa   : > { %1985 = vmatpush1.bf16.msra.mxu1 %v5129_v34  ;;  %v2095_v34 = vld [vmem:[%s6230_s22 + $0x160] sm:$0xff] }
 0x5ab   : > { %1986 = vmatprep.subr.bf16.mxu1 %v5134_v35  ;;  %v2092_v35 = vld [vmem:[%s6230_s22 + $0x148] sm:$0xff] }
 0x5ae   : > { %1987 = vmatpush1.bf16.msra.mxu1 %v5132_v36  ;;  %v2096_v36 = vld [vmem:[%s6230_s22 + $0x168] sm:$0xff] }
 0x5af   : > { %1988 = vmatprep.subr.bf16.mxu1 %v5137_v37  ;;  %v4540_v37 = vcombine.low %v2083_v21, %v2087_v22  ;;  %v5303_v21 = vld [vmem:[#allocation2 + $0x8] sm:$0xff] }
 0x5b1   : > { %2828 = vmatpush1.bf16.msra.mxu0 %v4540_v37 }
 0x5b2   : > { %1989 = vmatpush1.bf16.msra.mxu1 %v5135_v38  ;;  %v4542_v38 = vcombine.low %v2084_v23, %v2088_v25  ;;  %v5304_v25 = vld [vmem:[#allocation2 + $0x10] sm:$0xff] }
 0x5b3   : > { %1990 = vmatprep.subr.bf16.mxu1 %v5140_v39  ;;  %v4549_v39 = vcombine.high %v2091_v33, %v2095_v34 }
 0x5b5   : > { %2829 = vmatprep.subr.bf16.mxu0 %v4549_v39  ;;  %v2139_v39 = vld [vmem:[%s6230_s22 + $0x2c0] sm:$0xff] }
 0x5b6   : > { %1991 = vmatpush1.bf16.msra.mxu1 %v5138_v40  ;;  %v4551_v40 = vcombine.high %v2092_v35, %v2096_v36 }
 0x5b7   : > { %1992 = vmatprep.subr.bf16.mxu1 %v5143_v41  ;;  %v2099_v41 = vld [vmem:[%s6230_s22 + $0x180] sm:$0xff] }
 0x5ba   : > { %1993 = vmatpush1.bf16.msra.mxu1 %v5141_v42  ;;  %v2103_v42 = vld [vmem:[%s6230_s22 + $0x1a0] sm:$0xff] }
 0x5bb   : > { %1994 = vmatprep.subr.bf16.mxu1 %v5146_v5  ;;  %v2100_v5 = vld [vmem:[%s6230_s22 + $0x188] sm:$0xff] }
 0x5be   : > { %1995 = vmatpush1.bf16.msra.mxu1 %v5144_v43  ;;  %v2104_v43 = vld [vmem:[%s6230_s22 + $0x1a8] sm:$0xff] }
 0x5bf   : > { %1996 = vmatprep.subr.bf16.mxu1 %v5149_v4  ;;  %v4548_v4 = vcombine.low %v2091_v33, %v2095_v34 }
 0x5c1   : > { %2830 = vmatpush1.bf16.msra.mxu0 %v4548_v4 }
 0x5c2   : > { %1997 = vmatpush1.bf16.msra.mxu1 %v5147_v6  ;;  %v4550_v6 = vcombine.low %v2092_v35, %v2096_v36 }
 0x5c3   : > { %2862 = vmatprep.subr.bf16.mxu1 %v4511_v62  ;;  %v2127_v62 = vld [vmem:[%s6230_s22 + $0x260] sm:$0xff] }
 0x658   : > { %v1765_v9 = vpop.f32.mrb[12].mxu1 }
 0x659   : > { %v4818_v44 = vpop.f32.mrb[13].mxu1 }
 0x65a   : > { %v1768_v45 = vpop.f32.mrb[14].mxu1  ;;  %v4559_v44 = vcombine.high %v2100_v5, %v2104_v43 }
 0x65b   : > { %v1773_v46 = vpack.c.bf16 %v1768_v45, %v1765_v9  ;;  %v4819_v47 = vpop.f32.mrb[15].mxu1  ;;  %v4557_v9 = vcombine.high %v2099_v41, %v2103_v42  ;;  %v2107_v45 = vld [vmem:[%s6230_s22 + $0x1c0] sm:$0xff] }
 0x65c   : > { %v2108_v47 = vld [vmem:[%s6230_s22 + $0x1c8] sm:$0xff] }
 0x65d   : > { %v1628_v48 = vpop.f32.mrb[8].mxu0  ;;  %1998 = vmatprep.mubr.bf16.mxu1 %v1773_v46  ;;  %v2111_v46 = vld [vmem:[%s6230_s22 + $0x1e0] sm:$0xff]  ;;  %2831 = vmatprep.subr.bf16.mxu0 %v4557_v9 }
 0x65e   : > { %v4806_v49 = vpop.f32.mrb[9].mxu0  ;;  %v4564_v57 = vcombine.low %v2107_v45, %v2111_v46  ;;  %v2147_v9 = vld [vmem:[%s6230_s22 + $0x300] sm:$0xff] }
 0x65f   : > { %v1631_v50 = vpop.f32.mrb[10].mxu0  ;;  %v4556_v49 = vcombine.low %v2099_v41, %v2103_v42  ;;  %v2140_v41 = vld [vmem:[%s6230_s22 + $0x2c8] sm:$0xff] }
 0x660   : > { %v1772_v51 = vpack.c.bf16 %v1631_v50, %v1628_v48  ;;  %v4807_v52 = vpop.f32.mrb[11].mxu0  ;;  %v2112_v48 = vld [vmem:[%s6230_s22 + $0x1e8] sm:$0xff]  ;;  %v4558_v50 = vcombine.low %v2100_v5, %v2104_v43 }
 0x661   : > { %v4567_v52 = vcombine.high %v2108_v47, %v2112_v48  ;;  %2832 = vmatpush1.bf16.msra.mxu0 %v4556_v49  ;;  %v4566_v58 = vcombine.low %v2108_v47, %v2112_v48  ;;  %v2144_v5 = vld [vmem:[%s6230_s22 + $0x2e8] sm:$0xff] }
 0x662   : > { %1999 = vmatmul.mubr.bf16.vlgmr.msra.gmra.mrb[16].mxu1 %v1772_v51  ;;  %v4565_v51 = vcombine.high %v2107_v45, %v2111_v46  ;;  %v4598_v4 = vcombine.low %v2140_v41, %v2144_v5  ;;  %v2148_v45 = vld [vmem:[%s6230_s22 + $0x308] sm:$0xff] }
 0x663   : > { %2863 = vmatpush1.bf16.msra.mxu1 %v4510_v61  ;;  %v2123_v61 = vld [vmem:[%s6230_s22 + $0x240] sm:$0xff]  ;;  %v2152_v47 = vld [vmem:[%s6230_s22 + $0x328] sm:$0xff] }
 0x664   : > { %2864 = vmatprep.subr.bf16.mxu1 %v4519_v3  ;;  %2833 = vmatprep.subr.bf16.mxu0 %v4565_v51  ;;  %v4581_v3 = vcombine.high %v2123_v61, %v2127_v62  ;;  %v4580_v13 = vcombine.low %v2123_v61, %v2127_v62  ;;  %v4606_v49 = vcombine.low %v2148_v45, %v2152_v47  ;;  %v2155_v51 = vld [vmem:[%s6230_s22 + $0x340] sm:$0xff]  ;;  %v2168_v61 = vld [vmem:[%s6230_s22 + $0x3a8] sm:$0xff] }
 0x665   : > { %2834 = vmatpush1.bf16.msra.mxu0 %v4564_v57  ;;  %v2167_v57 = vld [vmem:[%s6230_s22 + $0x3a0] sm:$0xff]  ;;  %v4614_v62 = vcombine.low %v2156_v53, %v2160_v55 }
 0x666   : > { %2835 = vmatprep.subr.bf16.mxu0 %v4573_v59  ;;  %v4615_v59 = vcombine.high %v2156_v53, %v2160_v55  ;;  %v4620_v8 = vcombine.low %v2163_v56, %v2167_v57  ;;  %v2073_v53 = vld [vmem:[%s6230_s22 + $0xb0] sm:$0xff]  ;;  %v2074_v55 = vld [vmem:[%s6230_s22 + $0xb8] sm:$0xff] }
 0x667   : > { %2865 = vmatpush1.bf16.msra.mxu1 %v4518_v12  ;;  %v2136_v12 = vld [vmem:[%s6230_s22 + $0x2a8] sm:$0xff] }
 0x668   : > { %2866 = vmatprep.subr.bf16.mxu1 %v4527_v14  ;;  %v4582_v14 = vcombine.low %v2124_v63, %v2128_v0  ;;  %v4591_v16 = vcombine.high %v2132_v11, %v2136_v12  ;;  %v4590_v24 = vcombine.low %v2132_v11, %v2136_v12  ;;  %v4621_v63 = vcombine.high %v2163_v56, %v2167_v57 }
 0x669   : > { %2836 = vmatpush1.bf16.msra.mxu0 %v4572_v1  ;;  %v2171_v1 = vld [vmem:[%s6230_s22 + $0x3c0] sm:$0xff] }
 0x66a   : > { %2837 = vmatprep.subr.bf16.mxu0 %v4581_v3  ;;  %v2172_v3 = vld [vmem:[%s6230_s22 + $0x3c8] sm:$0xff] }
 0x66b   : > { %2867 = vmatpush1.bf16.msra.mxu1 %v4526_v19  ;;  %v5302_v19 = vld [vmem:[#allocation2] sm:$0xff] }
 0x66c   : > { %2868 = vmatprep.subr.bf16.mxu1 %v4535_v26 }
 0x66d   : > { %2838 = vmatpush1.bf16.msra.mxu0 %v4580_v13 }
 0x66e   : > { %2839 = vmatprep.subr.bf16.mxu0 %v4589_v15  ;;  %v2053_v15 = vld [vmem:[%s6230_s22 + $0x10] sm:$0xff] }
 0x66f   : > { %2869 = vmatpush1.bf16.msra.mxu1 %v4534_v30 }
 0x670   : > { %2870 = vmatprep.subr.bf16.mxu1 %v4543_v32  ;;  %v5305_v32 = vld [vmem:[#allocation2 + $0x18] sm:$0xff] }
 0x671   : > { %2840 = vmatpush1.bf16.msra.mxu0 %v4588_v17  ;;  %v2054_v17 = vld [vmem:[%s6230_s22 + $0x18] sm:$0xff] }
 0x673   : > { %2871 = vmatpush1.bf16.msra.mxu1 %v4542_v38 }
 0x674   : > { %2872 = vmatprep.subr.bf16.mxu1 %v4551_v40  ;;  %v2143_v40 = vld [vmem:[%s6230_s22 + $0x2e0] sm:$0xff] }
 0x675   : > { %v4597_v42 = vcombine.high %v2139_v39, %v2143_v40  ;;  %v4596_v43 = vcombine.low %v2139_v39, %v2143_v40 }
 0x677   : > { %2873 = vmatpush1.bf16.msra.mxu1 %v4550_v6  ;;  %v4599_v6 = vcombine.high %v2140_v41, %v2144_v5  ;;  %2841 = vmatprep.subr.bf16.mxu0 %v4597_v42 }
 0x678   : > { %2874 = vmatprep.subr.bf16.mxu1 %v4559_v44  ;;  %2842 = vmatpush1.bf16.msra.mxu0 %v4596_v43  ;;  %v2151_v44 = vld [vmem:[%s6230_s22 + $0x320] sm:$0xff] }
 0x679   : > { %v4605_v46 = vcombine.high %v2147_v9, %v2151_v44  ;;  %v4604_v48 = vcombine.low %v2147_v9, %v2151_v44  ;;  %v2061_v44 = vld [vmem:[%s6230_s22 + $0x50] sm:$0xff] }
 0x67b   : > { %2875 = vmatpush1.bf16.msra.mxu1 %v4558_v50  ;;  %v4607_v50 = vcombine.high %v2148_v45, %v2152_v47  ;;  %2843 = vmatprep.subr.bf16.mxu0 %v4605_v46  ;;  %v2065_v45 = vld [vmem:[%s6230_s22 + $0x70] sm:$0xff]  ;;  %v2062_v46 = vld [vmem:[%s6230_s22 + $0x58] sm:$0xff] }
 0x67c   : > { %2876 = vmatprep.subr.bf16.mxu1 %v4567_v52  ;;  %v2159_v52 = vld [vmem:[%s6230_s22 + $0x360] sm:$0xff]  ;;  %2844 = vmatpush1.bf16.msra.mxu0 %v4604_v48  ;;  %v2066_v47 = vld [vmem:[%s6230_s22 + $0x78] sm:$0xff]  ;;  %v4520_v56 = vcombine.low %v2061_v44, %v2065_v45 }
 0x67d   : > { %v4613_v54 = vcombine.high %v2155_v51, %v2159_v52  ;;  %v4522_v57 = vcombine.low %v2062_v46, %v2066_v47 }
 0x67f   : > { %2877 = vmatpush1.bf16.msra.mxu1 %v4566_v58  ;;  %v4612_v58 = vcombine.low %v2155_v51, %v2159_v52  ;;  %2845 = vmatprep.subr.bf16.mxu0 %v4613_v54  ;;  %v4521_v51 = vcombine.high %v2061_v44, %v2065_v45  ;;  %v4523_v52 = vcombine.high %v2062_v46, %v2066_v47  ;;  %v2070_v54 = vld [vmem:[%s6230_s22 + $0x98] sm:$0xff] }
 0x680   : > { %2878 = vmatprep.subr.bf16.mxu1 %v4575_v60  ;;  %v2164_v60 = vld [vmem:[%s6230_s22 + $0x388] sm:$0xff]  ;;  %v2118_v44 = vld [vmem:[%s6230_s22 + $0x218] sm:$0xff] }
 0x681   : > { %v4623_v0 = vcombine.high %v2164_v60, %v2168_v61  ;;  %2846 = vmatpush1.bf16.msra.mxu0 %v4612_v58  ;;  %v4622_v10 = vcombine.low %v2164_v60, %v2168_v61  ;;  %v2077_v60 = vld [vmem:[%s6230_s22 + $0xd0] sm:$0xff]  ;;  %v2122_v45 = vld [vmem:[%s6230_s22 + $0x238] sm:$0xff] }
 0x682   : > { %2847 = vmatprep.subr.bf16.mxu0 %v4621_v63  ;;  %v2081_v61 = vld [vmem:[%s6230_s22 + $0xf0] sm:$0xff]  ;;  %v2082_v63 = vld [vmem:[%s6230_s22 + $0xf8] sm:$0xff] }
 0x683   : > { %2879 = vmatpush1.bf16.msra.mxu1 %v4574_v2  ;;  %v2175_v2 = vld [vmem:[%s6230_s22 + $0x3e0] sm:$0xff] }
 0x684   : > { %2880 = vmatprep.subr.bf16.mxu1 %v4583_v7  ;;  %v2176_v7 = vld [vmem:[%s6230_s22 + $0x3e8] sm:$0xff]  ;;  %v4629_v11 = vcombine.high %v2171_v1, %v2175_v2  ;;  %v4628_v13 = vcombine.low %v2171_v1, %v2175_v2  ;;  %v4530_v1 = vcombine.low %v2070_v54, %v2074_v55  ;;  %v4537_v2 = vcombine.high %v2077_v60, %v2081_v61 }
 0x685   : > { %v4631_v12 = vcombine.high %v2172_v3, %v2176_v7  ;;  %2848 = vmatpush1.bf16.msra.mxu0 %v4620_v8  ;;  %v2089_v8 = vld [vmem:[%s6230_s22 + $0x130] sm:$0xff] }
 0x686   : > { %2849 = vmatprep.subr.bf16.mxu0 %v4629_v11  ;;  %v2090_v11 = vld [vmem:[%s6230_s22 + $0x138] sm:$0xff] }
 0x687   : > { %2881 = vmatpush1.bf16.msra.mxu1 %v4582_v14  ;;  %v4630_v14 = vcombine.low %v2172_v3, %v2176_v7  ;;  %v2085_v7 = vld [vmem:[%s6230_s22 + $0x110] sm:$0xff] }
 0x688   : > { %2882 = vmatprep.subr.bf16.mxu1 %v4591_v16  ;;  %v2057_v16 = vld [vmem:[%s6230_s22 + $0x30] sm:$0xff] }
 0x689   : > { %2850 = vmatpush1.bf16.msra.mxu0 %v4628_v13 }
 0x68b   : > { %2883 = vmatpush1.bf16.msra.mxu1 %v4590_v24  ;;  %v4513_v24 = vcombine.high %v2053_v15, %v2057_v16 }
 0x68c   : > { %2884 = vmatprep.subr.bf16.mxu1 %v4599_v6 }
 0x68d   : > { %2905 = vmatprep.subr.bf16.mxu0 %v4513_v24  ;;  %v2094_v24 = vld [vmem:[%s6230_s22 + $0x158] sm:$0xff] }
 0x68f   : > { %2885 = vmatpush1.bf16.msra.mxu1 %v4598_v4 }
 0x690   : > { %2886 = vmatprep.subr.bf16.mxu1 %v4607_v50  ;;  %v2069_v50 = vld [vmem:[%s6230_s22 + $0x90] sm:$0xff] }
 0x691   : > { %v4529_v58 = vcombine.high %v2069_v50, %v2073_v53 }
 0x693   : > { %2887 = vmatpush1.bf16.msra.mxu1 %v4606_v49 }
 0x694   : > { %2888 = vmatprep.subr.bf16.mxu1 %v4615_v59  ;;  %v4531_v59 = vcombine.high %v2070_v54, %v2074_v55  ;;  %v2130_v54 = vld [vmem:[%s6230_s22 + $0x278] sm:$0xff] }
 0x697   : > { %2889 = vmatpush1.bf16.msra.mxu1 %v4614_v62  ;;  %v2078_v62 = vld [vmem:[%s6230_s22 + $0xd8] sm:$0xff] }
 0x698   : > { %2890 = vmatprep.subr.bf16.mxu1 %v4623_v0  ;;  %v4528_v0 = vcombine.low %v2069_v50, %v2073_v53  ;;  %v4539_v3 = vcombine.high %v2078_v62, %v2082_v63  ;;  %v4538_v13 = vcombine.low %v2078_v62, %v2082_v63  ;;  %v4579_v50 = vcombine.high %v2118_v44, %v2122_v45  ;;  %v2126_v53 = vld [vmem:[%s6230_s22 + $0x258] sm:$0xff] }
 0x699   : > { %v2138_v62 = vld [vmem:[%s6230_s22 + $0x2b8] sm:$0xff] }
 0x69b   : > { %2891 = vmatpush1.bf16.msra.mxu1 %v4622_v10  ;;  %v2086_v10 = vld [vmem:[%s6230_s22 + $0x118] sm:$0xff] }
 0x69c   : > { %2892 = vmatprep.subr.bf16.mxu1 %v4631_v12  ;;  %v4536_v12 = vcombine.low %v2077_v60, %v2081_v61  ;;  %v2137_v60 = vld [vmem:[%s6230_s22 + $0x2b0] sm:$0xff]  ;;  %v2134_v61 = vld [vmem:[%s6230_s22 + $0x298] sm:$0xff] }
 0x69f   : > { %2893 = vmatpush1.bf16.msra.mxu1 %v4630_v14  ;;  %v4545_v14 = vcombine.high %v2085_v7, %v2089_v8 }
 0x735   : > { %v2000_v18 = vpop.f32.mrb[16].mxu1 }
 0x736   : > { %v6537_v20 = vadd.f32 %v5302_v19, %v2000_v18  ;;  %v2002_v26 = vpop.f32.mrb[17].mxu1  ;;  %v2058_v18 = vld [vmem:[%s6230_s22 + $0x38] sm:$0xff]  ;;  %v4512_v19 = vcombine.low %v2053_v15, %v2057_v16  ;;  %v4547_v15 = vcombine.high %v2086_v10, %v2090_v11  ;;  %v2093_v16 = vld [vmem:[%s6230_s22 + $0x150] sm:$0xff] }
 0x737   : > { %v6539_v22 = vadd.f32 %v5303_v21, %v2002_v26  ;;  %v2004_v23 = vpop.f32.mrb[18].mxu1  ;;  %v4514_v26 = vcombine.low %v2054_v17, %v2058_v18  ;;  %v4515_v21 = vcombine.high %v2054_v17, %v2058_v18  ;;  %v2097_v17 = vld [vmem:[%s6230_s22 + $0x170] sm:$0xff]  ;;  %v2098_v18 = vld [vmem:[%s6230_s22 + $0x178] sm:$0xff] }
 0x738   : > { %v6541_v29 = vadd.f32 %v5304_v25, %v2004_v23  ;;  %v2006_v30 = vpop.f32.mrb[19].mxu1  ;;  %v2014_v31 = vmul.f32 %v6537_v20, %v6537_v20 }
 0x739   : > { %v6545_v33 = vadd.f32 %v5305_v32, %v2006_v30  ;;  %v2015_v34 = vmul.f32 %v6539_v22, %v6539_v22  ;;  %2948 = vmatprep.subr.bf16.mxu1 %v4515_v21  ;;  %v4553_v21 = vcombine.high %v2093_v16, %v2097_v17 }
 0x73a   : > { %v2016_v35 = vmul.f32 %v6541_v29, %v6541_v29 }
 0x73b   : > { %v2018_v36 = vadd.f32 %v2015_v34, %v2014_v31  ;;  %v2017_v37 = vmul.f32 %v6545_v33, %v6545_v33 }
 0x73d   : > { %2019 = vadd.xlane.f32.xlu0 %v2018_v36  ;;  %v2021_v38 = vadd.f32 %v2017_v37, %v2016_v35  ;;  %v2013_v35 = vld [vmem:[%s6252_s15] sm:$0x3] }
 0x73e   : > { %v2038_v40 = vrot.slane %v2013_v35, %v6348_v28 }
 0x73f   : > { %2022 = vadd.xlane.f32.xlu1 %v2021_v38  ;;  %v2042_v38 = vrot.slane %v2013_v35, %v6345_v27  ;;  %v4554_v35 = vcombine.low %v2094_v24, %v2098_v18 }
 0x7ca   : > { %v2020_v23 = vpop.xlane.xlu0 %2019 }
 0x7cb   : > { %v2024_v25 = vmul.f32 0.00390625, %v2020_v23  ;;  %v4555_v23 = vcombine.high %v2094_v24, %v2098_v18  ;;  %v2154_v24 = vld [vmem:[%s6230_s22 + $0x338] sm:$0xff] }
 0x7cc   : > { %v2023_v30 = vpop.xlane.xlu1 %2022 }
 0x7cd   : > { %v2026_v31 = vadd.f32 1e-05, %v2024_v25  ;;  %v2025_v32 = vmul.f32 0.00390625, %v2023_v30  ;;  %v2101_v25 = vld [vmem:[%s6230_s22 + $0x190] sm:$0xff] }
 0x7ce   : > { %v2105_v30 = vld [vmem:[%s6230_s22 + $0x1b0] sm:$0xff] }
 0x7cf   : > { %5266 = vrsqrt.f32 %v2026_v31  ;;  %v2027_v34 = vadd.f32 1e-05, %v2025_v32  ;;  %v2102_v31 = vld [vmem:[%s6230_s22 + $0x198] sm:$0xff] }
 0x7d0   : > { %v2106_v32 = vld [vmem:[%s6230_s22 + $0x1b8] sm:$0xff] }
 0x7d1   : > { %5268 = vrsqrt.f32 %v2027_v34  ;;  %v4552_v34 = vcombine.low %v2093_v16, %v2097_v17  ;;  %v2153_v16 = vld [vmem:[%s6230_s22 + $0x330] sm:$0xff]  ;;  %v2150_v17 = vld [vmem:[%s6230_s22 + $0x318] sm:$0xff] }
 0x7d9   : > { %v5267_v36 = vpop.eup %5266 }
 0x7da   : > { %v2031_v37 = vmul.f32 %v5267_v36, %v6539_v22  ;;  %v2030_v39 = vmul.f32 %v5267_v36, %v6537_v20  ;;  %v4561_v36 = vcombine.high %v2101_v25, %v2105_v30 }
 0x7db   : > { %v5269_v41 = vpop.eup %5268 }
 0x7dc   : > { %v2033_v42 = vmul.f32 %v5269_v41, %v6545_v33  ;;  %v2032_v5 = vmul.f32 %v5269_v41, %v6541_v29  ;;  %v2046_v43 = vmul.f32 %v2042_v38, %v2031_v37  ;;  %v2045_v6 = vmul.f32 %v2038_v40, %v2030_v39  ;;  %v2113_v39 = vld [vmem:[%s6230_s22 + $0x1f0] sm:$0xff]  ;;  %v2114_v41 = vld [vmem:[%s6230_s22 + $0x1f8] sm:$0xff] }
 0x7dd   : > { %v4563_v37 = vcombine.high %v2102_v31, %v2106_v32 }
 0x7de   : > { %v2048_v4 = vmul.f32 %v2042_v38, %v2033_v42  ;;  %v2047_v9 = vmul.f32 %v2038_v40, %v2032_v5  ;;  %v2109_v38 = vld [vmem:[%s6230_s22 + $0x1d0] sm:$0xff]  ;;  %v2110_v40 = vld [vmem:[%s6230_s22 + $0x1d8] sm:$0xff]  ;;  %v4560_v42 = vcombine.low %v2101_v25, %v2105_v30  ;;  %v4562_v5 = vcombine.low %v2102_v31, %v2106_v32 }
 0x7df   : > { %v4568_v46 = vcombine.low %v2109_v38, %v2113_v39  ;;  %v4570_v47 = vcombine.low %v2110_v40, %v2114_v41  ;;  %v2161_v25 = vld [vmem:[%s6230_s22 + $0x370] sm:$0xff]  ;;  %v2158_v30 = vld [vmem:[%s6230_s22 + $0x358] sm:$0xff] }
 0x7e0   : > { %v2050_v48 = vpack.c.bf16 %v2048_v4, %v2046_v43  ;;  %v6588_v49 = vpack.c.bf16 %v2047_v9, %v2045_v6  ;;  %v4569_v43 = vcombine.high %v2109_v38, %v2113_v39  ;;  %v4571_v4 = vcombine.high %v2110_v40, %v2114_v41  ;;  %v2117_v6 = vld [vmem:[%s6230_s22 + $0x210] sm:$0xff]  ;;  %v2162_v31 = vld [vmem:[%s6230_s22 + $0x378] sm:$0xff] }
 0x7e1   : > { %v2121_v9 = vld [vmem:[%s6230_s22 + $0x230] sm:$0xff]  ;;  %v2166_v39 = vld [vmem:[%s6230_s22 + $0x398] sm:$0xff] }
 0x7e2   : > { %2851 = vmatprep.mubr.bf16.mxu0 %v2050_v48  ;;  %2894 = vmatprep.mubr.bf16.mxu1 %v2050_v48  ;;  %v4576_v55 = vcombine.low %v2117_v6, %v2121_v9  ;;  %v2169_v38 = vld [vmem:[%s6230_s22 + $0x3b0] sm:$0xff]  ;;  %v2170_v40 = vld [vmem:[%s6230_s22 + $0x3b8] sm:$0xff] }
 0x7e3   : > { %2852 = vmatmul.mubr.bf16.vlgmr.msra.gmra.mrb[12].mxu0 %v6588_v49  ;;  %2895 = vmatmul.mubr.bf16.vlgmr.msra.gmra.mrb[20].mxu1 %v6588_v49 }
 0x7e4   : > { %2906 = vmatpush1.bf16.msra.mxu0 %v4512_v19  ;;  %2949 = vmatpush1.bf16.msra.mxu1 %v4514_v26  ;;  %v4544_v19 = vcombine.low %v2085_v7, %v2089_v8  ;;  %v4546_v26 = vcombine.low %v2086_v10, %v2090_v11  ;;  %v2145_v7 = vld [vmem:[%s6230_s22 + $0x2f0] sm:$0xff]  ;;  %v2142_v8 = vld [vmem:[%s6230_s22 + $0x2d8] sm:$0xff] }
 0x7e5   : > { %2937 = vmatprep.mubr.bf16.mxu0 %v2050_v48  ;;  %2980 = vmatprep.mubr.bf16.mxu1 %v2050_v48  ;;  %v4577_v48 = vcombine.high %v2117_v6, %v2121_v9  ;;  %v2146_v10 = vld [vmem:[%s6230_s22 + $0x2f8] sm:$0xff]  ;;  %v2177_v6 = vld [vmem:[%s6230_s22 + $0x3f0] sm:$0xff] }
 0x7e6   : > { %2907 = vmatprep.subr.bf16.mxu0 %v4521_v51  ;;  %2950 = vmatprep.subr.bf16.mxu1 %v4523_v52  ;;  %v2125_v51 = vld [vmem:[%s6230_s22 + $0x250] sm:$0xff]  ;;  %v2174_v9 = vld [vmem:[%s6230_s22 + $0x3d8] sm:$0xff] }
 0x7e7   : > { %v2129_v52 = vld [vmem:[%s6230_s22 + $0x270] sm:$0xff] }
 0x7e8   : > { %2908 = vmatpush1.bf16.msra.mxu0 %v4520_v56  ;;  %2951 = vmatpush1.bf16.msra.mxu1 %v4522_v57  ;;  %v4578_v56 = vcombine.low %v2118_v44, %v2122_v45  ;;  %v4585_v57 = vcombine.high %v2125_v51, %v2129_v52  ;;  %v4584_v63 = vcombine.low %v2125_v51, %v2129_v52  ;;  %v2178_v44 = vld [vmem:[%s6230_s22 + $0x3f8] sm:$0xff]  ;;  %v5152_v52 = vld [vmem:[%s6236_s4 + $0x4] ss:$8 sps:$4 sm:$0xff]  }
 0x7e9   : > { %2909 = vmatprep.subr.bf16.mxu0 %v4529_v58  ;;  %2952 = vmatprep.subr.bf16.mxu1 %v4531_v59  ;;  %v4587_v58 = vcombine.high %v2126_v53, %v2130_v54  ;;  %v2133_v59 = vld [vmem:[%s6230_s22 + $0x290] sm:$0xff]  ;;  %v4634_v51 = vcombine.low %v2174_v9, %v2178_v44 }
 0x7ea   : > { %v4592_v11 = vcombine.low %v2133_v59, %v2137_v60 }
 0x7ec   : > { %2910 = vmatpush1.bf16.msra.mxu0 %v4528_v0  ;;  %2953 = vmatpush1.bf16.msra.mxu1 %v4530_v1  ;;  %v4586_v0 = vcombine.low %v2126_v53, %v2130_v54  ;;  %v4593_v1 = vcombine.high %v2133_v59, %v2137_v60  ;;  %v5150_v53 = vld [vmem:[%s6236_s4] ss:$8 sps:$4 sm:$0xff]   ;;  %v5155_v54 = vld [vmem:[%s6236_s4 + $0x14] ss:$8 sps:$4 sm:$0xff]   ;;  %v5164_v59 = vld [vmem:[%s6236_s4 + $0x44] ss:$8 sps:$4 sm:$0xff]  }
 0x7ed   : > { %2911 = vmatprep.subr.bf16.mxu0 %v4537_v2  ;;  %2954 = vmatprep.subr.bf16.mxu1 %v4539_v3  ;;  %v4595_v2 = vcombine.high %v2134_v61, %v2138_v62  ;;  %v2141_v3 = vld [vmem:[%s6230_s22 + $0x2d0] sm:$0xff]  ;;  %v5162_v60 = vld [vmem:[%s6236_s4 + $0x40] ss:$8 sps:$4 sm:$0xff]  }
 0x7ee   : > { %v4600_v18 = vcombine.low %v2141_v3, %v2145_v7 }
 0x7f0   : > { %2912 = vmatpush1.bf16.msra.mxu0 %v4536_v12  ;;  %2955 = vmatpush1.bf16.msra.mxu1 %v4538_v13  ;;  %v4594_v12 = vcombine.low %v2134_v61, %v2138_v62  ;;  %v4601_v13 = vcombine.high %v2141_v3, %v2145_v7  ;;  %v5167_v61 = vld [vmem:[%s6236_s4 + $0x54] ss:$8 sps:$4 sm:$0xff]   ;;  %v5165_v62 = vld [vmem:[%s6236_s4 + $0x50] ss:$8 sps:$4 sm:$0xff]   ;;  %v5176_v3 = vld [vmem:[%s6236_s4 + $0x84] ss:$8 sps:$4 sm:$0xff]  }
 0x7f1   : > { %2913 = vmatprep.subr.bf16.mxu0 %v4545_v14  ;;  %2956 = vmatprep.subr.bf16.mxu1 %v4547_v15  ;;  %v4603_v14 = vcombine.high %v2142_v8, %v2146_v10  ;;  %v2149_v15 = vld [vmem:[%s6230_s22 + $0x310] sm:$0xff]  ;;  %v5174_v7 = vld [vmem:[%s6236_s4 + $0x80] ss:$8 sps:$4 sm:$0xff]  }
 0x7f2   : > { %v4608_v32 = vcombine.low %v2149_v15, %v2153_v16 }
 0x7f4   : > { %2914 = vmatpush1.bf16.msra.mxu0 %v4544_v19  ;;  %2957 = vmatpush1.bf16.msra.mxu1 %v4546_v26  ;;  %v4602_v19 = vcombine.low %v2142_v8, %v2146_v10  ;;  %v4609_v26 = vcombine.high %v2149_v15, %v2153_v16  ;;  %v5179_v8 = vld [vmem:[%s6236_s4 + $0x94] ss:$8 sps:$4 sm:$0xff]   ;;  %v5177_v10 = vld [vmem:[%s6236_s4 + $0x90] ss:$8 sps:$4 sm:$0xff]   ;;  %v5188_v15 = vld [vmem:[%s6236_s4 + $0xc4] ss:$8 sps:$4 sm:$0xff]  }
 0x7f5   : > { %2915 = vmatprep.subr.bf16.mxu0 %v4553_v21  ;;  %2958 = vmatprep.subr.bf16.mxu1 %v4555_v23  ;;  %v4611_v21 = vcombine.high %v2150_v17, %v2154_v24  ;;  %v2157_v23 = vld [vmem:[%s6230_s22 + $0x350] sm:$0xff]  ;;  %v5186_v16 = vld [vmem:[%s6236_s4 + $0xc0] ss:$8 sps:$4 sm:$0xff]  }
 0x7f6   : > { %v4616_v41 = vcombine.low %v2157_v23, %v2161_v25 }
 0x7f8   : > { %2916 = vmatpush1.bf16.msra.mxu0 %v4552_v34  ;;  %2959 = vmatpush1.bf16.msra.mxu1 %v4554_v35  ;;  %v4610_v34 = vcombine.low %v2150_v17, %v2154_v24  ;;  %v4617_v35 = vcombine.high %v2157_v23, %v2161_v25  ;;  %v5191_v17 = vld [vmem:[%s6236_s4 + $0xd4] ss:$8 sps:$4 sm:$0xff]   ;;  %v5189_v24 = vld [vmem:[%s6236_s4 + $0xd0] ss:$8 sps:$4 sm:$0xff]   ;;  %v5200_v23 = vld [vmem:[%s6236_s4 + $0x104] ss:$8 sps:$4 sm:$0xff]  }
 0x7f9   : > { %2917 = vmatprep.subr.bf16.mxu0 %v4561_v36  ;;  %2960 = vmatprep.subr.bf16.mxu1 %v4563_v37  ;;  %v4619_v36 = vcombine.high %v2158_v30, %v2162_v31  ;;  %v2165_v37 = vld [vmem:[%s6230_s22 + $0x390] sm:$0xff] }
 0x7fa   : > { %v4624_v45 = vcombine.low %v2165_v37, %v2169_v38 }
 0x7fc   : > { %2918 = vmatpush1.bf16.msra.mxu0 %v4560_v42  ;;  %2961 = vmatpush1.bf16.msra.mxu1 %v4562_v5  ;;  %v4618_v42 = vcombine.low %v2158_v30, %v2162_v31  ;;  %v4625_v5 = vcombine.high %v2165_v37, %v2169_v38 }
 0x7fd   : > { %2919 = vmatprep.subr.bf16.mxu0 %v4569_v43  ;;  %2962 = vmatprep.subr.bf16.mxu1 %v4571_v4  ;;  %v4627_v43 = vcombine.high %v2166_v39, %v2170_v40  ;;  %v2173_v4 = vld [vmem:[%s6230_s22 + $0x3d0] sm:$0xff] }
 0x800   : > { %2920 = vmatpush1.bf16.msra.mxu0 %v4568_v46  ;;  %2963 = vmatpush1.bf16.msra.mxu1 %v4570_v47  ;;  %v4626_v46 = vcombine.low %v2166_v39, %v2170_v40  ;;  %v4633_v47 = vcombine.high %v2173_v4, %v2177_v6 }
 0x801   : > { %2921 = vmatprep.subr.bf16.mxu0 %v4577_v48  ;;  %2964 = vmatprep.subr.bf16.mxu1 %v4579_v50  ;;  %v4635_v48 = vcombine.high %v2174_v9, %v2178_v44  ;;  %v4632_v50 = vcombine.low %v2173_v4, %v2177_v6 }
 0x804   : > { %2922 = vmatpush1.bf16.msra.mxu0 %v4576_v55  ;;  %2965 = vmatpush1.bf16.msra.mxu1 %v4578_v56  ;;  %v5153_v55 = vld [vmem:[%s6236_s4 + $0x10] ss:$8 sps:$4 sm:$0xff]   ;;  %v5158_v56 = vld [vmem:[%s6236_s4 + $0x24] ss:$8 sps:$4 sm:$0xff]  }
 0x805   : > { %2923 = vmatprep.subr.bf16.mxu0 %v4585_v57  ;;  %2966 = vmatprep.subr.bf16.mxu1 %v4587_v58  ;;  %v5156_v57 = vld [vmem:[%s6236_s4 + $0x20] ss:$8 sps:$4 sm:$0xff]   ;;  %v5159_v58 = vld [vmem:[%s6236_s4 + $0x30] ss:$8 sps:$4 sm:$0xff]  }
 0x808   : > { %2924 = vmatpush1.bf16.msra.mxu0 %v4584_v63  ;;  %2967 = vmatpush1.bf16.msra.mxu1 %v4586_v0  ;;  %v5170_v63 = vld [vmem:[%s6236_s4 + $0x64] ss:$8 sps:$4 sm:$0xff]   ;;  %v5168_v0 = vld [vmem:[%s6236_s4 + $0x60] ss:$8 sps:$4 sm:$0xff]  }
 0x809   : > { %2925 = vmatprep.subr.bf16.mxu0 %v4593_v1  ;;  %2968 = vmatprep.subr.bf16.mxu1 %v4595_v2  ;;  %v5173_v1 = vld [vmem:[%s6236_s4 + $0x74] ss:$8 sps:$4 sm:$0xff]   ;;  %v5171_v2 = vld [vmem:[%s6236_s4 + $0x70] ss:$8 sps:$4 sm:$0xff]  }
 0x80c   : > { %2926 = vmatpush1.bf16.msra.mxu0 %v4592_v11  ;;  %2969 = vmatpush1.bf16.msra.mxu1 %v4594_v12  ;;  %v5182_v11 = vld [vmem:[%s6236_s4 + $0xa4] ss:$8 sps:$4 sm:$0xff]   ;;  %v5180_v12 = vld [vmem:[%s6236_s4 + $0xa0] ss:$8 sps:$4 sm:$0xff]  }
 0x80d   : > { %2927 = vmatprep.subr.bf16.mxu0 %v4601_v13  ;;  %2970 = vmatprep.subr.bf16.mxu1 %v4603_v14  ;;  %v5185_v13 = vld [vmem:[%s6236_s4 + $0xb4] ss:$8 sps:$4 sm:$0xff]   ;;  %v5183_v14 = vld [vmem:[%s6236_s4 + $0xb0] ss:$8 sps:$4 sm:$0xff]  }
 0x810   : > { %2928 = vmatpush1.bf16.msra.mxu0 %v4600_v18  ;;  %2971 = vmatpush1.bf16.msra.mxu1 %v4602_v19  ;;  %v5192_v18 = vld [vmem:[%s6236_s4 + $0xe0] ss:$8 sps:$4 sm:$0xff]   ;;  %v5194_v19 = vld [vmem:[%s6236_s4 + $0xe4] ss:$8 sps:$4 sm:$0xff]  }
 0x811   : > { %2929 = vmatprep.subr.bf16.mxu0 %v4609_v26  ;;  %2972 = vmatprep.subr.bf16.mxu1 %v4611_v21  ;;  %v5197_v26 = vld [vmem:[%s6236_s4 + $0xf4] ss:$8 sps:$4 sm:$0xff]   ;;  %v5195_v21 = vld [vmem:[%s6236_s4 + $0xf0] ss:$8 sps:$4 sm:$0xff]  }
 0x814   : > { %2930 = vmatpush1.bf16.msra.mxu0 %v4608_v32  ;;  %2973 = vmatpush1.bf16.msra.mxu1 %v4610_v34 }
 0x815   : > { %2931 = vmatprep.subr.bf16.mxu0 %v4617_v35  ;;  %2974 = vmatprep.subr.bf16.mxu1 %v4619_v36 }
 0x818   : > { %2932 = vmatpush1.bf16.msra.mxu0 %v4616_v41  ;;  %2975 = vmatpush1.bf16.msra.mxu1 %v4618_v42 }
 0x819   : > { %2933 = vmatprep.subr.bf16.mxu0 %v4625_v5  ;;  %2976 = vmatprep.subr.bf16.mxu1 %v4627_v43 }
 0x81c   : > { %2934 = vmatpush1.bf16.msra.mxu0 %v4624_v45  ;;  %2977 = vmatpush1.bf16.msra.mxu1 %v4626_v46 }
 0x81d   : > { %2935 = vmatprep.subr.bf16.mxu0 %v4633_v47  ;;  %2978 = vmatprep.subr.bf16.mxu1 %v4635_v48 }
 0x820   : > { %2936 = vmatpush1.bf16.msra.mxu0 %v4632_v50  ;;  %2979 = vmatpush1.bf16.msra.mxu1 %v4634_v51 }
 0x821   : > { %3443 = vmatprep.subr.bf16.mxu0 %v5152_v52 }
 0x823   : > { %2938 = vmatmul.mubr.bf16.vlgmr.msra.gmra.mrb[16].mxu0 %v6588_v49  ;;  %2981 = vmatmul.mubr.bf16.vlgmr.msra.gmra.mrb[24].mxu1 %v6588_v49  ;;  %v5161_v49 = vld [vmem:[%s6236_s4 + $0x34] ss:$8 sps:$4 sm:$0xff]  }
 0x824   : > { %3444 = vmatpush1.bf16.msra.mxu0 %v5150_v53 }
 0x825   : > { %3445 = vmatprep.subr.bf16.mxu0 %v5155_v54 }
 0x828   : > { %3446 = vmatpush1.bf16.msra.mxu0 %v5153_v55 }
 0x829   : > { %3447 = vmatprep.subr.bf16.mxu0 %v5158_v56 }
 0x82c   : > { %3448 = vmatpush1.bf16.msra.mxu0 %v5156_v57 }
 0x82d   : > { %3449 = vmatprep.subr.bf16.mxu0 %v5161_v49 }
 0x830   : > { %3450 = vmatpush1.bf16.msra.mxu0 %v5159_v58 }
 0x831   : > { %3451 = vmatprep.subr.bf16.mxu0 %v5164_v59 }
 0x834   : > { %3452 = vmatpush1.bf16.msra.mxu0 %v5162_v60 }
 0x835   : > { %3453 = vmatprep.subr.bf16.mxu0 %v5167_v61 }
 0x838   : > { %3454 = vmatpush1.bf16.msra.mxu0 %v5165_v62 }
 0x839   : > { %3455 = vmatprep.subr.bf16.mxu0 %v5170_v63 }
 0x83c   : > { %3456 = vmatpush1.bf16.msra.mxu0 %v5168_v0 }
 0x83d   : > { %3457 = vmatprep.subr.bf16.mxu0 %v5173_v1 }
 0x840   : > { %3458 = vmatpush1.bf16.msra.mxu0 %v5171_v2 }
 0x841   : > { %3459 = vmatprep.subr.bf16.mxu0 %v5176_v3 }
 0x844   : > { %3460 = vmatpush1.bf16.msra.mxu0 %v5174_v7 }
 0x845   : > { %3461 = vmatprep.subr.bf16.mxu0 %v5179_v8 }
 0x848   : > { %3462 = vmatpush1.bf16.msra.mxu0 %v5177_v10 }
 0x849   : > { %3463 = vmatprep.subr.bf16.mxu0 %v5182_v11 }
 0x84c   : > { %3464 = vmatpush1.bf16.msra.mxu0 %v5180_v12 }
 0x84d   : > { %3465 = vmatprep.subr.bf16.mxu0 %v5185_v13 }
 0x850   : > { %3466 = vmatpush1.bf16.msra.mxu0 %v5183_v14 }
 0x851   : > { %3467 = vmatprep.subr.bf16.mxu0 %v5188_v15 }
 0x854   : > { %3468 = vmatpush1.bf16.msra.mxu0 %v5186_v16 }
 0x855   : > { %3469 = vmatprep.subr.bf16.mxu0 %v5191_v17 }
 0x858   : > { %3470 = vmatpush1.bf16.msra.mxu0 %v5189_v24 }
 0x859   : > { %3471 = vmatprep.subr.bf16.mxu0 %v5194_v19 }
 0x85c   : > { %3472 = vmatpush1.bf16.msra.mxu0 %v5192_v18 }
 0x85d   : > { %3473 = vmatprep.subr.bf16.mxu0 %v5197_v26 }
 0x860   : > { %3474 = vmatpush1.bf16.msra.mxu0 %v5195_v21 }
 0x861   : > { %3486 = vmatprep.subr.bf16.mxu0 %v5200_v23 }
 0x8b6   : > { %v2853_v25 = vpop.f32.mrb[12].mxu0  ;;  %v2896_v30 = vpop.f32.mrb[20].mxu1 }
 0x8b7   : > { %v2855_v31 = vpop.f32.mrb[13].mxu0  ;;  %v2898_v32 = vpop.f32.mrb[21].mxu1  ;;  %v4636_v38 = vmul.f32 -1.442695, %v2853_v25  ;;  %v4638_v39 = vmul.f32 -1.442695, %v2896_v30 }
 0x8b8   : > { %v2857_v34 = vpop.f32.mrb[14].mxu0  ;;  %v2900_v35 = vpop.f32.mrb[22].mxu1  ;;  %v4637_v40 = vmul.f32 -1.442695, %v2855_v31  ;;  %v4639_v41 = vmul.f32 -1.442695, %v2898_v32 }
 0x8b9   : > { %v2859_v36 = vpop.f32.mrb[15].mxu0  ;;  %v2902_v37 = vpop.f32.mrb[23].mxu1  ;;  %5270 = vpow2.f32 %v4636_v38  ;;  %v4640_v42 = vmul.f32 -1.442695, %v2857_v34  ;;  %v4642_v5 = vmul.f32 -1.442695, %v2900_v35 }
 0x8ba   : > { %5272 = vpow2.f32 %v4638_v39  ;;  %v4641_v43 = vmul.f32 -1.442695, %v2859_v36  ;;  %v4643_v4 = vmul.f32 -1.442695, %v2902_v37 }
 0x8bb   : > { %5274 = vpow2.f32 %v4637_v40  ;;  %v5198_v40 = vld [vmem:[%s6236_s4 + $0x100] ss:$8 sps:$4 sm:$0xff]  }
 0x8bc   : > { %5276 = vpow2.f32 %v4639_v41  ;;  %v5203_v41 = vld [vmem:[%s6236_s4 + $0x114] ss:$8 sps:$4 sm:$0xff]  }
 0x8bd   : > { %5278 = vpow2.f32 %v4640_v42  ;;  %v5201_v42 = vld [vmem:[%s6236_s4 + $0x110] ss:$8 sps:$4 sm:$0xff]  }
 0x8be   : > { %5280 = vpow2.f32 %v4642_v5  ;;  %v5206_v5 = vld [vmem:[%s6236_s4 + $0x124] ss:$8 sps:$4 sm:$0xff]  }
 0x8bf   : > { %5282 = vpow2.f32 %v4641_v43  ;;  %v5204_v43 = vld [vmem:[%s6236_s4 + $0x120] ss:$8 sps:$4 sm:$0xff]  }
 0x8c0   : > { %5284 = vpow2.f32 %v4643_v4  ;;  %v5209_v4 = vld [vmem:[%s6236_s4 + $0x134] ss:$8 sps:$4 sm:$0xff]  }
 0x8c3   : > { %v5271_v6 = vpop.eup %5270 }
 0x8c4   : > { %v5273_v9 = vpop.eup %5272  ;;  %v3015_v46 = vadd.f32 1.0, %v5271_v6  ;;  %v5207_v6 = vld [vmem:[%s6236_s4 + $0x130] ss:$8 sps:$4 sm:$0xff]  }
 0x8c5   : > { %v5275_v44 = vpop.eup %5274  ;;  %v3017_v48 = vadd.f32 1.0, %v5273_v9  ;;  %v5212_v9 = vld [vmem:[%s6236_s4 + $0x144] ss:$8 sps:$4 sm:$0xff]  }
 0x8c6   : > { %v5277_v45 = vpop.eup %5276  ;;  %v3016_v51 = vadd.f32 1.0, %v5275_v44  ;;  %5286 = vrcp.f32 %v3015_v46  ;;  %v5210_v44 = vld [vmem:[%s6236_s4 + $0x140] ss:$8 sps:$4 sm:$0xff]   ;;  %v5213_v46 = vld [vmem:[%s6236_s4 + $0x150] ss:$8 sps:$4 sm:$0xff]  }
 0x8c7   : > { %v5279_v47 = vpop.eup %5278  ;;  %v3018_v53 = vadd.f32 1.0, %v5277_v45  ;;  %5288 = vrcp.f32 %v3017_v48  ;;  %v5215_v45 = vld [vmem:[%s6236_s4 + $0x154] ss:$8 sps:$4 sm:$0xff]   ;;  %v5216_v48 = vld [vmem:[%s6236_s4 + $0x160] ss:$8 sps:$4 sm:$0xff]  }
 0x8c8   : > { %v5281_v50 = vpop.eup %5280  ;;  %v3019_v55 = vadd.f32 1.0, %v5279_v47  ;;  %5290 = vrcp.f32 %v3016_v51  ;;  %v5218_v47 = vld [vmem:[%s6236_s4 + $0x164] ss:$8 sps:$4 sm:$0xff]   ;;  %v5219_v51 = vld [vmem:[%s6236_s4 + $0x170] ss:$8 sps:$4 sm:$0xff]  }
 0x8c9   : > { %v5283_v52 = vpop.eup %5282  ;;  %v3021_v56 = vadd.f32 1.0, %v5281_v50  ;;  %5292 = vrcp.f32 %v3018_v53  ;;  %v5221_v50 = vld [vmem:[%s6236_s4 + $0x174] ss:$8 sps:$4 sm:$0xff]   ;;  %v5222_v53 = vld [vmem:[%s6236_s4 + $0x180] ss:$8 sps:$4 sm:$0xff]  }
 0x8ca   : > { %v5285_v54 = vpop.eup %5284  ;;  %v3020_v57 = vadd.f32 1.0, %v5283_v52  ;;  %5294 = vrcp.f32 %v3019_v55  ;;  %v5224_v52 = vld [vmem:[%s6236_s4 + $0x184] ss:$8 sps:$4 sm:$0xff]   ;;  %v5225_v55 = vld [vmem:[%s6236_s4 + $0x190] ss:$8 sps:$4 sm:$0xff]  }
 0x8cb   : > { %v3022_v49 = vadd.f32 1.0, %v5285_v54  ;;  %5296 = vrcp.f32 %v3021_v56  ;;  %v5227_v54 = vld [vmem:[%s6236_s4 + $0x194] ss:$8 sps:$4 sm:$0xff]   ;;  %v5230_v56 = vld [vmem:[%s6236_s4 + $0x1a4] ss:$8 sps:$4 sm:$0xff]  }
 0x8cc   : > { %5298 = vrcp.f32 %v3020_v57  ;;  %v5228_v57 = vld [vmem:[%s6236_s4 + $0x1a0] ss:$8 sps:$4 sm:$0xff]  }
 0x8cd   : > { %5300 = vrcp.f32 %v3022_v49  ;;  %v5233_v49 = vld [vmem:[%s6236_s4 + $0x1b4] ss:$8 sps:$4 sm:$0xff]  }
 0x8d0   : > { %v5287_v58 = vpop.eup %5286 }
 0x8d1   : > { %v5289_v59 = vpop.eup %5288  ;;  %v3039_v2 = vmul.f32 %v5287_v58, %v2853_v25  ;;  %v5231_v58 = vld [vmem:[%s6236_s4 + $0x1b0] ss:$8 sps:$4 sm:$0xff]  }
 0x8d2   : > { %v5291_v60 = vpop.eup %5290  ;;  %v3041_v3 = vmul.f32 %v5289_v59, %v2896_v30  ;;  %v5236_v59 = vld [vmem:[%s6236_s4 + $0x1c4] ss:$8 sps:$4 sm:$0xff]  }
 0x8d3   : > { %v5293_v61 = vpop.eup %5292  ;;  %v3040_v7 = vmul.f32 %v5291_v60, %v2855_v31  ;;  %v5234_v60 = vld [vmem:[%s6236_s4 + $0x1c0] ss:$8 sps:$4 sm:$0xff]  }
 0x8d4   : > { %v5295_v62 = vpop.eup %5294  ;;  %v3042_v8 = vmul.f32 %v5293_v61, %v2898_v32  ;;  %v5239_v61 = vld [vmem:[%s6236_s4 + $0x1d4] ss:$8 sps:$4 sm:$0xff]  }
 0x8d5   : > { %v5297_v63 = vpop.eup %5296  ;;  %v3043_v12 = vmul.f32 %v5295_v62, %v2857_v34  ;;  %v5237_v62 = vld [vmem:[%s6236_s4 + $0x1d0] ss:$8 sps:$4 sm:$0xff]  }
 0x8d6   : > { %v5299_v0 = vpop.eup %5298  ;;  %v3045_v13 = vmul.f32 %v5297_v63, %v2900_v35  ;;  %v5242_v63 = vld [vmem:[%s6236_s4 + $0x1e4] ss:$8 sps:$4 sm:$0xff]  }
 0x8d7   : > { %v5301_v1 = vpop.eup %5300  ;;  %v3044_v24 = vmul.f32 %v5299_v0, %v2859_v36  ;;  %v5240_v0 = vld [vmem:[%s6236_s4 + $0x1e0] ss:$8 sps:$4 sm:$0xff]  }
 0x8d8   : > { %v3046_v18 = vmul.f32 %v5301_v1, %v2902_v37  ;;  %v5245_v1 = vld [vmem:[%s6236_s4 + $0x1f4] ss:$8 sps:$4 sm:$0xff]  }
 0x8f6   : > { %v2939_v10 = vpop.f32.mrb[16].mxu0  ;;  %v2982_v11 = vpop.f32.mrb[24].mxu1 }
 0x8f7   : > { %v3047_v14 = vmul.f32 %v3039_v2, %v2939_v10  ;;  %v6683_v15 = vmul.f32 %v3041_v3, %v2982_v11  ;;  %v2941_v16 = vpop.f32.mrb[17].mxu0  ;;  %v2984_v17 = vpop.f32.mrb[25].mxu1  ;;  %v5243_v2 = vld [vmem:[%s6236_s4 + $0x1f0] ss:$8 sps:$4 sm:$0xff]  }
 0x8f8   : > { %v3048_v19 = vmul.f32 %v3040_v7, %v2941_v16  ;;  %v3050_v26 = vmul.f32 %v3042_v8, %v2984_v17  ;;  %v2943_v21 = vpop.f32.mrb[18].mxu0  ;;  %v2986_v23 = vpop.f32.mrb[26].mxu1  ;;  %v5308_v16 = vld [vmem:[#allocation15 + $0xc] ss:$16 sps:$4 sm:$0xff] (!%p4708_p5)  }
 0x8f9   : > { %v3051_v25 = vmul.f32 %v3043_v12, %v2943_v21  ;;  %v6685_v30 = vmul.f32 %v3045_v13, %v2986_v23  ;;  %v2945_v31 = vpop.f32.mrb[19].mxu0  ;;  %v2988_v32 = vpop.f32.mrb[27].mxu1  ;;  %4006 = vmatprep.subr.bf16.mxu1 (!%p4708_p5), %v5308_v16  ;;  %v5314_v21 = vld [vmem:[#allocation15 + $0x2c] ss:$16 sps:$4 sm:$0xff] (!%p4708_p5)   ;;  %v5316_v23 = vld [vmem:[#allocation15 + $0x20] ss:$16 sps:$4 sm:$0xff] (!%p4708_p5)  }
 0x8fa   : > { %v3052_v34 = vmul.f32 %v3044_v24, %v2945_v31  ;;  %v3054_v35 = vmul.f32 %v3046_v18, %v2988_v32  ;;  %v5310_v24 = vld [vmem:[#allocation15] ss:$16 sps:$4 sm:$0xff] (!%p4708_p5)   ;;  %v5311_v18 = vld [vmem:[#allocation15 + $0x8] ss:$16 sps:$4 sm:$0xff] (!%p4708_p5)   ;;  %v5320_v31 = vld [vmem:[#allocation15 + $0x4c] ss:$16 sps:$4 sm:$0xff] (!%p4708_p5)  }
 0x8fb   : > { %v3055_v38 = vpack.c.bf16 %v3051_v25, %v3047_v14  ;;  %v3057_v36 = vpack.c.bf16 %v6685_v30, %v6683_v15  ;;  %v5306_v15 = vld [vmem:[#allocation15 + $0x4] ss:$16 sps:$4 sm:$0xff] (!%p4708_p5)   ;;  %4007 = vmatpush1.bf16.msra.mxu1 (!%p4708_p5), %v5311_v18  ;;  %v5317_v25 = vld [vmem:[#allocation15 + $0x28] ss:$16 sps:$4 sm:$0xff] (!%p4708_p5)   ;;  %v5322_v32 = vld [vmem:[#allocation15 + $0x40] ss:$16 sps:$4 sm:$0xff] (!%p4708_p5)  }
 0x8fc   : > { %v3056_v37 = vpack.c.bf16 %v3052_v34, %v3048_v19  ;;  %v3058_v39 = vpack.c.bf16 %v3054_v35, %v3050_v26  ;;  %v5312_v19 = vld [vmem:[#allocation15 + $0x24] ss:$16 sps:$4 sm:$0xff] (!%p4708_p5)   ;;  %4008 = vmatprep.subr.bf16.mxu1 (!%p4708_p5), %v5314_v21  ;;  %v5323_v34 = vld [vmem:[#allocation15 + $0x48] ss:$16 sps:$4 sm:$0xff] (!%p4708_p5)   ;;  %v5392_v16 = vld [vmem:[#allocation15 + $0x1cc] ss:$16 sps:$4 sm:$0xff] (!%p4708_p5)  }
 0x8fd   : > { %v5318_v30 = vld [vmem:[#allocation15 + $0x44] ss:$16 sps:$4 sm:$0xff] (!%p4708_p5)   ;;  %v5401_v21 = vld [vmem:[#allocation15 + $0x1e8] ss:$16 sps:$4 sm:$0xff] (!%p4708_p5)  }
 0x8fe   : > { %3475 = vmatprep.mubr.bf16.mxu0 %v3056_v37  ;;  %v5324_v35 = vld [vmem:[#allocation15 + $0x64] ss:$16 sps:$4 sm:$0xff] (!%p4708_p5)   ;;  %v5329_v37 = vld [vmem:[#allocation15 + $0x68] ss:$16 sps:$4 sm:$0xff] (!%p4708_p5)  }
 0x8ff   : > { %3476 = vmatmul.mubr.bf16.vlgmr.msra.gmra.mrb[20].mxu0 %v3055_v38  ;;  %4009 = vmatpush1.bf16.msra.mxu1 (!%p4708_p5), %v5317_v25  ;;  %v5326_v38 = vld [vmem:[#allocation15 + $0x6c] ss:$16 sps:$4 sm:$0xff] (!%p4708_p5)   ;;  %v5396_v18 = vld [vmem:[#allocation15 + $0x1e4] ss:$16 sps:$4 sm:$0xff] (!%p4708_p5)  }
 0x900   : > { %3487 = vmatpush1.bf16.msra.mxu0 %v5198_v40  ;;  %3518 = vmatprep.mubr.bf16.mxu0 %v3058_v39  ;;  %v5330_v39 = vld [vmem:[#allocation15 + $0x84] ss:$16 sps:$4 sm:$0xff] (!%p4708_p5)   ;;  %v5332_v40 = vld [vmem:[#allocation15 + $0x8c] ss:$16 sps:$4 sm:$0xff] (!%p4708_p5)  }
 0x901   : > { %3488 = vmatprep.subr.bf16.mxu0 %v5203_v41  ;;  %4010 = vmatprep.subr.bf16.mxu1 (!%p4708_p5), %v5320_v31  ;;  %v5334_v41 = vld [vmem:[#allocation15 + $0x80] ss:$16 sps:$4 sm:$0xff] (!%p4708_p5)  }
 0x903   : > { %4011 = vmatpush1.bf16.msra.mxu1 (!%p4708_p5), %v5323_v34 }
 0x904   : > { %3489 = vmatpush1.bf16.msra.mxu0 %v5201_v42  ;;  %4012 = vmatprep.subr.bf16.mxu1 (!%p4708_p5), %v5326_v38  ;;  %v5335_v42 = vld [vmem:[#allocation15 + $0x88] ss:$16 sps:$4 sm:$0xff] (!%p4708_p5)   ;;  %v3541_v38 = vld [vmem:[%s6963_s24] sm:$0x3] (!%p4708_p5) }
 0x905   : > { %3490 = vmatprep.subr.bf16.mxu0 %v5206_v5  ;;  %v5336_v5 = vld [vmem:[#allocation15 + $0xa4] ss:$16 sps:$4 sm:$0xff] (!%p4708_p5)  }
 0x907   : > { %4013 = vmatpush1.bf16.msra.mxu1 (!%p4708_p5), %v5329_v37  ;;  %v3566_v37 = vrot.slane (!%p4708_p5), %v3541_v38, %v6348_v28 }
 0x908   : > { %3491 = vmatpush1.bf16.msra.mxu0 %v5204_v43  ;;  %4014 = vmatprep.subr.bf16.mxu1 (!%p4708_p5), %v5332_v40  ;;  %v5338_v43 = vld [vmem:[#allocation15 + $0xac] ss:$16 sps:$4 sm:$0xff] (!%p4708_p5)  }
 0x909   : > { %3492 = vmatprep.subr.bf16.mxu0 %v5209_v4  ;;  %v5340_v4 = vld [vmem:[#allocation15 + $0xa0] ss:$16 sps:$4 sm:$0xff] (!%p4708_p5)  }
 0x90b   : > { %4015 = vmatpush1.bf16.msra.mxu1 (!%p4708_p5), %v5335_v42 }
 0x90c   : > { %3493 = vmatpush1.bf16.msra.mxu0 %v5207_v6  ;;  %v5341_v6 = vld [vmem:[#allocation15 + $0xa8] ss:$16 sps:$4 sm:$0xff] (!%p4708_p5)   ;;  %4016 = vmatprep.subr.bf16.mxu1 (!%p4708_p5), %v5338_v43 }
 0x90d   : > { %3494 = vmatprep.subr.bf16.mxu0 %v5212_v9  ;;  %v5342_v9 = vld [vmem:[#allocation15 + $0xc4] ss:$16 sps:$4 sm:$0xff] (!%p4708_p5)  }
 0x90f   : > { %4017 = vmatpush1.bf16.msra.mxu1 (!%p4708_p5), %v5341_v6 }
 0x910   : > { %3495 = vmatpush1.bf16.msra.mxu0 %v5210_v44  ;;  %v5344_v44 = vld [vmem:[#allocation15 + $0xcc] ss:$16 sps:$4 sm:$0xff] (!%p4708_p5)  }
 0x911   : > { %3496 = vmatprep.subr.bf16.mxu0 %v5215_v45  ;;  %v5346_v45 = vld [vmem:[#allocation15 + $0xc0] ss:$16 sps:$4 sm:$0xff] (!%p4708_p5)   ;;  %4018 = vmatprep.subr.bf16.mxu1 (!%p4708_p5), %v5344_v44 }
 0x914   : > { %3497 = vmatpush1.bf16.msra.mxu0 %v5213_v46  ;;  %v5347_v46 = vld [vmem:[#allocation15 + $0xc8] ss:$16 sps:$4 sm:$0xff] (!%p4708_p5)  }
 0x915   : > { %3498 = vmatprep.subr.bf16.mxu0 %v5218_v47  ;;  %v5348_v47 = vld [vmem:[#allocation15 + $0xe4] ss:$16 sps:$4 sm:$0xff] (!%p4708_p5)   ;;  %4019 = vmatpush1.bf16.msra.mxu1 (!%p4708_p5), %v5347_v46 }
 0x918   : > { %3499 = vmatpush1.bf16.msra.mxu0 %v5216_v48  ;;  %v5350_v48 = vld [vmem:[#allocation15 + $0xec] ss:$16 sps:$4 sm:$0xff] (!%p4708_p5)  }
 0x919   : > { %3500 = vmatprep.subr.bf16.mxu0 %v5221_v50  ;;  %v5352_v50 = vld [vmem:[#allocation15 + $0xe0] ss:$16 sps:$4 sm:$0xff] (!%p4708_p5)   ;;  %4020 = vmatprep.subr.bf16.mxu1 (!%p4708_p5), %v5350_v48 }
 0x91c   : > { %3501 = vmatpush1.bf16.msra.mxu0 %v5219_v51  ;;  %v5353_v51 = vld [vmem:[#allocation15 + $0xe8] ss:$16 sps:$4 sm:$0xff] (!%p4708_p5)  }
 0x91d   : > { %3502 = vmatprep.subr.bf16.mxu0 %v5224_v52  ;;  %v5354_v52 = vld [vmem:[#allocation15 + $0x104] ss:$16 sps:$4 sm:$0xff] (!%p4708_p5)   ;;  %4021 = vmatpush1.bf16.msra.mxu1 (!%p4708_p5), %v5353_v51 }
 0x920   : > { %3503 = vmatpush1.bf16.msra.mxu0 %v5222_v53  ;;  %v5356_v53 = vld [vmem:[#allocation15 + $0x10c] ss:$16 sps:$4 sm:$0xff] (!%p4708_p5)  }
 0x921   : > { %3504 = vmatprep.subr.bf16.mxu0 %v5227_v54  ;;  %v5358_v54 = vld [vmem:[#allocation15 + $0x100] ss:$16 sps:$4 sm:$0xff] (!%p4708_p5)   ;;  %4022 = vmatprep.subr.bf16.mxu1 (!%p4708_p5), %v5356_v53 }
 0x924   : > { %3505 = vmatpush1.bf16.msra.mxu0 %v5225_v55  ;;  %v5359_v55 = vld [vmem:[#allocation15 + $0x108] ss:$16 sps:$4 sm:$0xff] (!%p4708_p5)  }
 0x925   : > { %3506 = vmatprep.subr.bf16.mxu0 %v5230_v56  ;;  %v5360_v56 = vld [vmem:[#allocation15 + $0x124] ss:$16 sps:$4 sm:$0xff] (!%p4708_p5)   ;;  %4023 = vmatpush1.bf16.msra.mxu1 (!%p4708_p5), %v5359_v55 }
 0x928   : > { %3507 = vmatpush1.bf16.msra.mxu0 %v5228_v57  ;;  %v5362_v57 = vld [vmem:[#allocation15 + $0x12c] ss:$16 sps:$4 sm:$0xff] (!%p4708_p5)  }
 0x929   : > { %3508 = vmatprep.subr.bf16.mxu0 %v5233_v49  ;;  %v5364_v49 = vld [vmem:[#allocation15 + $0x120] ss:$16 sps:$4 sm:$0xff] (!%p4708_p5)   ;;  %4024 = vmatprep.subr.bf16.mxu1 (!%p4708_p5), %v5362_v57 }
 0x92c   : > { %3509 = vmatpush1.bf16.msra.mxu0 %v5231_v58  ;;  %v5365_v58 = vld [vmem:[#allocation15 + $0x128] ss:$16 sps:$4 sm:$0xff] (!%p4708_p5)  }
 0x92d   : > { %3510 = vmatprep.subr.bf16.mxu0 %v5236_v59  ;;  %v5366_v59 = vld [vmem:[#allocation15 + $0x144] ss:$16 sps:$4 sm:$0xff] (!%p4708_p5)   ;;  %4025 = vmatpush1.bf16.msra.mxu1 (!%p4708_p5), %v5365_v58 }
 0x930   : > { %3511 = vmatpush1.bf16.msra.mxu0 %v5234_v60  ;;  %v5368_v60 = vld [vmem:[#allocation15 + $0x14c] ss:$16 sps:$4 sm:$0xff] (!%p4708_p5)  }
 0x931   : > { %3512 = vmatprep.subr.bf16.mxu0 %v5239_v61  ;;  %v5370_v61 = vld [vmem:[#allocation15 + $0x140] ss:$16 sps:$4 sm:$0xff] (!%p4708_p5)   ;;  %4026 = vmatprep.subr.bf16.mxu1 (!%p4708_p5), %v5368_v60 }
 0x934   : > { %3513 = vmatpush1.bf16.msra.mxu0 %v5237_v62  ;;  %v5371_v62 = vld [vmem:[#allocation15 + $0x148] ss:$16 sps:$4 sm:$0xff] (!%p4708_p5)  }
 0x935   : > { %3514 = vmatprep.subr.bf16.mxu0 %v5242_v63  ;;  %v5372_v63 = vld [vmem:[#allocation15 + $0x164] ss:$16 sps:$4 sm:$0xff] (!%p4708_p5)   ;;  %4027 = vmatpush1.bf16.msra.mxu1 (!%p4708_p5), %v5371_v62 }
 0x938   : > { %3515 = vmatpush1.bf16.msra.mxu0 %v5240_v0  ;;  %v5374_v0 = vld [vmem:[#allocation15 + $0x16c] ss:$16 sps:$4 sm:$0xff] (!%p4708_p5)  }
 0x939   : > { %3516 = vmatprep.subr.bf16.mxu0 %v5245_v1  ;;  %v5376_v1 = vld [vmem:[#allocation15 + $0x160] ss:$16 sps:$4 sm:$0xff] (!%p4708_p5)   ;;  %4028 = vmatprep.subr.bf16.mxu1 (!%p4708_p5), %v5374_v0 }
 0x93c   : > { %3517 = vmatpush1.bf16.msra.mxu0 %v5243_v2  ;;  %v5377_v2 = vld [vmem:[#allocation15 + $0x168] ss:$16 sps:$4 sm:$0xff] (!%p4708_p5)  }
 0x93d   : > { %3963 = vmatprep.subr.bf16.mxu0 (!%p4708_p5), %v5306_v15  ;;  %4029 = vmatpush1.bf16.msra.mxu1 (!%p4708_p5), %v5377_v2  ;;  %v5390_v15 = vld [vmem:[#allocation15 + $0x1c4] ss:$16 sps:$4 sm:$0xff] (!%p4708_p5)  }
 0x93f   : > { %3519 = vmatmul.mubr.bf16.vlgmr.msra.gmra.mrb[20].mxu0 %v3057_v36  ;;  %v5328_v36 = vld [vmem:[#allocation15 + $0x60] ss:$16 sps:$4 sm:$0xff] (!%p4708_p5)  }
 0x940   : > { %3964 = vmatpush1.bf16.msra.mxu0 (!%p4708_p5), %v5310_v24  ;;  %v5395_v24 = vld [vmem:[#allocation15 + $0x1c8] ss:$16 sps:$4 sm:$0xff] (!%p4708_p5)  }
 0x941   : > { %3965 = vmatprep.subr.bf16.mxu0 (!%p4708_p5), %v5312_v19  ;;  %v5398_v19 = vld [vmem:[#allocation15 + $0x1ec] ss:$16 sps:$4 sm:$0xff] (!%p4708_p5)  }
 0x944   : > { %3966 = vmatpush1.bf16.msra.mxu0 (!%p4708_p5), %v5316_v23 }
 0x945   : > { %3967 = vmatprep.subr.bf16.mxu0 (!%p4708_p5), %v5318_v30 }
 0x948   : > { %3968 = vmatpush1.bf16.msra.mxu0 (!%p4708_p5), %v5322_v32 }
 0x949   : > { %3969 = vmatprep.subr.bf16.mxu0 (!%p4708_p5), %v5324_v35 }
 0x94c   : > { %3970 = vmatpush1.bf16.msra.mxu0 (!%p4708_p5), %v5328_v36 }
 0x94d   : > { %3971 = vmatprep.subr.bf16.mxu0 (!%p4708_p5), %v5330_v39  ;;  %v3570_v39 = vrot.slane (!%p4708_p5), %v3541_v38, %v6345_v27 }
 0x950   : > { %3972 = vmatpush1.bf16.msra.mxu0 (!%p4708_p5), %v5334_v41 }
 0x951   : > { %3973 = vmatprep.subr.bf16.mxu0 (!%p4708_p5), %v5336_v5 }
 0x954   : > { %3974 = vmatpush1.bf16.msra.mxu0 (!%p4708_p5), %v5340_v4 }
 0x955   : > { %3975 = vmatprep.subr.bf16.mxu0 (!%p4708_p5), %v5342_v9 }
 0x958   : > { %3976 = vmatpush1.bf16.msra.mxu0 (!%p4708_p5), %v5346_v45 }
 0x959   : > { %3977 = vmatprep.subr.bf16.mxu0 (!%p4708_p5), %v5348_v47 }
 0x95c   : > { %3978 = vmatpush1.bf16.msra.mxu0 (!%p4708_p5), %v5352_v50 }
 0x95d   : > { %3979 = vmatprep.subr.bf16.mxu0 (!%p4708_p5), %v5354_v52 }
 0x960   : > { %3980 = vmatpush1.bf16.msra.mxu0 (!%p4708_p5), %v5358_v54 }
 0x961   : > { %3981 = vmatprep.subr.bf16.mxu0 (!%p4708_p5), %v5360_v56 }
 0x964   : > { %3982 = vmatpush1.bf16.msra.mxu0 (!%p4708_p5), %v5364_v49 }
 0x965   : > { %3983 = vmatprep.subr.bf16.mxu0 (!%p4708_p5), %v5366_v59 }
 0x968   : > { %3984 = vmatpush1.bf16.msra.mxu0 (!%p4708_p5), %v5370_v61 }
 0x969   : > { %3985 = vmatprep.subr.bf16.mxu0 (!%p4708_p5), %v5372_v63 }
 0x96c   : > { %3986 = vmatpush1.bf16.msra.mxu0 (!%p4708_p5), %v5376_v1 }
 0xa12   : > { %v3520_v3 = vpop.f32.mrb[20].mxu0  ;;  %3540 = sbr.rel (%p4708_p5) target bundleno = 2970 (0xb9a), region = 108 }
 0xa13   : > { %v6724_v7 = vadd.f32 %v3520_v3, %v6537_v20  ;;  %v3522_v8 = vpop.f32.mrb[21].mxu0  ;;  %v5378_v3 = vld [vmem:[#allocation15 + $0x184] ss:$16 sps:$4 sm:$0xff] (!%p4708_p5)  }
 0xa14   : > { %v6727_v10 = vadd.f32 %v3522_v8, %v6539_v22  ;;  %v3524_v11 = vpop.f32.mrb[22].mxu0  ;;  %v5380_v8 = vld [vmem:[#allocation15 + $0x18c] ss:$16 sps:$4 sm:$0xff] (!%p4708_p5)   ;;  %3987 = vmatprep.subr.bf16.mxu0 (!%p4708_p5), %v5378_v3 }
 0xa15   : > { %3533 = vst [vmem:[#allocation2] sm:$0xff] %v6724_v7  ;;  %v6731_v12 = vadd.f32 %v3524_v11, %v6541_v29  ;;  %v3526_v13 = vpop.f32.mrb[23].mxu0  ;;  %v3542_v20 = vmul.f32 (!%p4708_p5), %v6724_v7, %v6724_v7  ;;  %v5382_v11 = vld [vmem:[#allocation15 + $0x180] ss:$16 sps:$4 sm:$0xff] (!%p4708_p5)   ;;  %4030 = vmatprep.subr.bf16.mxu1 (!%p4708_p5), %v5380_v8 }
 0xa16   : > { %3534 = vst [vmem:[#allocation2 + $0x8] sm:$0xff] %v6727_v10  ;;  %v6735_v14 = vadd.f32 %v3526_v13, %v6545_v33  ;;  %v3543_v22 = vmul.f32 (!%p4708_p5), %v6727_v10, %v6727_v10  ;;  %v5383_v13 = vld [vmem:[#allocation15 + $0x188] ss:$16 sps:$4 sm:$0xff] (!%p4708_p5)   ;;  %3988 = vmatpush1.bf16.msra.mxu0 (!%p4708_p5), %v5382_v11 }
 0xa17   : > { %3535 = vst [vmem:[#allocation2 + $0x10] sm:$0xff] %v6731_v12  ;;  %v3544_v29 = vmul.f32 (!%p4708_p5), %v6731_v12, %v6731_v12  ;;  %4031 = vmatpush1.bf16.msra.mxu1 (!%p4708_p5), %v5383_v13 }
 0xa18   : > { %3536 = vst [vmem:[#allocation2 + $0x18] sm:$0xff] %v6735_v14  ;;  %v3545_v33 = vmul.f32 (!%p4708_p5), %v6735_v14, %v6735_v14  ;;  %v3546_v17 = vadd.f32 (!%p4708_p5), %v3543_v22, %v3542_v20  ;;  %v5384_v20 = vld [vmem:[#allocation15 + $0x1a4] ss:$16 sps:$4 sm:$0xff] (!%p4708_p5)   ;;  %v5386_v22 = vld [vmem:[#allocation15 + $0x1ac] ss:$16 sps:$4 sm:$0xff] (!%p4708_p5)  }
 0xa19   : > { %3989 = vmatprep.subr.bf16.mxu0 %v5384_v20  ;;  %4032 = vmatprep.subr.bf16.mxu1 %v5386_v22 }
 0xa1a   : > { %3547 = vadd.xlane.f32.xlu0 %v3546_v17  ;;  %v3549_v26 = vadd.f32 %v3545_v33, %v3544_v29  ;;  %v5388_v29 = vld [vmem:[#allocation15 + $0x1a0] ss:$16 sps:$4 sm:$0xff]   ;;  %v5389_v33 = vld [vmem:[#allocation15 + $0x1a8] ss:$16 sps:$4 sm:$0xff]  }
 0xa1b   : > { %3990 = vmatpush1.bf16.msra.mxu0 %v5388_v29  ;;  %v5394_v17 = vld [vmem:[#allocation15 + $0x1c0] ss:$16 sps:$4 sm:$0xff]   ;;  %4033 = vmatpush1.bf16.msra.mxu1 %v5389_v33 }
 0xa1c   : > { %3991 = vmatprep.subr.bf16.mxu0 %v5390_v15  ;;  %4034 = vmatprep.subr.bf16.mxu1 %v5392_v16 }
 0xa1e   : > { %3550 = vadd.xlane.f32.xlu0 %v3549_v26  ;;  %v5400_v26 = vld [vmem:[#allocation15 + $0x1e0] ss:$16 sps:$4 sm:$0xff]  }
 0xa1f   : > { %3992 = vmatpush1.bf16.msra.mxu0 %v5394_v17  ;;  %4035 = vmatpush1.bf16.msra.mxu1 %v5395_v24 }
 0xa20   : > { %3993 = vmatprep.subr.bf16.mxu0 %v5396_v18  ;;  %4036 = vmatprep.subr.bf16.mxu1 %v5398_v19 }
 0xa23   : > { %3994 = vmatpush1.bf16.msra.mxu0 %v5400_v26  ;;  %4037 = vmatpush1.bf16.msra.mxu1 %v5401_v21 }
 0xaa7   : > { %v3548_v23 = vpop.xlane.xlu0 %3547 }
 0xaa8   : > { %v3552_v25 = vmul.f32 0.00390625, %v3548_v23 }
 0xaaa   : > { %v3554_v30 = vadd.f32 1e-05, %v3552_v25 }
 0xaab   : > { %v3551_v31 = vpop.xlane.xlu0 %3550 }
 0xaac   : > { %5402 = vrsqrt.f32 %v3554_v30  ;;  %v3553_v32 = vmul.f32 0.00390625, %v3551_v31 }
 0xaae   : > { %v3555_v34 = vadd.f32 1e-05, %v3553_v32 }
 0xab0   : > { %5404 = vrsqrt.f32 %v3555_v34 }
 0xab6   : > { %v5403_v35 = vpop.eup %5402 }
 0xab7   : > { %v3559_v36 = vmul.f32 %v5403_v35, %v6727_v10  ;;  %v3558_v40 = vmul.f32 %v5403_v35, %v6724_v7 }
 0xab9   : > { %v3574_v43 = vmul.f32 %v3570_v39, %v3559_v36  ;;  %v3573_v6 = vmul.f32 %v3566_v37, %v3558_v40 }
 0xaba   : > { %v5405_v41 = vpop.eup %5404 }
 0xabb   : > { %v3561_v42 = vmul.f32 %v5405_v41, %v6735_v14  ;;  %v3560_v5 = vmul.f32 %v5405_v41, %v6731_v12 }
 0xabd   : > { %v3576_v4 = vmul.f32 %v3570_v39, %v3561_v42  ;;  %v3575_v9 = vmul.f32 %v3566_v37, %v3560_v5 }
 0xabf   : > { %v3578_v44 = vpack.c.bf16 %v3576_v4, %v3574_v43  ;;  %v3577_v45 = vpack.c.bf16 %v3575_v9, %v3573_v6 }
 0xac1   : > { %3995 = vmatprep.mubr.bf16.mxu0 %v3578_v44  ;;  %4038 = vmatprep.mubr.bf16.mxu1 %v3578_v44 }
 0xac2   : > { %3996 = vmatmul.mubr.bf16.vlgmr.msra.gmra.mrb[0].mxu0 %v3577_v45  ;;  %4039 = vmatmul.mubr.bf16.vlgmr.msra.gmra.mrb[0].mxu1 %v3577_v45 }
 0xb95   : > { %v3997_v28 = vpop.f32.mrb[0].mxu0  ;;  %v4040_v10 = vpop.f32.mrb[0].mxu1 }
 0xb96   : > { %4049 = vst [vmem:[#allocation17] sm:$0xff] %v3997_v28  ;;  %4051 = vst [vmem:[#allocation17 + $0x10] sm:$0xff] %v4040_v10  ;;  %v3999_v27 = vpop.f32.mrb[1].mxu0  ;;  %v4042_v7 = vpop.f32.mrb[1].mxu1 }
 0xb97   : > { %4050 = vst [vmem:[#allocation17 + $0x8] sm:$0xff] %v3999_v27  ;;  %4052 = vst [vmem:[#allocation17 + $0x18] sm:$0xff] %v4042_v7  ;;  %v4001_v14 = vpop.f32.mrb[2].mxu0  ;;  %v4044_v12 = vpop.f32.mrb[2].mxu1 }
 0xb98   : > { %4053 = vst [vmem:[#allocation17 + $0x20] sm:$0xff] %v4001_v14  ;;  %4055 = vst [vmem:[#allocation17 + $0x30] sm:$0xff] %v4044_v12  ;;  %v4003_v46 = vpop.f32.mrb[3].mxu0  ;;  %v4046_v47 = vpop.f32.mrb[3].mxu1 }
 0xb99   : > { %4054 = vst [vmem:[#allocation17 + $0x28] sm:$0xff] %v4003_v46  ;;  %4056 = vst [vmem:[#allocation17 + $0x38] sm:$0xff] %v4046_v47 }
 0xb9a PF: > { %s6964_s22 = sld [smem:[#allocation34_spill]]  ;;  %s4786_s18 = sshll.u32 %s5902_s17, 9 }
 0xb9b   : > { %s6965_s2 = sld [smem:[#allocation43_spill]]  ;;  %s4089_s14 = sshll.u32 %s6254_s23, 4  ;;  %s6764_s14 = int_to_ptr.vmem [resolvable:$true] %s4089_s14 }
 0xb9c   : > { %s6966_s25 = sld [smem:[#allocation44_spill]]  ;;  %s4058_s13 = scalar_lea.sflag [#allocation19], %s6217_s19 }
 0xb9d   : > { %s5638_s30 = scalar_lea.vmem %s6764_s14, 512  ;;  %s5801_s15 = smov [#allocation18]  }
 0xb9e   : > { %p5639_p13 = scmp.ne.s32.totalorder %s6764_s14, %s5638_s30  ;;  %s5642_s7 = sshll.u32 %s5801_s15, 4  ;;  %s5643_s7 = int_to_ptr.vmem [resolvable:$false] %s5642_s7 }
 0xb9f   : > { %s5644_s23 = scalar_lea.vmem %s5643_s7, 1024  ;;  %p5645_p1 = scmp.lt.s32.totalorder %s6764_s14, %s5643_s7 }
 0xba0   : > { %p6967_p6 = scmp.ne.s32.totalorder %s6964_s22, 0  ;;  %p5646_p4 = scmp.lt.s32.totalorder %s5644_s23, %s5638_s30 }
 0xba1   : > { %s6761_s28 = scalar_lea.hbm %s6965_s2, %s4786_s18 }
 0xba2   : > { %s6769_s27 = scalar_lea.hbm %s6966_s25, %s4786_s18  ;;  %p5640_p8 = pnand %p5639_p13, %p6967_p6 }
 0xba3   : > { %p5647_p9 = por %p5646_p4, %p5645_p1 }
 0xba4   : > { %p5641_p3 = pneg %p5640_p8 }
 0xba6   : > { %p5648_p0 = pnand %p5647_p9, %p5641_p3 }
 0xba8   : > { %5651 = shalt.err (!%p5648_p0)
}
 0xba9   : > { %s5652_s8 = scalar_lea.hbm %s6761_s28, 512  ;;  %s5656_s26 = scalar_lea.hbm %s6965_s2, 1024 }
 0xbaa   : > { %p5653_p12 = scmp.ne.s32.totalorder %s6761_s28, %s5652_s8  ;;  %p5657_p10 = scmp.lt.u32.totalorder %s6761_s28, %s6965_s2 }
 0xbab   : > { %p5658_p11 = scmp.lt.u32.totalorder %s5656_s26, %s5652_s8  ;;  %p5660_p13 = scmp.lt.u32.totalorder %s5652_s8, %s6761_s28 }
 0xbac   : > { %p5654_p7 = pnand %p5653_p12, %p6967_p6 }
 0xbad   : > { %p5659_p5 = por %p5658_p11, %p5657_p10 }
 0xbae   : > { %p5655_p2 = pneg %p5654_p7 }
 0xbaf   : > { %p5661_p8 = por %p5660_p13, %p5659_p5 }
 0xbb1   : > { %p5662_p3 = pnand %p5661_p8, %p5655_p2 }
 0xbb3   : > { %5665 = shalt.err (!%p5662_p3)
}
 0xbb4   : > { %s5802_s18 = smov 256   ;;  %s5803_s4 = smov 16  }
 0xbb5   : > { %4853 = dma.vmem_to_hbm [thread:$0]  (%p6967_p6), %s6764_s14, 512, %s6761_s28, %s4058_s13, %s5802_s18, %s5802_s18, %s5803_s4  }
 0xbb6   : > { %s5804_s1 = smov [#allocation17]   ;;  %s4105_s29 = sshll.u32 %s6256_s21, 4  ;;  %s6817_s29 = int_to_ptr.vmem [resolvable:$true] %s4105_s29 }
 0xbb7   : > { %s4073_s5 = sshll.u32 %s5804_s1, 4  ;;  %p6968_p4 = scmp.eq.s32.totalorder %s5902_s17, 1  ;;  %s4074_s5 = int_to_ptr.vmem [resolvable:$true] %s4073_s5 }
 0xbb8   : > { %s5666_s30 = scalar_lea.vmem %s4074_s5, 1024  ;;  %p5673_p12 = scmp.lt.s32.totalorder %s4074_s5, %s4074_s5 }
 0xbb9   : > { %p5667_p1 = scmp.ne.s32.totalorder %s4074_s5, %s5666_s30  ;;  %p5674_p7 = scmp.lt.s32.totalorder %s5666_s30, %s5666_s30 }
 0xbbb   : > { %p5668_p9 = pnand %p5667_p1, %p6968_p4  ;;  %p5675_p2 = por %p5674_p7, %p5673_p12 }
 0xbbd   : > { %p5669_p0 = pneg %p5668_p9 }
 0xbbf   : > { %p5676_p10 = pnand %p5675_p2, %p5669_p0 }
 0xbc1   : > { %5679 = shalt.err (!%p5676_p10)
}
 0xbc2   : > { %s6969_s23 = sld [smem:[#allocation42_spill]]  ;;  %p6970_p5 = pmov %p6968_p4 }
 0xbc8   : > { %s5680_s8 = scalar_lea.hbm %s6969_s23, 1024 }
 0xbc9   : > { %p5681_p11 = scmp.ne.s32.totalorder %s6969_s23, %s5680_s8  ;;  %p5686_p3 = scmp.lt.u32.totalorder %s5680_s8, %s6969_s23 }
 0xbcb   : > { %p5682_p13 = pnand %p5681_p11, %p6970_p5 }
 0xbcd   : > { %p5683_p8 = pneg %p5682_p13 }
 0xbcf   : > { %p5688_p1 = pnand %p5686_p3, %p5683_p8 }
 0xbd1   : > { %5691 = shalt.err (!%p5688_p1)
}
 0xbd2   : > { %s5805_s12 = smov 512   ;;  %s5806_s26 = smov 32  }
 0xbd3   : > { %4852 = dma.vmem_to_hbm [thread:$0]  (%p6968_p4), %s4074_s5, 1024, %s6969_s23, [#allocation5], %s5805_s12, %s5805_s12, %s5806_s26  }
 0xbd4   : > { %s5692_s1 = scalar_lea.vmem %s6817_s29, 512  ;;  %s5807_s30 = smov [#allocation20]  }
 0xbd5   : > { %p5693_p9 = scmp.ne.s32.totalorder %s6817_s29, %s5692_s1  ;;  %s5696_s15 = sshll.u32 %s5807_s30, 4  ;;  %s5697_s15 = int_to_ptr.vmem [resolvable:$false] %s5696_s15 }
 0xbd6   : > { %s5698_s7 = scalar_lea.vmem %s5697_s15, 1024  ;;  %p5699_p7 = scmp.lt.s32.totalorder %s6817_s29, %s5697_s15 }
 0xbd7   : > { %p5694_p0 = pnand %p5693_p9, %p6967_p6  ;;  %p5700_p2 = scmp.lt.s32.totalorder %s5698_s7, %s5692_s1 }
 0xbd9   : > { %p5695_p12 = pneg %p5694_p0  ;;  %p5701_p10 = por %p5700_p2, %p5699_p7 }
 0xbdb   : > { %p5702_p11 = pnand %p5701_p10, %p5695_p12 }
 0xbdd   : > { %5705 = shalt.err (!%p5702_p11)
}
 0xbde   : > { %s5706_s5 = scalar_lea.hbm %s6769_s27, 512  ;;  %s5710_s14 = scalar_lea.hbm %s6966_s25, 1024 }
 0xbdf   : > { %p5707_p5 = scmp.ne.s32.totalorder %s6769_s27, %s5706_s5  ;;  %p5711_p3 = scmp.lt.u32.totalorder %s6769_s27, %s6966_s25 }
 0xbe0   : > { %p5712_p1 = scmp.lt.u32.totalorder %s5710_s14, %s5706_s5  ;;  %p5714_p9 = scmp.lt.u32.totalorder %s5706_s5, %s6769_s27 }
 0xbe1   : > { %p5708_p13 = pnand %p5707_p5, %p6967_p6 }
 0xbe2   : > { %p5713_p4 = por %p5712_p1, %p5711_p3 }
 0xbe3   : > { %p5709_p8 = pneg %p5708_p13 }
 0xbe4   : > { %p5715_p0 = por %p5714_p9, %p5713_p4 }
 0xbe6   : > { %p5716_p12 = pnand %p5715_p0, %p5709_p8 }
 0xbe8   : > { %5719 = shalt.err (!%p5716_p12)
}
 0xbe9   : > { %4854 = dma.vmem_to_hbm [thread:$0]  (%p6967_p6), %s6817_s29, 512, %s6769_s27, %s4058_s13, %s5802_s18, %s5802_s18, %s5803_s4  }
 0xbea   : > { %p6971_p7 = scmp.eq.s32.totalorder %s5902_s17, 1 }
 0xbec   : > { %5757 = dma.done.wait (%p6971_p7), [#allocation5], 1024   ;;  %p6972_p2 = pmov %p6971_p7 }
 0xbee   : > { %5759 = vsyncadd (%p6972_p2), [#allocation5], 4294966272 }
 0xbef PF: > { %s6973_s12 = sadd.s32 4294967294, %s5778_s16   ;;  %s6974_s26 = sld [smem:[#allocation31_spill]] }
 0xbf0   : > { %s4124_s22 = sand.u32 1, %s6973_s12   ;;  %p6976_p11 = scmp.ge.s32.totalorder %s5778_s16, 2 }
 0xbf1   : > { %s4125_s10 = scalar_lea.sflag [#allocation19], %s4124_s22 }
 0xbf5   : > { %p6975_p10 = scmp.ne.s32.totalorder %s6974_s26, 0 }
 0xbf7   : > { %p4886_p5 = pnand %p6976_p11, %p6975_p10 }
 0xbf9   : > { %5761 = dma.done.wait (!%p4886_p5), %s4125_s10, 1024  }
 0xbfa   : > { %5763 = vsyncadd (!%p4886_p5), %s4125_s10, 4294966272  ;;  %s6977_s16 = sld [smem:[#allocation32_spill]]  ;;  %s6978_s29 = sld [smem:[#allocation28_spill]] }
 0xbfb   : > { %s6979_s30 = sld [smem:[#allocation29_spill]]  ;;  %s6980_s15 = sld [smem:[#allocation33_spill]] }
 0xc00   : > { %p35_p6 = scmp.ge.s32.totalorder %s6977_s16, 4  }
 0xc02   :  { %37 = sbr.rel (!%p35_p6) target bundleno = 22 (0x16), region = 203 }
 0xc09   :  { %4139 = vsyncpa [#allocation4], 1 }
 0xc0a   :  { %4141 = vsyncpa [#allocation4 + $0x1], 1 }
 0xc0b   :  { %4142 = vsyncpa [#allocation7], 1 }
 0xc0c   :  { %4143 = vsyncpa [#allocation10], 1 }
 0xc0d   :  { %4145 = vsyncpa [#allocation10 + $0x1], 1 }
 0xc0e   :  { %4146 = vsyncpa [#allocation13], 1 }
 0xc0f   :  { %4148 = vsyncpa [#allocation13 + $0x1], 1 }
 0xc10   :  { %4149 = vsyncpa [#allocation16], 1 }
 0xc11   :  { %4150 = vsyncpa [#allocation5], 1 }
 0xc12   :  { %4152 = vsyncpa [#allocation5 + $0x1], 1 }
 0xc13   :  { %4153 = vsyncpa [#allocation19], 1 }
 0xc14   :  { %4155 = vsyncpa [#allocation19 + $0x1], 1 }

</bundles_post_ra>
